<compile_context>
chip_gen: v6e
topology: v6e:2x2x1
jax: 0.10.0
libtpu: 0.0.40
codegen_flags: <defaults>
</compile_context>

<pallas_src>
import functools

import jax
import jax.numpy as jnp
from jax.experimental import pallas as pl
from jax.experimental.pallas import tpu as pltpu

EPS = 1e-5           # PyTorch BatchNorm2d default
LANE = 128           # channel dims padded to lane multiples
ROW_TARGET = 2048    # target flattened rows (M) per grid step


def _round_up(x, m):
    return (x + m - 1) // m * m


def _vmem_limit_bytes():
    # v5e/v6e: 128 MiB physical -> use up to 100 MiB; v7x: 64 MiB -> ~48 MiB.
    try:
        cap = int(pltpu.get_tpu_info().vmem_capacity_bytes)
    except Exception:
        cap = 64 * 1024 * 1024
    return int(min(max(cap - 16 * 1024 * 1024, 32 * 1024 * 1024),
                   100 * 1024 * 1024))


def _cparams(n_grid_dims=1):
    return pltpu.CompilerParams(
        dimension_semantics=("parallel",) * n_grid_dims,
        vmem_limit_bytes=_vmem_limit_bytes())


# ----------------------------------------------------------------------------
# Kernel bodies
# ----------------------------------------------------------------------------
def _accum_conv_taps(load_tap, w_ref, taps, ho, wo):
    """Sum of 9 MXU matmuls (bf16 x bf16 -> f32), one per 3x3 tap."""
    cin = w_ref.shape[1]
    acc = jnp.zeros((ho * wo, w_ref.shape[2]), jnp.float32)
    for t, (r0, c0, k0) in enumerate(taps):
        tap = load_tap(r0, c0, k0, cin).reshape(ho * wo, cin)
        acc = acc + jnp.dot(tap, w_ref[t], preferred_element_type=jnp.float32)
    return acc


def _conv1_stats_kernel(x_ref, w_ref, y_ref, s_ref, q_ref, *, taps, ho, wo, bs):
    """Pass A: 3x3 conv from halo'd / phase-stacked input + partial BN sums."""
    cp = w_ref.shape[2]
    s = jnp.zeros((1, cp), jnp.float32)
    q = jnp.zeros((1, cp), jnp.float32)
    for b in range(bs):
        def load(r0, c0, k0, cin, b=b):
            return x_ref[b, r0:r0 + ho, c0:c0 + wo, k0:k0 + cin]
        acc = _accum_conv_taps(load, w_ref, taps, ho, wo)
        y_ref[b] = acc.reshape(ho, wo, -1).astype(y_ref.dtype)
        s = s + jnp.sum(acc, axis=0, keepdims=True)
        q = q + jnp.sum(acc * acc, axis=0, keepdims=True)
    s_ref[0] = s
    q_ref[0] = q


def _bn1_relu_conv2(y1_ref, sc1_ref, sh1_ref, w2_ref, y2_ref, s2_ref, q2_ref,
                    apad_ref, ho, wo, bs):
    """Shared pass-B main path: bn1+relu into a zero-bordered VMEM scratch,
    then 3x3 stride-1 conv2 from that scratch + partial BN sums."""
    taps = tuple((dh, dw, 0) for dh in range(3) for dw in range(3))
    sc1 = sc1_ref[...].reshape(1, 1, -1)
    sh1 = sh1_ref[...].reshape(1, 1, -1)
    apad_ref[...] = jnp.zeros_like(apad_ref)      # zero halo border every step
    cp = w2_ref.shape[2]
    s2 = jnp.zeros((1, cp), jnp.float32)
    q2 = jnp.zeros((1, cp), jnp.float32)
    for b in range(bs):
        a = jnp.maximum(y1_ref[b].astype(jnp.float32) * sc1 + sh1, 0.0)
        apad_ref[1:1 + ho, 1:1 + wo, :] = a.astype(apad_ref.dtype)

        def load(r0, c0, k0, cin):
            return apad_ref[r0:r0 + ho, c0:c0 + wo, :]
        acc = _accum_conv_taps(load, w2_ref, taps, ho, wo)
        y2_ref[b] = acc.reshape(ho, wo, -1).astype(y2_ref.dtype)
        s2 = s2 + jnp.sum(acc, axis=0, keepdims=True)
        q2 = q2 + jnp.sum(acc * acc, axis=0, keepdims=True)
    s2_ref[0] = s2
    q2_ref[0] = q2


def _bn1_conv2_stats_kernel(y1_ref, sc1_ref, sh1_ref, w2_ref,
                            y2_ref, s2_ref, q2_ref, apad_ref, *, ho, wo, bs):
    _bn1_relu_conv2(y1_ref, sc1_ref, sh1_ref, w2_ref, y2_ref, s2_ref, q2_ref,
                    apad_ref, ho, wo, bs)


def _bn1_conv2_proj_stats_kernel(y1_ref, sc1_ref, sh1_ref, w2_ref, xs_ref, ws_ref,
                                 y2_ref, s2_ref, q2_ref, ys_ref, ss_ref, qs_ref,
                                 apad_ref, *, ho, wo, bs):
    _bn1_relu_conv2(y1_ref, sc1_ref, sh1_ref, w2_ref, y2_ref, s2_ref, q2_ref,
                    apad_ref, ho, wo, bs)
    # fused 1x1 projection shortcut over the same samples, own BN partial sums
    cinp = ws_ref.shape[0]
    cp = ws_ref.shape[1]
    ss = jnp.zeros((1, cp), jnp.float32)
    qs = jnp.zeros((1, cp), jnp.float32)
    for b in range(bs):
        xs = xs_ref[b].reshape(ho * wo, cinp)
        accs = jnp.dot(xs, ws_ref[...], preferred_element_type=jnp.float32)
        ys_ref[b] = accs.reshape(ho, wo, -1).astype(ys_ref.dtype)
        ss = ss + jnp.sum(accs, axis=0, keepdims=True)
        qs = qs + jnp.sum(accs * accs, axis=0, keepdims=True)
    ss_ref[0] = ss
    qs_ref[0] = qs


def _bn2_proj_add_relu_kernel(y2_ref, sc2_ref, sh2_ref, ys_ref, scs_ref, shs_ref,
                              o_ref):
    a = y2_ref[...].astype(jnp.float32) * sc2_ref[...] + sh2_ref[...]
    s = ys_ref[...].astype(jnp.float32) * scs_ref[...] + shs_ref[...]
    o_ref[...] = jnp.maximum(a + s, 0.0).astype(o_ref.dtype)


def _bn2_id_add_relu_kernel(y2_ref, sc2_ref, sh2_ref, xs_ref, o_ref):
    a = y2_ref[...].astype(jnp.float32) * sc2_ref[...] + sh2_ref[...]
    o_ref[...] = jnp.maximum(a + xs_ref[...].astype(jnp.float32),
                             0.0).astype(o_ref.dtype)


# ----------------------------------------------------------------------------
# pallas_call wrappers
# ----------------------------------------------------------------------------
def _call_conv1_stats(x1, w1m, taps, n, ho, wo, cp, bs):
    steps = n // bs
    kern = functools.partial(_conv1_stats_kernel, taps=taps, ho=ho, wo=wo, bs=bs)
    return pl.pallas_call(
        kern,
        grid=(steps,),
        in_specs=[pl.BlockSpec((bs,) + tuple(x1.shape[1:]),
                               lambda i: (i, 0, 0, 0)),
                  pl.BlockSpec(tuple(w1m.shape), lambda i: (0, 0, 0))],
        out_specs=(pl.BlockSpec((bs, ho, wo, cp), lambda i: (i, 0, 0, 0)),
                   pl.BlockSpec((1, 1, cp), lambda i: (i, 0, 0)),
                   pl.BlockSpec((1, 1, cp), lambda i: (i, 0, 0))),
        out_shape=(jax.ShapeDtypeStruct((n, ho, wo, cp), jnp.bfloat16),
                   jax.ShapeDtypeStruct((steps, 1, cp), jnp.float32),
                   jax.ShapeDtypeStruct((steps, 1, cp), jnp.float32)),
        compiler_params=_cparams(1),
    )(x1, w1m)


def _call_bn1_conv2_id(y1, sc1, sh1, w2m, ho, wo, bs):
    n, _, _, cp = y1.shape
    steps = n // bs
    kern = functools.partial(_bn1_conv2_stats_kernel, ho=ho, wo=wo, bs=bs)
    sample = pl.BlockSpec((bs, ho, wo, cp), lambda i: (i, 0, 0, 0))
    vec = pl.BlockSpec((1, cp), lambda i: (0, 0))
    stat = pl.BlockSpec((1, 1, cp), lambda i: (i, 0, 0))
    return pl.pallas_call(
        kern,
        grid=(steps,),
        in_specs=[sample, vec, vec,
                  pl.BlockSpec(tuple(w2m.shape), lambda i: (0, 0, 0))],
        out_specs=(sample, stat, stat),
        out_shape=(jax.ShapeDtypeStruct((n, ho, wo, cp), jnp.bfloat16),
                   jax.ShapeDtypeStruct((steps, 1, cp), jnp.float32),
                   jax.ShapeDtypeStruct((steps, 1, cp), jnp.float32)),
        scratch_shapes=[pltpu.VMEM((ho + 2, wo + 2, cp), jnp.bfloat16)],
        compiler_params=_cparams(1),
    )(y1, sc1, sh1, w2m)


def _call_bn1_conv2_proj(y1, sc1, sh1, w2m, xs, wsm, ho, wo, bs):
    n, _, _, cp = y1.shape
    cinp = wsm.shape[0]
    steps = n // bs
    kern = functools.partial(_bn1_conv2_proj_stats_kernel, ho=ho, wo=wo, bs=bs)
    sample = pl.BlockSpec((bs, ho, wo, cp), lambda i: (i, 0, 0, 0))
    sample_in = pl.BlockSpec((bs, ho, wo, cinp), lambda i: (i, 0, 0, 0))
    vec = pl.BlockSpec((1, cp), lambda i: (0, 0))
    stat = pl.BlockSpec((1, 1, cp), lambda i: (i, 0, 0))
    return pl.pallas_call(
        kern,
        grid=(steps,),
        in_specs=[sample, vec, vec,
                  pl.BlockSpec(tuple(w2m.shape), lambda i: (0, 0, 0)),
                  sample_in,
                  pl.BlockSpec(tuple(wsm.shape), lambda i: (0, 0))],
        out_specs=(sample, stat, stat, sample, stat, stat),
        out_shape=(jax.ShapeDtypeStruct((n, ho, wo, cp), jnp.bfloat16),
                   jax.ShapeDtypeStruct((steps, 1, cp), jnp.float32),
                   jax.ShapeDtypeStruct((steps, 1, cp), jnp.float32),
                   jax.ShapeDtypeStruct((n, ho, wo, cp), jnp.bfloat16),
                   jax.ShapeDtypeStruct((steps, 1, cp), jnp.float32),
                   jax.ShapeDtypeStruct((steps, 1, cp), jnp.float32)),
        scratch_shapes=[pltpu.VMEM((ho + 2, wo + 2, cp), jnp.bfloat16)],
        compiler_params=_cparams(1),
    )(y1, sc1, sh1, w2m, xs, wsm)


def _call_bn2_proj_add_relu(y2f, sc2, sh2, ysf, scs, shs, tm):
    m, cp = y2f.shape
    row = pl.BlockSpec((tm, cp), lambda i: (i, 0))
    vec = pl.BlockSpec((1, cp), lambda i: (0, 0))
    return pl.pallas_call(
        _bn2_proj_add_relu_kernel,
        grid=(m // tm,),
        in_specs=[row, vec, vec, row, vec, vec],
        out_specs=row,
        out_shape=jax.ShapeDtypeStruct((m, cp), jnp.float32),
        compiler_params=_cparams(1),
    )(y2f, sc2, sh2, ysf, scs, shs)


def _call_bn2_id_add_relu(y2f, sc2, sh2, xsf, tm):
    m, cp = y2f.shape
    row = pl.BlockSpec((tm, cp), lambda i: (i, 0))
    vec = pl.BlockSpec((1, cp), lambda i: (0, 0))
    return pl.pallas_call(
        _bn2_id_add_relu_kernel,
        grid=(m // tm,),
        in_specs=[row, vec, vec, row],
        out_specs=row,
        out_shape=jax.ShapeDtypeStruct((m, cp), jnp.float32),
        compiler_params=_cparams(1),
    )(y2f, sc2, sh2, xsf)


# ----------------------------------------------------------------------------
# JAX glue: BN fold, weight reshape, layout / padding
# ----------------------------------------------------------------------------
def _bn_scale_shift(s_partial, q_partial, gamma, beta, count, cp):
    """Fold global training-mode BN into per-channel (scale, shift), padded to Cp."""
    s = jnp.sum(s_partial, axis=(0, 1))
    q = jnp.sum(q_partial, axis=(0, 1))
    mean = s / count
    var = jnp.maximum(q / count - mean * mean, 0.0)
    g = jnp.pad(gamma.astype(jnp.float32), (0, cp - gamma.shape[0]))
    b = jnp.pad(beta.astype(jnp.float32), (0, cp - beta.shape[0]))
    scale = g * jax.lax.rsqrt(var + EPS)
    shift = b - mean * scale
    return scale.reshape(1, cp), shift.reshape(1, cp)


def _w3x3_to_mat(w_oihw, cinp, cp):
    """(Cout,Cin,3,3) -> zero-padded (9, Cinp, Cp) bf16, tap-major."""
    cout, cin = w_oihw.shape[0], w_oihw.shape[1]
    m = jnp.transpose(w_oihw, (2, 3, 1, 0)).reshape(9, cin, cout)
    m = jnp.pad(m, ((0, 0), (0, cinp - cin), (0, cp - cout)))
    return m.astype(jnp.bfloat16)


def _w1x1_to_mat(w_oihw, cinp, cp):
    cout, cin = w_oihw.shape[0], w_oihw.shape[1]
    m = w_oihw.reshape(cout, cin).T
    return jnp.pad(m, ((0, cinp - cin), (0, cp - cout))).astype(jnp.bfloat16)


def _choose_tm(m, base, target):
    tm = base
    while m % (tm * 2) == 0 and tm * 2 <= target:
        tm *= 2
    return tm


def basic_block_forward(x_nchw, params, bn_name, stride,
                        max_rows_per_step=ROW_TARGET, force_bs=None):
    """Pallas implementation of BasicBlock.forward((x, bn_name))."""
    x = jnp.transpose(x_nchw, (0, 2, 3, 1)).astype(jnp.float32)   # NCHW -> NHWC
    N, H, W, Cin = x.shape
    Cout = params["w1"].shape[0]
    Cp = _round_up(Cout, LANE)
    Cinp = _round_up(Cin, LANE)
    if stride == 2:
        assert H % 2 == 0 and W % 2 == 0
    Ho, Wo = H // stride, W // stride
    assert Ho % 8 == 0 and Wo % 8 == 0, "output spatial dims must be multiples of 8"
    M = N * Ho * Wo

    g1, b1 = params["bn1"][bn_name]
    g2, b2 = params["bn2"][bn_name]
    x_bf = x.astype(jnp.bfloat16)

    # samples per grid step for the conv passes
    if force_bs is None:
        bs = 1
        while N % (bs * 2) == 0 and (bs * 2) * Ho * Wo <= max_rows_per_step:
            bs *= 2
    else:
        bs = force_bs
    assert N % bs == 0

    # ---- conv1 input: halo'd NHWC (stride 1) or phase-stacked (stride 2) ----
    xpad = jnp.pad(x_bf, ((0, 0), (1, 1), (1, 1), (0, Cinp - Cin)))
    if stride == 1:
        x1 = xpad
        taps1 = tuple((dh, dw, 0) for dh in range(3) for dw in range(3))
    else:
        # space-to-depth: each 3x3 stride-2 tap becomes a contiguous slice of a
        # phase image, so no strided loads are needed in-kernel.
        phases = [xpad[:, ph::2, pw::2, :] for ph in (0, 1) for pw in (0, 1)]
        x1 = jnp.concatenate(phases, axis=-1)   # (N, (H+2)//2, (W+2)//2, 4*Cinp)
        taps1 = tuple((dh // 2, dw // 2, ((dh % 2) * 2 + (dw % 2)) * Cinp)
                      for dh in range(3) for dw in range(3))
    w1m = _w3x3_to_mat(params["w1"], Cinp, Cp)

    # ---- pass A: conv1 + partial BN sums; fold bn1 into (scale, shift) ----
    y1, s1, q1 = _call_conv1_stats(x1, w1m, taps1, N, Ho, Wo, Cp, bs)
    sc1, sh1 = _bn_scale_shift(s1, q1, g1, b1, M, Cp)

    # ---- pass B: bn1+relu fused into conv2 (+ 1x1 projection) + BN sums ----
    w2m = _w3x3_to_mat(params["w2"], Cp, Cp)
    tm = _choose_tm(M, Ho * Wo, max_rows_per_step)
    if params["proj"]:
        gs, bsc = params["bn_sc"][bn_name]
        xs = x_bf[:, ::stride, ::stride, :]
        xs = jnp.pad(xs, ((0, 0), (0, 0), (0, 0), (0, Cinp - Cin)))
        wsm = _w1x1_to_mat(params["w_sc"], Cinp, Cp)
        y2, s2, q2, ys, ss, qs = _call_bn1_conv2_proj(
            y1, sc1, sh1, w2m, xs, wsm, Ho, Wo, bs)
        sc2, sh2 = _bn_scale_shift(s2, q2, g2, b2, M, Cp)
        scs, shs = _bn_scale_shift(ss, qs, gs, bsc, M, Cp)
        out = _call_bn2_proj_add_relu(
            y2.reshape(M, Cp), sc2, sh2, ys.reshape(M, Cp), scs, shs, tm)
    else:
        y2, s2, q2 = _call_bn1_conv2_id(y1, sc1, sh1, w2m, Ho, Wo, bs)
        sc2, sh2 = _bn_scale_shift(s2, q2, g2, b2, M, Cp)
        xs = jnp.pad(x_bf, ((0, 0), (0, 0), (0, 0), (0, Cp - Cin)))   # bf16 shortcut
        out = _call_bn2_id_add_relu(
            y2.reshape(M, Cp), sc2, sh2, xs.reshape(M, Cp), tm)

    out = out.reshape(N, Ho, Wo, Cp)[:, :, :, :Cout]
    return jnp.transpose(out, (0, 3, 1, 2)), bn_name        # back to NCHW


# ----------------------------------------------------------------------------
# Deterministic parameter init (same shapes as the PyTorch module __init__)
# ----------------------------------------------------------------------------
def init_basic_block_params(key, in_planes, planes, stride, bn_names):
    keys = jax.random.split(key, 16)
    proj = (stride != 1) or (in_planes != planes)

    def bn_params(k):
        kg, kb = jax.random.split(k)
        gamma = 1.0 + 0.1 * jax.random.normal(kg, (planes,), jnp.float32)
        beta = 0.1 * jax.random.normal(kb, (planes,), jnp.float32)
        return gamma, beta

    params = {
        "w1": 0.1 * jax.random.normal(keys[0], (planes, in_planes, 3, 3), jnp.float32),
        "w2": 0.1 * jax.random.normal(keys[1], (planes, planes, 3, 3), jnp.float32),
        "bn1": {n: bn_params(keys[2 + i]) for i, n in enumerate(bn_names)},
        "bn2": {n: bn_params(keys[6 + i]) for i, n in enumerate(bn_names)},
        "proj": proj,
        "w_sc": (0.1 * jax.random.normal(keys[10], (planes, in_planes, 1, 1),
                                         jnp.float32) if proj else None),
        "bn_sc": ({n: bn_params(keys[11 + i]) for i, n in enumerate(bn_names)}
                  if proj else None),
    }
    return params


# ----------------------------------------------------------------------------
# Pure-JAX reference mirroring the kernels' dtype choices (bf16 matmul
# operands, bf16 conv intermediates / shortcut), BN stats in f32
# ----------------------------------------------------------------------------
def _ref_forward(x_nchw, params, bn_name, stride):
    def conv(x, w, s, pad):
        return jax.lax.conv_general_dilated(
            x.astype(jnp.bfloat16), w.astype(jnp.bfloat16), (s, s),
            ((pad, pad), (pad, pad)),
            dimension_numbers=("NCHW", "OIHW", "NCHW"),
            preferred_element_type=jnp.float32)

    def bn_apply(y, g, b):
        mean = y.mean(axis=(0, 2, 3), keepdims=True)
        var = jnp.square(y - mean).mean(axis=(0, 2, 3), keepdims=True)
        scale = g.reshape(1, -1, 1, 1) * jax.lax.rsqrt(var + EPS)
        shift = b.reshape(1, -1, 1, 1) - mean * scale
        yq = y.astype(jnp.bfloat16).astype(jnp.float32)   # kernels store y bf16
        return yq * scale + shift

    g1, b1 = params["bn1"][bn_name]
    g2, b2 = params["bn2"][bn_name]
    out = jnp.maximum(bn_apply(conv(x_nchw, params["w1"], stride, 1), g1, b1), 0.0)
    out = out.astype(jnp.bfloat16).astype(jnp.float32)    # kernel keeps out1 bf16
    out = bn_apply(conv(out, params["w2"], 1, 1), g2, b2)
    if params["proj"]:
        gs, bs = params["bn_sc"][bn_name]
        sc = bn_apply(conv(x_nchw, params["w_sc"], stride, 0), gs, bs)
    else:
        sc = x_nchw.astype(jnp.bfloat16).astype(jnp.float32)
    return jnp.maximum(out + sc, 0.0)


# ----------------------------------------------------------------------------
if __name__ == "__main__":
    key = jax.random.PRNGKey(0)
    bn_names = ["clean", "adv"]

    tests = [
        # (name, N, in_planes, planes, stride, H, force_bs)
        ("proj_stride2", 2, 16, 32, 2, 32, 1),   # bs=1 -> multi-step conv grid
        ("identity", 2, 16, 16, 1, 32, None),    # auto bs -> grouped samples
    ]

    for idx, (name, N, cin, planes, stride, H, force_bs) in enumerate(tests):
        k_x, k_p = jax.random.split(jax.random.fold_in(key, idx))
        x = jax.random.normal(k_x, (N, cin, H, H), jnp.float32)   # NCHW
        params = init_basic_block_params(k_p, cin, planes, stride, bn_names)

        out, tag = basic_block_forward(x, params, "clean", stride,
                                       force_bs=force_bs)
        out = jax.block_until_ready(out)

        ref = jax.block_until_ready(_ref_forward(x, params, "clean", stride))
        Ho = H // stride
        assert tag == "clean"
        assert out.shape == ref.shape == (N, planes, Ho, Ho), (name, out.shape)
        err = float(jnp.max(jnp.abs(out - ref)))
        assert err < 2e-2, (name, err)

    print("KERNEL_OK")
</pallas_src>

<mosaic_0001>
module attributes {stable_mosaic.version = 11 : i64} {
  func.func @_conv1_stats_kernel(%arg0: i32, %arg1: memref<1x17x17x512xbf16, #tpu.memory_space<vmem>>, %arg2: memref<9x128x128xbf16, #tpu.memory_space<vmem>>, %arg3: memref<1x16x16x128xbf16, #tpu.memory_space<vmem>>, %arg4: memref<1x1x128xf32, #tpu.memory_space<vmem>>, %arg5: memref<1x1x128xf32, #tpu.memory_space<vmem>>) attributes {dimension_semantics = [#tpu.dimension_semantics<parallel>], iteration_bounds = array<i64: 2>, scalar_prefetch = 0 : i64, scratch_operands = 0 : i64, tpu.core_type = #tpu.core_type<tc>, window_params = [{transform_indices = @transform_0, window_bounds = array<i64: 1, 17, 17, 512>}, {pipeline_mode = #tpu.pipeline_mode<synchronous>, transform_indices = @transform_1, window_bounds = array<i64: 9, 128, 128>}, {transform_indices = @transform_2, window_bounds = array<i64: 1, 16, 16, 128>}, {transform_indices = @transform_3, window_bounds = array<i64: 1, 1, 128>}, {transform_indices = @transform_4, window_bounds = array<i64: 1, 1, 128>}]} {
    %cst = arith.constant 0.000000e+00 : f32
    %0 = vector.broadcast %cst : f32 to vector<1x128xf32>
    %cst_0 = arith.constant 0.000000e+00 : f32
    %1 = vector.broadcast %cst_0 : f32 to vector<1x128xf32>
    %cst_1 = arith.constant 0.000000e+00 : f32
    %2 = vector.broadcast %cst_1 : f32 to vector<256x128xf32>
    %c0 = arith.constant 0 : index
    %c0_2 = arith.constant 0 : index
    %c0_3 = arith.constant 0 : index
    %c0_4 = arith.constant 0 : index
    %3 = vector.load %arg1[%c0, %c0_2, %c0_3, %c0_4] : memref<1x17x17x512xbf16, #tpu.memory_space<vmem>>, vector<1x16x16x128xbf16>
    %4 = vector.shape_cast %3 : vector<1x16x16x128xbf16> to vector<16x16x128xbf16>
    %5 = vector.shape_cast %4 : vector<16x16x128xbf16> to vector<256x128xbf16>
    %c0_5 = arith.constant 0 : index
    %c0_6 = arith.constant 0 : index
    %c0_7 = arith.constant 0 : index
    %6 = vector.load %arg2[%c0_5, %c0_6, %c0_7] : memref<9x128x128xbf16, #tpu.memory_space<vmem>>, vector<1x128x128xbf16>
    %7 = vector.shape_cast %6 : vector<1x128x128xbf16> to vector<128x128xbf16>
    %cst_8 = arith.constant dense<0.000000e+00> : vector<256x128xf32>
    %8 = tpu.matmul %5, %7, %cst_8 {dimension_numbers = #tpu.dot_dimension_numbers<[1], [0], [0], [1], [0, 0, 1, 1], [], []>} : vector<256x128xbf16>, vector<128x128xbf16>, vector<256x128xf32> -> vector<256x128xf32>
    %9 = arith.addf %2, %8 : vector<256x128xf32>
    %c0_9 = arith.constant 0 : index
    %c0_10 = arith.constant 0 : index
    %c0_11 = arith.constant 0 : index
    %c128 = arith.constant 128 : index
    %10 = vector.load %arg1[%c0_9, %c0_10, %c0_11, %c128] : memref<1x17x17x512xbf16, #tpu.memory_space<vmem>>, vector<1x16x16x128xbf16>
    %11 = vector.shape_cast %10 : vector<1x16x16x128xbf16> to vector<16x16x128xbf16>
    %12 = vector.shape_cast %11 : vector<16x16x128xbf16> to vector<256x128xbf16>
    %c1 = arith.constant 1 : index
    %c0_12 = arith.constant 0 : index
    %c0_13 = arith.constant 0 : index
    %13 = vector.load %arg2[%c1, %c0_12, %c0_13] : memref<9x128x128xbf16, #tpu.memory_space<vmem>>, vector<1x128x128xbf16>
    %14 = vector.shape_cast %13 : vector<1x128x128xbf16> to vector<128x128xbf16>
    %cst_14 = arith.constant dense<0.000000e+00> : vector<256x128xf32>
    %15 = tpu.matmul %12, %14, %cst_14 {dimension_numbers = #tpu.dot_dimension_numbers<[1], [0], [0], [1], [0, 0, 1, 1], [], []>} : vector<256x128xbf16>, vector<128x128xbf16>, vector<256x128xf32> -> vector<256x128xf32>
    %16 = arith.addf %9, %15 : vector<256x128xf32>
    %c0_15 = arith.constant 0 : index
    %c0_16 = arith.constant 0 : index
    %c1_17 = arith.constant 1 : index
    %c0_18 = arith.constant 0 : index
    %17 = vector.load %arg1[%c0_15, %c0_16, %c1_17, %c0_18] : memref<1x17x17x512xbf16, #tpu.memory_space<vmem>>, vector<1x16x16x128xbf16>
    %18 = vector.shape_cast %17 : vector<1x16x16x128xbf16> to vector<16x16x128xbf16>
    %19 = vector.shape_cast %18 : vector<16x16x128xbf16> to vector<256x128xbf16>
    %c2 = arith.constant 2 : index
    %c0_19 = arith.constant 0 : index
    %c0_20 = arith.constant 0 : index
    %20 = vector.load %arg2[%c2, %c0_19, %c0_20] : memref<9x128x128xbf16, #tpu.memory_space<vmem>>, vector<1x128x128xbf16>
    %21 = vector.shape_cast %20 : vector<1x128x128xbf16> to vector<128x128xbf16>
    %cst_21 = arith.constant dense<0.000000e+00> : vector<256x128xf32>
    %22 = tpu.matmul %19, %21, %cst_21 {dimension_numbers = #tpu.dot_dimension_numbers<[1], [0], [0], [1], [0, 0, 1, 1], [], []>} : vector<256x128xbf16>, vector<128x128xbf16>, vector<256x128xf32> -> vector<256x128xf32>
    %23 = arith.addf %16, %22 : vector<256x128xf32>
    %c0_22 = arith.constant 0 : index
    %c0_23 = arith.constant 0 : index
    %c0_24 = arith.constant 0 : index
    %c256 = arith.constant 256 : index
    %24 = vector.load %arg1[%c0_22, %c0_23, %c0_24, %c256] : memref<1x17x17x512xbf16, #tpu.memory_space<vmem>>, vector<1x16x16x128xbf16>
    %25 = vector.shape_cast %24 : vector<1x16x16x128xbf16> to vector<16x16x128xbf16>
    %26 = vector.shape_cast %25 : vector<16x16x128xbf16> to vector<256x128xbf16>
    %c3 = arith.constant 3 : index
    %c0_25 = arith.constant 0 : index
    %c0_26 = arith.constant 0 : index
    %27 = vector.load %arg2[%c3, %c0_25, %c0_26] : memref<9x128x128xbf16, #tpu.memory_space<vmem>>, vector<1x128x128xbf16>
    %28 = vector.shape_cast %27 : vector<1x128x128xbf16> to vector<128x128xbf16>
    %cst_27 = arith.constant dense<0.000000e+00> : vector<256x128xf32>
    %29 = tpu.matmul %26, %28, %cst_27 {dimension_numbers = #tpu.dot_dimension_numbers<[1], [0], [0], [1], [0, 0, 1, 1], [], []>} : vector<256x128xbf16>, vector<128x128xbf16>, vector<256x128xf32> -> vector<256x128xf32>
    %30 = arith.addf %23, %29 : vector<256x128xf32>
    %c0_28 = arith.constant 0 : index
    %c0_29 = arith.constant 0 : index
    %c0_30 = arith.constant 0 : index
    %c384 = arith.constant 384 : index
    %31 = vector.load %arg1[%c0_28, %c0_29, %c0_30, %c384] : memref<1x17x17x512xbf16, #tpu.memory_space<vmem>>, vector<1x16x16x128xbf16>
    %32 = vector.shape_cast %31 : vector<1x16x16x128xbf16> to vector<16x16x128xbf16>
    %33 = vector.shape_cast %32 : vector<16x16x128xbf16> to vector<256x128xbf16>
    %c4 = arith.constant 4 : index
    %c0_31 = arith.constant 0 : index
    %c0_32 = arith.constant 0 : index
    %34 = vector.load %arg2[%c4, %c0_31, %c0_32] : memref<9x128x128xbf16, #tpu.memory_space<vmem>>, vector<1x128x128xbf16>
    %35 = vector.shape_cast %34 : vector<1x128x128xbf16> to vector<128x128xbf16>
    %cst_33 = arith.constant dense<0.000000e+00> : vector<256x128xf32>
    %36 = tpu.matmul %33, %35, %cst_33 {dimension_numbers = #tpu.dot_dimension_numbers<[1], [0], [0], [1], [0, 0, 1, 1], [], []>} : vector<256x128xbf16>, vector<128x128xbf16>, vector<256x128xf32> -> vector<256x128xf32>
    %37 = arith.addf %30, %36 : vector<256x128xf32>
    %c0_34 = arith.constant 0 : index
    %c0_35 = arith.constant 0 : index
    %c1_36 = arith.constant 1 : index
    %c256_37 = arith.constant 256 : index
    %38 = vector.load %arg1[%c0_34, %c0_35, %c1_36, %c256_37] : memref<1x17x17x512xbf16, #tpu.memory_space<vmem>>, vector<1x16x16x128xbf16>
    %39 = vector.shape_cast %38 : vector<1x16x16x128xbf16> to vector<16x16x128xbf16>
    %40 = vector.shape_cast %39 : vector<16x16x128xbf16> to vector<256x128xbf16>
    %c5 = arith.constant 5 : index
    %c0_38 = arith.constant 0 : index
    %c0_39 = arith.constant 0 : index
    %41 = vector.load %arg2[%c5, %c0_38, %c0_39] : memref<9x128x128xbf16, #tpu.memory_space<vmem>>, vector<1x128x128xbf16>
    %42 = vector.shape_cast %41 : vector<1x128x128xbf16> to vector<128x128xbf16>
    %cst_40 = arith.constant dense<0.000000e+00> : vector<256x128xf32>
    %43 = tpu.matmul %40, %42, %cst_40 {dimension_numbers = #tpu.dot_dimension_numbers<[1], [0], [0], [1], [0, 0, 1, 1], [], []>} : vector<256x128xbf16>, vector<128x128xbf16>, vector<256x128xf32> -> vector<256x128xf32>
    %44 = arith.addf %37, %43 : vector<256x128xf32>
    %c0_41 = arith.constant 0 : index
    %c1_42 = arith.constant 1 : index
    %c0_43 = arith.constant 0 : index
    %c0_44 = arith.constant 0 : index
    %45 = vector.load %arg1[%c0_41, %c1_42, %c0_43, %c0_44] : memref<1x17x17x512xbf16, #tpu.memory_space<vmem>>, vector<1x16x16x128xbf16>
    %46 = vector.shape_cast %45 : vector<1x16x16x128xbf16> to vector<16x16x128xbf16>
    %47 = vector.shape_cast %46 : vector<16x16x128xbf16> to vector<256x128xbf16>
    %c6 = arith.constant 6 : index
    %c0_45 = arith.constant 0 : index
    %c0_46 = arith.constant 0 : index
    %48 = vector.load %arg2[%c6, %c0_45, %c0_46] : memref<9x128x128xbf16, #tpu.memory_space<vmem>>, vector<1x128x128xbf16>
    %49 = vector.shape_cast %48 : vector<1x128x128xbf16> to vector<128x128xbf16>
    %cst_47 = arith.constant dense<0.000000e+00> : vector<256x128xf32>
    %50 = tpu.matmul %47, %49, %cst_47 {dimension_numbers = #tpu.dot_dimension_numbers<[1], [0], [0], [1], [0, 0, 1, 1], [], []>} : vector<256x128xbf16>, vector<128x128xbf16>, vector<256x128xf32> -> vector<256x128xf32>
    %51 = arith.addf %44, %50 : vector<256x128xf32>
    %c0_48 = arith.constant 0 : index
    %c1_49 = arith.constant 1 : index
    %c0_50 = arith.constant 0 : index
    %c128_51 = arith.constant 128 : index
    %52 = vector.load %arg1[%c0_48, %c1_49, %c0_50, %c128_51] : memref<1x17x17x512xbf16, #tpu.memory_space<vmem>>, vector<1x16x16x128xbf16>
    %53 = vector.shape_cast %52 : vector<1x16x16x128xbf16> to vector<16x16x128xbf16>
    %54 = vector.shape_cast %53 : vector<16x16x128xbf16> to vector<256x128xbf16>
    %c7 = arith.constant 7 : index
    %c0_52 = arith.constant 0 : index
    %c0_53 = arith.constant 0 : index
    %55 = vector.load %arg2[%c7, %c0_52, %c0_53] : memref<9x128x128xbf16, #tpu.memory_space<vmem>>, vector<1x128x128xbf16>
    %56 = vector.shape_cast %55 : vector<1x128x128xbf16> to vector<128x128xbf16>
    %cst_54 = arith.constant dense<0.000000e+00> : vector<256x128xf32>
    %57 = tpu.matmul %54, %56, %cst_54 {dimension_numbers = #tpu.dot_dimension_numbers<[1], [0], [0], [1], [0, 0, 1, 1], [], []>} : vector<256x128xbf16>, vector<128x128xbf16>, vector<256x128xf32> -> vector<256x128xf32>
    %58 = arith.addf %51, %57 : vector<256x128xf32>
    %c0_55 = arith.constant 0 : index
    %c1_56 = arith.constant 1 : index
    %c1_57 = arith.constant 1 : index
    %c0_58 = arith.constant 0 : index
    %59 = vector.load %arg1[%c0_55, %c1_56, %c1_57, %c0_58] : memref<1x17x17x512xbf16, #tpu.memory_space<vmem>>, vector<1x16x16x128xbf16>
    %60 = vector.shape_cast %59 : vector<1x16x16x128xbf16> to vector<16x16x128xbf16>
    %61 = vector.shape_cast %60 : vector<16x16x128xbf16> to vector<256x128xbf16>
    %c8 = arith.constant 8 : index
    %c0_59 = arith.constant 0 : index
    %c0_60 = arith.constant 0 : index
    %62 = vector.load %arg2[%c8, %c0_59, %c0_60] : memref<9x128x128xbf16, #tpu.memory_space<vmem>>, vector<1x128x128xbf16>
    %63 = vector.shape_cast %62 : vector<1x128x128xbf16> to vector<128x128xbf16>
    %cst_61 = arith.constant dense<0.000000e+00> : vector<256x128xf32>
    %64 = tpu.matmul %61, %63, %cst_61 {dimension_numbers = #tpu.dot_dimension_numbers<[1], [0], [0], [1], [0, 0, 1, 1], [], []>} : vector<256x128xbf16>, vector<128x128xbf16>, vector<256x128xf32> -> vector<256x128xf32>
    %65 = arith.addf %58, %64 : vector<256x128xf32>
    %66 = vector.shape_cast %65 : vector<256x128xf32> to vector<16x16x128xf32>
    %67 = arith.truncf %66 : vector<16x16x128xf32> to vector<16x16x128xbf16>
    %c0_62 = arith.constant 0 : index
    %c0_63 = arith.constant 0 : index
    %c0_64 = arith.constant 0 : index
    %c0_65 = arith.constant 0 : index
    %68 = vector.load %arg3[%c0_62, %c0_63, %c0_64, %c0_65] : memref<1x16x16x128xbf16, #tpu.memory_space<vmem>>, vector<1x16x16x128xbf16>
    %69 = vector.shape_cast %68 : vector<1x16x16x128xbf16> to vector<16x16x128xbf16>
    %70 = vector.shape_cast %67 : vector<16x16x128xbf16> to vector<1x16x16x128xbf16>
    tpu.vector_store %arg3[%c0_62, %c0_63, %c0_64, %c0_65], %70 {strides = array<i32>} : memref<1x16x16x128xbf16, #tpu.memory_space<vmem>>, vector<1x16x16x128xbf16>,
    %cst_66 = arith.constant dense<0.000000e+00> : vector<128xf32>
    %71 = vector.multi_reduction <add>, %65, %cst_66 [0] : vector<256x128xf32> to vector<128xf32>
    %72 = vector.shape_cast %71 : vector<128xf32> to vector<1x128xf32>
    %73 = arith.addf %0, %72 : vector<1x128xf32>
    %74 = arith.mulf %65, %65 : vector<256x128xf32>
    %cst_67 = arith.constant dense<0.000000e+00> : vector<128xf32>
    %75 = vector.multi_reduction <add>, %74, %cst_67 [0] : vector<256x128xf32> to vector<128xf32>
    %76 = vector.shape_cast %75 : vector<128xf32> to vector<1x128xf32>
    %77 = arith.addf %1, %76 : vector<1x128xf32>
    %c0_68 = arith.constant 0 : index
    %c0_69 = arith.constant 0 : index
    %c0_70 = arith.constant 0 : index
    %78 = vector.load %arg4[%c0_68, %c0_69, %c0_70] : memref<1x1x128xf32, #tpu.memory_space<vmem>>, vector<1x1x128xf32>
    %79 = vector.shape_cast %78 : vector<1x1x128xf32> to vector<1x128xf32>
    %80 = vector.shape_cast %73 : vector<1x128xf32> to vector<1x1x128xf32>
    tpu.vector_store %arg4[%c0_68, %c0_69, %c0_70], %80 {strides = array<i32>} : memref<1x1x128xf32, #tpu.memory_space<vmem>>, vector<1x1x128xf32>,
    %c0_71 = arith.constant 0 : index
    %c0_72 = arith.constant 0 : index
    %c0_73 = arith.constant 0 : index
    %81 = vector.load %arg5[%c0_71, %c0_72, %c0_73] : memref<1x1x128xf32, #tpu.memory_space<vmem>>, vector<1x1x128xf32>
    %82 = vector.shape_cast %81 : vector<1x1x128xf32> to vector<1x128xf32>
    %83 = vector.shape_cast %77 : vector<1x128xf32> to vector<1x1x128xf32>
    tpu.vector_store %arg5[%c0_71, %c0_72, %c0_73], %83 {strides = array<i32>} : memref<1x1x128xf32, #tpu.memory_space<vmem>>, vector<1x1x128xf32>,
    return
  }
  func.func @transform_0(%arg0: i32) -> (i32, i32, i32, i32) {
    %c0_i32 = arith.constant 0 : i32
    %c0_i32_0 = arith.constant 0 : i32
    %c0_i32_1 = arith.constant 0 : i32
    %c0_i32_2 = arith.constant 0 : i32
    return %arg0, %c0_i32, %c0_i32_0, %c0_i32_1 : i32, i32, i32, i32
  }
  func.func @transform_1(%arg0: i32) -> (i32, i32, i32) {
    %c0_i32 = arith.constant 0 : i32
    %c0_i32_0 = arith.constant 0 : i32
    %c0_i32_1 = arith.constant 0 : i32
    %c0_i32_2 = arith.constant 0 : i32
    return %c0_i32, %c0_i32_0, %c0_i32_1 : i32, i32, i32
  }
  func.func @transform_2(%arg0: i32) -> (i32, i32, i32, i32) {
    %c0_i32 = arith.constant 0 : i32
    %c0_i32_0 = arith.constant 0 : i32
    %c0_i32_1 = arith.constant 0 : i32
    %c0_i32_2 = arith.constant 0 : i32
    return %arg0, %c0_i32, %c0_i32_0, %c0_i32_1 : i32, i32, i32, i32
  }
  func.func @transform_3(%arg0: i32) -> (i32, i32, i32) {
    %c0_i32 = arith.constant 0 : i32
    %c0_i32_0 = arith.constant 0 : i32
    %c0_i32_1 = arith.constant 0 : i32
    return %arg0, %c0_i32, %c0_i32_0 : i32, i32, i32
  }
  func.func @transform_4(%arg0: i32) -> (i32, i32, i32) {
    %c0_i32 = arith.constant 0 : i32
    %c0_i32_0 = arith.constant 0 : i32
    %c0_i32_1 = arith.constant 0 : i32
    return %arg0, %c0_i32, %c0_i32_0 : i32, i32, i32
  }
}

</mosaic_0001>

<bundles_post_ra>
// kernel: tpu_custom_call.1
= control target key start
LH: loop header
LB: loop body
LE: loop exit
PB: predicated region body
PF: predicated region fallthrough
CT: control target
= control target key end

     0   :  { %10 = vsyncpa [#allocation3], 0  ;;  %s8131_s0 = inlined_call_operand.vmem [shape: bf16[2,17,17,512], index: 0, kind: input, shape index: {}]   ;;  %s8132_s1 = inlined_call_operand.vmem [shape: bf16[9,128,128], index: 1, kind: input, shape index: {}]   ;;  %s8133_s2 = inlined_call_operand.hbm [shape: bf16[2,16,16,128], index: 2, kind: output, shape index: {0}]   ;;  %s8134_s3 = inlined_call_operand.hbm [shape: f32[2,1,128], index: 3, kind: output, shape index: {1}]   ;;  %s8135_s4 = inlined_call_operand.hbm [shape: f32[2,1,128], index: 4, kind: output, shape index: {2}]  }
   0x1   :  { %12 = vsyncpa [#allocation3 + $0x1], 0 }
   0x2   :  { %13 = vsyncpa [#allocation5], 0 }
   0x3   :  { %15 = vsyncpa [#allocation5 + $0x1], 0  ;;  %s6824_s15 = smov 0   ;;  %s6826_s16 = smov 0  }
   0x4   :  { %s6828_s17 = smov 0   ;;  %s6830_s18 = smov 0  }
   0x5 LB: > { %s6845_s19 = sadd.s32 4294967295, %s6792_s18   ;;  %s5163_s20 = sadd.s32 4294967294, %s6792_s18   ;;  %s6792_s18 = sphi %s6830_s18, %s8149_s18   ;;  %s6788_s17 = sphi %s6828_s17, %s8148_s17   ;;  %s6784_s16 = sphi %s6826_s16, %s8147_s16   ;;  %s6780_s15 = sphi %s6824_s15, %s8146_s15  }
   0x6   : > { %s6849_s21 = sadd.s32 1, %s6792_s18   ;;  %s75_s22 = sadd.s32 1, %s6788_s17 }
   0x7   : > { %s72_s23 = ssub.s32 %s6792_s18, %s6849_s21  ;;  %p85_p0 = scmp.ne.s32.totalorder %s6788_s17, %s6784_s16 }
   0x8   : > { %p73_p1 = scmp.eq.s32.totalorder %s72_s23, 0  ;;  %p86_p2 = scmp.eq.s32.totalorder %s6845_s19, 1 }
   0x9   : > { %p91_p3 = scmp.ne.s32.totalorder %s6784_s16, %s6780_s15  ;;  %p92_p4 = scmp.eq.s32.totalorder %s5163_s20, 1 }
   0xa   : > { %s6862_s24 = scalar_select %p73_p1, %s6788_s17, %s75_s22  }
   0xb   : > { %p6864_p5 = por %p86_p2, %p85_p0  ;;  %p6868_p6 = por %p92_p4, %p91_p3 }
   0xc   : > { %p5166_p7 = scmp.ge.s32.totalorder %s6792_s18, 1  ;;  %p173_p8 = scmp.lt.s32.totalorder %s6792_s18, 3 }
   0xe   : > { %p174_p9 = pnand %p5166_p7, %p173_p8 }
  0x10   : > { %177 = sbr.rel (%p174_p9) target bundleno = 619 (0x26b), region = 28 }
  0x15   : > { %v6508_v0 = vld [vmem:[%s8132_s1 + $0x78] sm:$0xff]   ;;  %p207_p10 = scmp.lt.s32.totalorder %s6845_s19, 1  ;;  %v6509_v1 = vld [vmem:[%s8132_s1 + $0x70] sm:$0xff]   ;;  %v6510_v2 = vld [vmem:[%s8132_s1 + $0x68] sm:$0xff]   ;;  %vm968_vm0 = vsmask.f32 3328 }
  0x16   : > { %6008 = vmatprep.subr.bf16.mxu0 %v6508_v0  ;;  %6440 = vmatprep.subr.bf16.mxu1 %v6508_v0  ;;  %v6511_v3 = vld [vmem:[%s8132_s1 + $0x60] sm:$0xff]   ;;  %v6512_v6 = vld [vmem:[%s8132_s1 + $0x58] sm:$0xff]   ;;  %v6513_v7 = vld [vmem:[%s8132_s1 + $0x50] sm:$0xff]   ;;  %vm969_vm1 = vsmask.f32 7440  ;;  %s5696_s27 = sshll.u32 %s6845_s19, 11 }
  0x17   : > { %s208_s5 = scalar_select %p207_p10, %s6845_s19, 1  ;;  %6009 = vmatpush3.bf16.msra.mxu0 %v6508_v0  ;;  %6448 = vmatpush3.bf16.msra.mxu1 %v6508_v0  ;;  %v6514_v8 = vld [vmem:[%s8132_s1 + $0x48] sm:$0xff]   ;;  %v6515_v9 = vld [vmem:[%s8132_s1 + $0x40] sm:$0xff]   ;;  %v6520_v10 = vld [vmem:[%s8132_s1 + $0x38] sm:$0xff]  }
  0x18   : > { %6010 = vmatprep.subr.bf16.mxu0 %v6509_v1  ;;  %6441 = vmatprep.subr.bf16.mxu1 %v6509_v1  ;;  %v6521_v12 = vld [vmem:[%s8132_s1 + $0xb8] sm:$0xff]   ;;  %v6522_v14 = vld [vmem:[%s8132_s1 + $0x30] sm:$0xff]   ;;  %v6528_v18 = vld [vmem:[%s8132_s1 + $0x28] sm:$0xff]  }
  0x19   : > { %s6456_s8 = smul.u32 816, %s208_s5  ;;  %v6523_v15 = vld [vmem:[%s8132_s1 + $0xb0] sm:$0xff]   ;;  %v6529_v20 = vld [vmem:[%s8132_s1 + $0xa8] sm:$0xff]   ;;  %v6530_v22 = vld [vmem:[%s8132_s1 + $0x20] sm:$0xff]   ;;  %s8017_s5 = scalar_lea.hbm %s8133_s2, %s5696_s27 }
  0x1a   : > { %v6531_v23 = vld [vmem:[%s8132_s1 + $0xa0] sm:$0xff]   ;;  %v6536_v29 = vld [vmem:[%s8132_s1 + $0x18] sm:$0xff]   ;;  %v6538_v43 = vld [vmem:[%s8132_s1 + $0x10] sm:$0xff]  }
  0x1b   : > { %s6888_s11 = scalar_lea.vmem %s8131_s0, %s6456_s8  ;;  %6011 = vmatpush3.bf16.msra.mxu0 %v6509_v1  ;;  %6449 = vmatpush3.bf16.msra.mxu1 %v6509_v1  ;;  %v6537_v36 = vld [vmem:[%s8132_s1 + $0x98] sm:$0xff]   ;;  %v6539_v49 = vld [vmem:[%s8132_s1 + $0x90] sm:$0xff]   ;;  %vm6966_vm2 = vmor %vm968_vm0, %vm969_vm1  ;;  %s6794_s8 = smov [#allocation2]  }
  0x1c   : > { %6012 = vmatprep.subr.bf16.mxu0 %v6510_v2  ;;  %6442 = vmatprep.subr.bf16.mxu1 %v6510_v2  ;;  %v6516_v4 = vld [vmem:[%s6888_s11 + $0x4] ss:$16 sps:$4 sm:$0xff]   ;;  %v920_v26 = vld [vmem:[%s6888_s11] sm:$0xf]  ;;  %v921_v27 = vld [vmem:[%s6888_s11 + $0x10] sm:$0xf] }
  0x1d   : > { %v6517_v5 = vld [vmem:[%s6888_s11 + $0x184] ss:$16 sps:$4 sm:$0xff]   ;;  %6024 = vmatprep.mubr.bf16.mxu0 %v6516_v4  ;;  %v922_v28 = vld [vmem:[%s6888_s11 + $0x20] sm:$0x1]  ;;  %v972_v30 = vshrl.u32 %v920_v26, 16  ;;  %v975_v31 = vshll.u32 %v920_v26, 16 }
  0x1e   : > { %6040 = vmatprep.mubr.bf16.mxu1 %v6517_v5  ;;  %v6518_v11 = vld [vmem:[%s6888_s11 + $0x34] ss:$16 sps:$4 sm:$0xff]   ;;  %v981_v32 = vshll.u32 %v921_v27, 16  ;;  %v985_v33 = vshrl.u32 %v921_v27, 16  ;;  %v991_v39 = vshll.u32 %v922_v28, 16  ;;  %v6544_v1 = vld [vmem:[%s8132_s1 + $0x8] sm:$0xff]  }
  0x1f   : > { %6013 = vmatpush3.bf16.msra.mxu0 %v6510_v2  ;;  %6450 = vmatpush3.bf16.msra.mxu1 %v6510_v2  ;;  %v6519_v13 = vld [vmem:[%s6888_s11 + $0x1b4] ss:$16 sps:$4 sm:$0xff]   ;;  %v974_v37 = vrot.slane %v972_v30, 4  ;;  %v977_v38 = vrot.slane %v975_v31, 5  ;;  %v923_v42 = vld [vmem:[%s6888_s11 + $0x30] sm:$0xf] }
  0x20   : > { %6014 = vmatprep.subr.bf16.mxu0 %v6511_v3  ;;  %6443 = vmatprep.subr.bf16.mxu1 %v6511_v3  ;;  %v6524_v16 = vld [vmem:[%s6888_s11 + $0x64] ss:$16 sps:$4 sm:$0xff]   ;;  %v6950_v40 = vrot.slane %v981_v32, 5  ;;  %v987_v41 = vrot.slane %v985_v33, 4  ;;  %v924_v45 = vld [vmem:[%s6888_s11 + $0x40] sm:$0xf] }
  0x21   : > { %v6525_v17 = vld [vmem:[%s6888_s11 + $0x1e4] ss:$16 sps:$4 sm:$0xff]   ;;  %v978_v44 = vor.u32 %v977_v38, %v974_v37  ;;  %v925_v46 = vld [vmem:[%s6888_s11 + $0x50] sm:$0x1]  ;;  %v996_v47 = vshrl.u32 %v923_v42, 16  ;;  %v999_v48 = vshll.u32 %v923_v42, 16 }
  0x22   : > { %v6526_v19 = vld [vmem:[%s6888_s11 + $0x94] ss:$16 sps:$4 sm:$0xff]   ;;  %v988_v52 = vor.u32 %v987_v41, %v6950_v40  ;;  %v1005_v53 = vshll.u32 %v924_v45, 16  ;;  %v1009_v54 = vshrl.u32 %v924_v45, 16  ;;  %v1015_v55 = vshll.u32 %v925_v46, 16  ;;  %s6680_s9 = sshll.u32 %s6794_s8, 4  ;;  %s6681_s9 = int_to_ptr.vmem [resolvable:$false] %s6680_s9 }
  0x23   : > { %6015 = vmatpush3.bf16.msra.mxu0 %v6511_v3  ;;  %6451 = vmatpush3.bf16.msra.mxu1 %v6511_v3  ;;  %v6527_v21 = vld [vmem:[%s6888_s11 + $0x214] ss:$16 sps:$4 sm:$0xff]   ;;  %v979_v57 = vrot.slane %v978_v44, 4  ;;  %v993_v58 = vrot.slane %v991_v39, 5  ;;  %v998_v59 = vrot.slane %v996_v47, 4  ;;  %v1001_v60 = vrot.slane %v999_v48, 5 }
  0x24   : > { %6016 = vmatprep.subr.bf16.mxu0 %v6512_v6  ;;  %6444 = vmatprep.subr.bf16.mxu1 %v6512_v6  ;;  %v6532_v24 = vld [vmem:[%s6888_s11 + $0xc4] ss:$16 sps:$4 sm:$0xff]   ;;  %v989_v61 = vrot.slane %v988_v52, 4  ;;  %v6970_v62 = vrot.slane %v1005_v53, 5  ;;  %v1011_v63 = vrot.slane %v1009_v54, 4  ;;  %v1017_v4 = vrot.slane %v1015_v55, 5 }
  0x25   : > { %v6533_v25 = vld [vmem:[%s6888_s11 + $0x244] ss:$16 sps:$4 sm:$0xff]   ;;  %v1002_v0 = vor.u32 %v1001_v60, %v998_v59  ;;  %v984_v2 = vsel %vm6966_vm2, %v979_v57, %v6950_v40  ;;  %v926_v5 = vld [vmem:[%s6888_s11 + $0x60] sm:$0xf]  ;;  %v929_v28 = vld [vmem:[%s6888_s11 + $0x90] sm:$0xf] }
  0x26   : > { %v6534_v34 = vld [vmem:[%s6888_s11 + $0xf4] ss:$16 sps:$4 sm:$0xff]   ;;  %v1012_v3 = vor.u32 %v1011_v63, %v6970_v62  ;;  %v930_v31 = vld [vmem:[%s6888_s11 + $0xa0] sm:$0xf]  ;;  %v931_v32 = vld [vmem:[%s6888_s11 + $0xb0] sm:$0x1] }
  0x27   : > { %6017 = vmatpush3.bf16.msra.mxu0 %v6512_v6  ;;  %6452 = vmatpush3.bf16.msra.mxu1 %v6512_v6  ;;  %v6535_v35 = vld [vmem:[%s6888_s11 + $0x274] ss:$16 sps:$4 sm:$0xff]   ;;  %v927_v6 = vld [vmem:[%s6888_s11 + $0x70] sm:$0xf]  ;;  %v1044_v33 = vshrl.u32 %v929_v28, 16  ;;  %v1053_v37 = vshll.u32 %v930_v31, 16 }
  0x28   : > { %6018 = vmatprep.subr.bf16.mxu0 %v6513_v7  ;;  %6445 = vmatprep.subr.bf16.mxu1 %v6513_v7  ;;  %v6540_v50 = vld [vmem:[%s6888_s11 + $0x124] ss:$16 sps:$4 sm:$0xff]   ;;  %v1057_v38 = vshrl.u32 %v930_v31, 16  ;;  %v6550_v39 = vld [vmem:[%s8132_s1 + $0xf8] sm:$0xff]   ;;  %v932_v54 = vld [vmem:[%s6888_s11 + $0xc0] sm:$0xf] }
  0x29   : > { %v6541_v51 = vld [vmem:[%s6888_s11 + $0x2a4] ss:$16 sps:$4 sm:$0xff]   ;;  %v1046_v41 = vrot.slane %v1044_v33, 4  ;;  %v6551_v44 = vld [vmem:[%s8132_s1 + $0x138] sm:$0xff]   ;;  %v7010_v46 = vrot.slane %v1053_v37, 5  ;;  %v1068_v60 = vshrl.u32 %v932_v54, 16 }
  0x2a   : > { %v1059_v47 = vrot.slane %v1057_v38, 4  ;;  %v933_v55 = vld [vmem:[%s6888_s11 + $0xd0] sm:$0xf]  ;;  %v934_v59 = vld [vmem:[%s6888_s11 + $0xe0] sm:$0x1]  ;;  %s6682_s10 = scalar_lea.vmem %s6681_s9, 4096 }
  0x2b   : > { %6019 = vmatpush3.bf16.msra.mxu0 %v6513_v7  ;;  %6453 = vmatpush3.bf16.msra.mxu1 %v6513_v7  ;;  %v6542_v7 = vld [vmem:[%s6888_s11 + $0x154] ss:$16 sps:$4 sm:$0xff]  }
  0x2c   : > { %6020 = vmatprep.subr.bf16.mxu0 %v6514_v8  ;;  %6446 = vmatprep.subr.bf16.mxu1 %v6514_v8  ;;  %v1060_v53 = vor.u32 %v1059_v47, %v7010_v46  ;;  %v6554_v63 = vld [vmem:[%s8132_s1 + $0xf0] sm:$0xff]   ;;  %v6563_v47 = vld [vmem:[%s8132_s1 + $0x120] sm:$0xff]  }
  0x2f   : > { %6021 = vmatpush3.bf16.msra.mxu0 %v6514_v8  ;;  %6454 = vmatpush3.bf16.msra.mxu1 %v6514_v8  ;;  %v6543_v8 = vld [vmem:[%s6888_s11 + $0x2d4] ss:$16 sps:$4 sm:$0xff]  }
  0x30   : > { %6022 = vmatprep.subr.bf16.mxu0 %v6515_v9  ;;  %6447 = vmatprep.subr.bf16.mxu1 %v6515_v9 }
  0x33   : > { %6023 = vmatpush3.bf16.msra.mxu0 %v6515_v9  ;;  %6455 = vmatpush3.bf16.msra.mxu1 %v6515_v9  ;;  %v6545_v9 = vld [vmem:[%s8132_s1 + $0x88] sm:$0xff]  }
  0x34   : > { %6056 = vmatprep.subr.bf16.mxu1 %v6520_v10  ;;  %6104 = vmatprep.subr.bf16.mxu0 %v6521_v12 }
  0x36   : > { %6025 = vmatmul.mubr.bf16.vlgmr.msra.gmra.mxu0 %v6518_v11  ;;  %6041 = vmatmul.mubr.bf16.vlgmr.msra.gmra.mxu1 %v6519_v13  ;;  %v1003_v11 = vrot.slane %v1002_v0, 4  ;;  %v1020_v13 = vshrl.u32 %v926_v5, 16  ;;  %v1077_v0 = vshll.u32 %v933_v55, 16 }
  0x37   : > { %6057 = vmatpush3.bf16.msra.mxu1 %v6520_v10  ;;  %6105 = vmatpush3.bf16.msra.mxu0 %v6521_v12  ;;  %v994_v10 = vsel %vm6966_vm2, %v989_v61, %v993_v58  ;;  %v928_v12 = vld [vmem:[%s6888_s11 + $0x80] sm:$0x1]  ;;  %v1071_v61 = vshll.u32 %v932_v54, 16 }
  0x38   : > { %6058 = vmatprep.subr.bf16.mxu1 %v6522_v14  ;;  %6106 = vmatprep.subr.bf16.mxu0 %v6523_v15 }
  0x39   : > { %6028 = vmatprep.mubr.bf16.mxu0 %v6524_v16  ;;  %6044 = vmatprep.mubr.bf16.mxu1 %v6525_v17  ;;  %v1029_v16 = vshll.u32 %v927_v6, 16  ;;  %v1033_v17 = vshrl.u32 %v927_v6, 16  ;;  %v1073_v6 = vrot.slane %v1071_v61, 5  ;;  %v6566_v61 = vld [vmem:[%s8132_s1 + $0xd8] sm:$0xff]  }
  0x3b   : > { %6059 = vmatpush3.bf16.msra.mxu1 %v6522_v14  ;;  %6107 = vmatpush3.bf16.msra.mxu0 %v6523_v15  ;;  %v1023_v14 = vshll.u32 %v926_v5, 16  ;;  %v1013_v15 = vrot.slane %v1012_v3, 4  ;;  %v1031_v26 = vrot.slane %v1029_v16, 5  ;;  %v1035_v27 = vrot.slane %v1033_v17, 4  ;;  %v6552_v3 = vld [vmem:[%s6888_s11 + $0x60] ss:$16 sps:$4 sm:$0xff]  }
  0x3c   : > { %6060 = vmatprep.subr.bf16.mxu1 %v6528_v18  ;;  %6108 = vmatprep.subr.bf16.mxu0 %v6529_v20  ;;  %v1070_v5 = vrot.slane %v1068_v60, 4  ;;  %v937_v16 = vld [vmem:[%s6888_s11 + $0x110] sm:$0x1] }
  0x3d   : > { %v941_v60 = vld [vmem:[%s6888_s11 + $0x150] sm:$0xf] }
  0x3e   : > { %6029 = vmatmul.mubr.bf16.gmra.mxu0 %v6526_v19  ;;  %6045 = vmatmul.mubr.bf16.gmra.mxu1 %v6527_v21  ;;  %v6546_v19 = vld [vmem:[%s8132_s1] sm:$0xff]   ;;  %v1022_v21 = vrot.slane %v1020_v13, 4 }
  0x3f   : > { %6061 = vmatpush3.bf16.msra.mxu1 %v6528_v18  ;;  %6109 = vmatpush3.bf16.msra.mxu0 %v6529_v20  ;;  %v1039_v18 = vshll.u32 %v928_v12, 16  ;;  %v6547_v20 = vld [vmem:[%s8132_s1 + $0x80] sm:$0xff]   ;;  %v935_v12 = vld [vmem:[%s6888_s11 + $0xf0] sm:$0xf] }
  0x40   : > { %6062 = vmatprep.subr.bf16.mxu1 %v6530_v22  ;;  %6110 = vmatprep.subr.bf16.mxu0 %v6531_v23  ;;  %v1092_v17 = vshrl.u32 %v935_v12, 16 }
  0x41   : > { %6032 = vmatprep.mubr.bf16.mxu0 %v6532_v24  ;;  %6048 = vmatprep.mubr.bf16.mxu1 %v6533_v25  ;;  %v5249_v24 = vcombine.low %v984_v2, %v994_v10  ;;  %v1008_v25 = vsel %vm6966_vm2, %v1003_v11, %v6970_v62  ;;  %v1061_v62 = vrot.slane %v1060_v53, 4  ;;  %v1087_v2 = vshll.u32 %v934_v59, 16 }
  0x43   : > { %6063 = vmatpush3.bf16.msra.mxu1 %v6530_v22  ;;  %6111 = vmatpush3.bf16.msra.mxu0 %v6531_v23  ;;  %v1025_v22 = vrot.slane %v1023_v14, 5  ;;  %v6548_v23 = vld [vmem:[%s6888_s11] ss:$16 sps:$4 sm:$0xff]   ;;  %v1089_v11 = vrot.slane %v1087_v2, 5  ;;  %v1074_v14 = vor.u32 %v1073_v6, %v1070_v5  ;;  %v1140_v2 = vshrl.u32 %v941_v60, 16 }
  0x44   : > { %6064 = vmatprep.subr.bf16.mxu1 %v6536_v29  ;;  %6112 = vmatprep.subr.bf16.mxu0 %v6537_v36 }
  0x45   : > { %v1026_v30 = vor.u32 %v1025_v22, %v1022_v21  ;;  %v1111_v22 = vshll.u32 %v937_v16, 16 }
  0x46   : > { %6033 = vmatmul.mubr.bf16.gmra.mxu0 %v6534_v34  ;;  %6049 = vmatmul.mubr.bf16.gmra.mxu1 %v6535_v35  ;;  %v1047_v34 = vshll.u32 %v929_v28, 16  ;;  %v1036_v35 = vor.u32 %v1035_v27, %v1031_v26  ;;  %v6559_v28 = vld [vmem:[%s8132_s1 + $0x128] sm:$0xff]  }
  0x47   : > { %6065 = vmatpush3.bf16.msra.mxu1 %v6536_v29  ;;  %6113 = vmatpush3.bf16.msra.mxu0 %v6537_v36  ;;  %v1018_v29 = vsel %vm6966_vm2, %v1013_v15, %v1017_v4  ;;  %v1041_v36 = vrot.slane %v1039_v18, 5  ;;  %v1027_v40 = vrot.slane %v1026_v30, 4  ;;  %v936_v15 = vld [vmem:[%s6888_s11 + $0x100] sm:$0xf]  ;;  %v1095_v18 = vshll.u32 %v935_v12, 16 }
  0x48   : > { %6066 = vmatprep.subr.bf16.mxu1 %v6538_v43  ;;  %6114 = vmatprep.subr.bf16.mxu0 %v6539_v49  ;;  %v1049_v42 = vrot.slane %v1047_v34, 5  ;;  %v1037_v45 = vrot.slane %v1036_v35, 4  ;;  %v5250_v48 = vcombine.low %v1008_v25, %v1018_v29  ;;  %v1105_v21 = vshrl.u32 %v936_v15, 16  ;;  %v6556_v29 = vld [vmem:[%s6888_s11 + $0xc0] ss:$16 sps:$4 sm:$0xff]  }
  0x49   : > { %6036 = vmatprep.mubr.bf16.mxu0 %v6540_v50  ;;  %6052 = vmatprep.mubr.bf16.mxu1 %v6541_v51  ;;  %v6549_v50 = vld [vmem:[%s6888_s11 + $0x30] ss:$16 sps:$4 sm:$0xff]   ;;  %v1032_v51 = vsel %vm6966_vm2, %v1027_v40, %v1031_v26  ;;  %v1075_v25 = vrot.slane %v1074_v14, 4  ;;  %v1094_v26 = vrot.slane %v1092_v17, 4  ;;  %v1097_v27 = vrot.slane %v1095_v18, 5 }
  0x4a   : > { %v1042_v52 = vsel %vm6966_vm2, %v1037_v45, %v1041_v36  ;;  %v1113_v38 = vrot.slane %v1111_v22, 5  ;;  %v939_v40 = vld [vmem:[%s6888_s11 + $0x130] sm:$0xf]  ;;  %v1142_v12 = vrot.slane %v1140_v2, 4  ;;  %v944_v22 = vld [vmem:[%s6888_s11 + $0x180] sm:$0xf] }
  0x4b   : > { %6067 = vmatpush3.bf16.msra.mxu1 %v6538_v43  ;;  %6115 = vmatpush3.bf16.msra.mxu0 %v6539_v49  ;;  %v1063_v43 = vshll.u32 %v931_v32, 16  ;;  %v1050_v49 = vor.u32 %v1049_v42, %v1046_v41  ;;  %v5251_v4 = vcombine.low %v1032_v51, %v1042_v52  ;;  %v1107_v32 = vrot.slane %v1105_v21, 4  ;;  %v6562_v41 = vld [vmem:[%s8132_s1 + $0xe0] sm:$0xff]  }
  0x4c   : > { %6068 = vmatprep.subr.bf16.mxu1 %v6544_v1  ;;  %6116 = vmatprep.subr.bf16.mxu0 %v6545_v9  ;;  %v1098_v35 = vor.u32 %v1097_v27, %v1094_v26  ;;  %v946_v27 = vld [vmem:[%s6888_s11 + $0x1a0] sm:$0x1] }
  0x4d   : > { %v1051_v57 = vrot.slane %v1050_v49, 4  ;;  %v1065_v58 = vrot.slane %v1063_v43, 5  ;;  %v1125_v49 = vshll.u32 %v939_v40, 16 }
  0x4e   : > { %6037 = vmatmul.mubr.bf16.gmra.mxu0 %v6542_v7  ;;  %6053 = vmatmul.mubr.bf16.gmra.mxu1 %v6543_v8  ;;  %v6555_v8 = vld [vmem:[%s8132_s1 + $0x130] sm:$0xff]   ;;  %v1099_v43 = vrot.slane %v1098_v35, 4 }
  0x4f   : > { %6069 = vmatpush3.bf16.msra.mxu1 %v6544_v1  ;;  %6117 = vmatpush3.bf16.msra.mxu0 %v6545_v9  ;;  %v1081_v1 = vshrl.u32 %v933_v55, 16  ;;  %v1056_v7 = vsel %vm6966_vm2, %v1051_v57, %v7010_v46  ;;  %v1079_v9 = vrot.slane %v1077_v0, 5  ;;  %v1066_v13 = vsel %vm6966_vm2, %v1061_v62, %v1065_v58  ;;  %v6557_v62 = vld [vmem:[%s6888_s11 + $0xf0] ss:$16 sps:$4 sm:$0xff]  }
  0x50   : > { %6070 = vmatprep.subr.bf16.mxu1 %v6546_v19  ;;  %6118 = vmatprep.subr.bf16.mxu0 %v6547_v20  ;;  %v5252_v33 = vcombine.low %v1056_v7, %v1066_v13  ;;  %v1127_v57 = vrot.slane %v1125_v49, 5  ;;  %v942_v0 = vld [vmem:[%s6888_s11 + $0x160] sm:$0xf]  ;;  %v949_v49 = vld [vmem:[%s6888_s11 + $0x1d0] sm:$0x1] }
  0x51   : > { %6072 = vmatprep.mubr.bf16.mxu1 %v6548_v23  ;;  %6120 = vmatprep.mubr.bf16.mxu0 %v5249_v24  ;;  %v1083_v10 = vrot.slane %v1081_v1, 4  ;;  %v6558_v23 = vld [vmem:[%s8132_s1 + $0xe8] sm:$0xff]   ;;  %v6553_v24 = vld [vmem:[%s6888_s11 + $0x90] ss:$16 sps:$4 sm:$0xff]   ;;  %v1080_v34 = vsel %vm6966_vm2, %v1075_v25, %v1079_v9  ;;  %v1149_v6 = vshll.u32 %v942_v0, 16  ;;  %v1153_v7 = vshrl.u32 %v942_v0, 16 }
  0x52   : > { %v943_v1 = vld [vmem:[%s6888_s11 + $0x170] sm:$0x1] }
  0x53   : > { %6071 = vmatpush3.bf16.msra.mxu1 %v6546_v19  ;;  %6119 = vmatpush3.bf16.msra.mxu0 %v6547_v20  ;;  %v1084_v19 = vor.u32 %v1083_v10, %v1079_v9  ;;  %v1101_v20 = vshll.u32 %v936_v15, 16  ;;  %v6567_v9 = vld [vmem:[%s8132_s1 + $0x118] sm:$0xff]   ;;  %v1151_v15 = vrot.slane %v1149_v6, 5  ;;  %v1155_v16 = vrot.slane %v1153_v7, 4  ;;  %v6561_v35 = vld [vmem:[%s6888_s11 + $0x150] ss:$16 sps:$4 sm:$0xff]  }
  0x54   : > { %6152 = vmatprep.subr.bf16.mxu1 %v6550_v39  ;;  %6200 = vmatprep.subr.bf16.mxu0 %v6551_v44  ;;  %v950_v7 = vld [vmem:[%s6888_s11 + $0x1e0] sm:$0xf] }
  0x55   : > { %v1085_v30 = vrot.slane %v1084_v19, 4  ;;  %v1103_v31 = vrot.slane %v1101_v20, 5  ;;  %v1156_v20 = vor.u32 %v1155_v16, %v1151_v15 }
  0x56   : > { %6073 = vmatmul.mubr.bf16.vlgmr.msra.gmra.mxu1 %v6549_v50  ;;  %6121 = vmatmul.mubr.bf16.vlgmr.msra.gmra.mxu0 %v5250_v48  ;;  %v1129_v50 = vshrl.u32 %v939_v40, 16  ;;  %v6564_v40 = vld [vmem:[%s6888_s11 + $0x180] ss:$16 sps:$4 sm:$0xff]  }
  0x57   : > { %6153 = vmatpush3.bf16.msra.mxu1 %v6550_v39  ;;  %6201 = vmatpush3.bf16.msra.mxu0 %v6551_v44  ;;  %v1090_v36 = vsel %vm6966_vm2, %v1085_v30, %v1089_v11  ;;  %v1108_v37 = vor.u32 %v1107_v32, %v1103_v31  ;;  %v938_v39 = vld [vmem:[%s6888_s11 + $0x120] sm:$0xf]  ;;  %v1104_v52 = vsel %vm6966_vm2, %v1099_v43, %v1103_v31  ;;  %v6571_v30 = vld [vmem:[%s8132_s1 + $0x110] sm:$0xff]   ;;  %v1157_v31 = vrot.slane %v1156_v20, 4 }
  0x58   : > { %6076 = vmatprep.mubr.bf16.mxu1 %v6552_v3  ;;  %6124 = vmatprep.mubr.bf16.mxu0 %v5251_v4  ;;  %v5253_v42 = vcombine.low %v1080_v34, %v1090_v36  ;;  %v940_v44 = vld [vmem:[%s6888_s11 + $0x140] sm:$0x1]  ;;  %v1116_v45 = vshrl.u32 %v938_v39, 16  ;;  %v1119_v46 = vshll.u32 %v938_v39, 16  ;;  %v1131_v58 = vrot.slane %v1129_v50, 4 }
  0x59   : > { %6154 = vmatprep.subr.bf16.mxu1 %v6554_v63  ;;  %6202 = vmatprep.subr.bf16.mxu0 %v6555_v8  ;;  %v1109_v48 = vrot.slane %v1108_v37, 4  ;;  %v1135_v51 = vshll.u32 %v940_v44, 16  ;;  %v1143_v3 = vshll.u32 %v941_v60, 16  ;;  %v6560_v4 = vld [vmem:[%s6888_s11 + $0x120] ss:$16 sps:$4 sm:$0xff]   ;;  %v1183_v34 = vshll.u32 %v946_v27, 16 }
  0x5a   : > { %v1118_v53 = vrot.slane %v1116_v45, 4  ;;  %v1121_v54 = vrot.slane %v1119_v46, 5  ;;  %v1132_v5 = vor.u32 %v1131_v58, %v1127_v57  ;;  %v947_v44 = vld [vmem:[%s6888_s11 + $0x1b0] sm:$0xf]  ;;  %v6574_v45 = vld [vmem:[%s8132_s1 + $0xc8] sm:$0xff]  }
  0x5b   : > { %6155 = vmatpush3.bf16.msra.mxu1 %v6554_v63  ;;  %6203 = vmatpush3.bf16.msra.mxu0 %v6555_v8  ;;  %v1114_v55 = vsel %vm6966_vm2, %v1109_v48, %v1113_v38  ;;  %v1137_v59 = vrot.slane %v1135_v51, 5  ;;  %v1159_v8 = vshll.u32 %v943_v1, 16  ;;  %v1145_v13 = vrot.slane %v1143_v3, 5  ;;  %v948_v48 = vld [vmem:[%s6888_s11 + $0x1c0] sm:$0xf] }
  0x5c   : > { %6156 = vmatprep.subr.bf16.mxu1 %v6558_v23  ;;  %6204 = vmatprep.subr.bf16.mxu0 %v6559_v28  ;;  %v1122_v63 = vor.u32 %v1121_v54, %v1118_v53  ;;  %v5254_v10 = vcombine.low %v1104_v52, %v1114_v55  ;;  %v1133_v14 = vrot.slane %v1132_v5, 4  ;;  %v1185_v43 = vrot.slane %v1183_v34, 5  ;;  %v6579_v1 = vld [vmem:[%s8132_s1 + $0x100] sm:$0xff]  }
  0x5d   : > { %v1146_v18 = vor.u32 %v1145_v13, %v1142_v12  ;;  %v1161_v21 = vrot.slane %v1159_v8, 5  ;;  %v1188_v50 = vshrl.u32 %v947_v44, 16  ;;  %v1191_v51 = vshll.u32 %v947_v44, 16  ;;  %v951_v8 = vld [vmem:[%s6888_s11 + $0x1f0] sm:$0xf] }
  0x5e   : > { %6077 = vmatmul.mubr.bf16.gmra.mxu1 %v6553_v24  ;;  %6125 = vmatmul.mubr.bf16.gmra.mxu0 %v5252_v33  ;;  %v1123_v11 = vrot.slane %v1122_v63, 4  ;;  %v1138_v19 = vsel %vm6966_vm2, %v1133_v14, %v1137_v59  ;;  %v6570_v24 = vld [vmem:[%s8132_s1 + $0xd0] sm:$0xff]   ;;  %v1197_v53 = vshll.u32 %v948_v48, 16  ;;  %v1201_v54 = vshrl.u32 %v948_v48, 16  ;;  %v952_v12 = vld [vmem:[%s6888_s11 + $0x200] sm:$0x1] }
  0x5f   : > { %6080 = vmatprep.mubr.bf16.mxu1 %v6556_v29  ;;  %6128 = vmatprep.mubr.bf16.mxu0 %v5253_v42  ;;  %v1147_v26 = vrot.slane %v1146_v18, 4  ;;  %v1167_v29 = vshll.u32 %v944_v22, 16  ;;  %v1162_v39 = vsel %vm6966_vm2, %v1157_v31, %v1161_v21  ;;  %v1207_v55 = vshll.u32 %v949_v49, 16  ;;  %v6568_v21 = vld [vmem:[%s6888_s11 + $0x1e0] ss:$16 sps:$4 sm:$0xff]  }
  0x60   : > { %6157 = vmatpush3.bf16.msra.mxu1 %v6558_v23  ;;  %6205 = vmatpush3.bf16.msra.mxu0 %v6559_v28  ;;  %v1128_v17 = vsel %vm6966_vm2, %v1123_v11, %v1127_v57  ;;  %v945_v23 = vld [vmem:[%s6888_s11 + $0x190] sm:$0xf]  ;;  %v1164_v28 = vshrl.u32 %v944_v22, 16  ;;  %v6575_v57 = vld [vmem:[%s8132_s1 + $0x108] sm:$0xff]   ;;  %v1190_v59 = vrot.slane %v1188_v50, 4  ;;  %v1193_v60 = vrot.slane %v1191_v51, 5 }
  0x61   : > { %6158 = vmatprep.subr.bf16.mxu1 %v6562_v41  ;;  %6206 = vmatprep.subr.bf16.mxu0 %v6563_v47  ;;  %v5255_v25 = vcombine.low %v1128_v17, %v1138_v19  ;;  %v1173_v32 = vshll.u32 %v945_v23, 16  ;;  %v1177_v33 = vshrl.u32 %v945_v23, 16  ;;  %v1152_v36 = vsel %vm6966_vm2, %v1147_v26, %v1151_v15  ;;  %v7117_v15 = vld [vmem:[%s8132_s1 + $0x178] sm:$0xff]   ;;  %v6569_v48 = vld [vmem:[%s6888_s11 + $0x210] ss:$16 sps:$4 sm:$0xff]  }
  0x62   : > { %v1166_v37 = vrot.slane %v1164_v28, 4  ;;  %v1169_v38 = vrot.slane %v1167_v29, 5  ;;  %v5256_v46 = vcombine.low %v1152_v36, %v1162_v39  ;;  %v1199_v63 = vrot.slane %v1197_v53, 5  ;;  %v953_v28 = vld [vmem:[%s6888_s11 + $0x210] sm:$0xf]  ;;  %v7128_v29 = vld [vmem:[%s8132_s1 + $0x1b8] sm:$0xff]  }
  0x63   : > { %v1179_v42 = vrot.slane %v1177_v33, 4  ;;  %v1203_v0 = vrot.slane %v1201_v54, 4  ;;  %v1194_v3 = vor.u32 %v1193_v60, %v1190_v59  ;;  %v1209_v6 = vrot.slane %v1207_v55, 5  ;;  %v955_v33 = vld [vmem:[%s6888_s11 + $0x230] sm:$0x1] }
  0x64   : > { %6159 = vmatpush3.bf16.msra.mxu1 %v6562_v41  ;;  %6207 = vmatpush3.bf16.msra.mxu0 %v6563_v47  ;;  %v1175_v41 = vrot.slane %v1173_v32, 5  ;;  %v1170_v47 = vor.u32 %v1169_v38, %v1166_v37  ;;  %v1212_v13 = vshrl.u32 %v950_v7, 16  ;;  %v1215_v14 = vshll.u32 %v950_v7, 16  ;;  %v954_v32 = vld [vmem:[%s6888_s11 + $0x220] sm:$0xf] }
  0x65   : > { %6160 = vmatprep.subr.bf16.mxu1 %v6566_v61  ;;  %6208 = vmatprep.subr.bf16.mxu0 %v6567_v9  ;;  %v1204_v5 = vor.u32 %v1203_v0, %v1199_v63  ;;  %v1195_v11 = vrot.slane %v1194_v3, 4  ;;  %v1221_v17 = vshll.u32 %v951_v8, 16  ;;  %v1225_v18 = vshrl.u32 %v951_v8, 16  ;;  %v956_v53 = vld [vmem:[%s6888_s11 + $0x240] sm:$0xf] }
  0x66   : > { %6081 = vmatmul.mubr.bf16.gmra.mxu1 %v6557_v62  ;;  %6129 = vmatmul.mubr.bf16.gmra.mxu0 %v5254_v10  ;;  %v1180_v52 = vor.u32 %v1179_v42, %v1175_v41  ;;  %v1171_v58 = vrot.slane %v1170_v47, 4  ;;  %v6565_v10 = vld [vmem:[%s6888_s11 + $0x1b0] ss:$16 sps:$4 sm:$0xff]   ;;  %v1231_v19 = vshll.u32 %v952_v12, 16  ;;  %v1214_v22 = vrot.slane %v1212_v13, 4 }
  0x67   : > { %6084 = vmatprep.mubr.bf16.mxu1 %v6560_v4  ;;  %6132 = vmatprep.mubr.bf16.mxu0 %v5255_v25  ;;  %v1205_v16 = vrot.slane %v1204_v5, 4  ;;  %v1200_v20 = vsel %vm6966_vm2, %v1195_v11, %v1199_v63  ;;  %v1217_v23 = vrot.slane %v1215_v14, 5  ;;  %v1223_v25 = vrot.slane %v1221_v17, 5  ;;  %v957_v54 = vld [vmem:[%s6888_s11 + $0x250] sm:$0xf] }
  0x68   : > { %6161 = vmatpush3.bf16.msra.mxu1 %v6566_v61  ;;  %6209 = vmatpush3.bf16.msra.mxu0 %v6567_v9  ;;  %v6578_v61 = vld [vmem:[%s8132_s1 + $0xc0] sm:$0xff]   ;;  %v1181_v62 = vrot.slane %v1180_v52, 4  ;;  %v1176_v2 = vsel %vm6966_vm2, %v1171_v58, %v1175_v41  ;;  %v1227_v26 = vrot.slane %v1225_v18, 4  ;;  %v1233_v27 = vrot.slane %v1231_v19, 5  ;;  %v959_v8 = vld [vmem:[%s6888_s11 + $0x270] sm:$0xf] }
  0x69   : > { %6162 = vmatprep.subr.bf16.mxu1 %v6570_v24  ;;  %6210 = vmatprep.subr.bf16.mxu0 %v6571_v30  ;;  %v1218_v31 = vor.u32 %v1217_v23, %v1214_v22  ;;  %v1236_v34 = vshrl.u32 %v953_v28, 16  ;;  %v1245_v37 = vshll.u32 %v954_v32, 16  ;;  %v1249_v38 = vshrl.u32 %v954_v32, 16  ;;  %v6572_v52 = vld [vmem:[%s6888_s11 + $0x240] ss:$16 sps:$4 sm:$0xff]  }
  0x6a   : > { %v1186_v4 = vsel %vm6966_vm2, %v1181_v62, %v1185_v43  ;;  %v1228_v36 = vor.u32 %v1227_v26, %v1223_v25  ;;  %v1255_v39 = vshll.u32 %v955_v33, 16  ;;  %v958_v58 = vld [vmem:[%s6888_s11 + $0x260] sm:$0x1]  ;;  %v1260_v59 = vshrl.u32 %v956_v53, 16  ;;  %v961_v12 = vld [vmem:[%s6888_s11 + $0x290] sm:$0x1] }
  0x6b   : > { %v5257_v9 = vcombine.low %v1176_v2, %v1186_v4  ;;  %v1238_v41 = vrot.slane %v1236_v34, 4  ;;  %v1247_v44 = vrot.slane %v1245_v37, 5  ;;  %v1263_v60 = vshll.u32 %v956_v53, 16  ;;  %v960_v11 = vld [vmem:[%s6888_s11 + $0x280] sm:$0xf] }
  0x6c   : > { %6163 = vmatpush3.bf16.msra.mxu1 %v6570_v24  ;;  %6211 = vmatpush3.bf16.msra.mxu0 %v6571_v30  ;;  %v1210_v24 = vsel %vm6966_vm2, %v1205_v16, %v1209_v6  ;;  %v1229_v43 = vrot.slane %v1228_v36, 4  ;;  %v1269_v62 = vshll.u32 %v957_v54, 16  ;;  %v1273_v63 = vshrl.u32 %v957_v54, 16  ;;  %v6576_v33 = vld [vmem:[%s6888_s11 + $0x2a0] ss:$16 sps:$4 sm:$0xff]  }
  0x6d   : > { %6164 = vmatprep.subr.bf16.mxu1 %v6574_v45  ;;  %6212 = vmatprep.subr.bf16.mxu0 %v6575_v57  ;;  %v5258_v30 = vcombine.low %v1200_v20, %v1210_v24  ;;  %v1279_v0 = vshll.u32 %v958_v58, 16  ;;  %v1262_v2 = vrot.slane %v1260_v59, 4  ;;  %v1265_v3 = vrot.slane %v1263_v60, 5  ;;  %v962_v34 = vld [vmem:[%s6888_s11 + $0x2a0] sm:$0xf] }
  0x6e   : > { %6085 = vmatmul.mubr.bf16.gmra.mxu1 %v6561_v35  ;;  %6133 = vmatmul.mubr.bf16.gmra.mxu0 %v5256_v46  ;;  %v1239_v35 = vshll.u32 %v953_v28, 16  ;;  %v1257_v46 = vrot.slane %v1255_v39, 5  ;;  %v1234_v50 = vsel %vm6966_vm2, %v1229_v43, %v1233_v27  ;;  %v1271_v5 = vrot.slane %v1269_v62, 5  ;;  %v967_v58 = vld [vmem:[%s6888_s11 + $0x2f0] sm:$0x1] }
  0x6f   : > { %6088 = vmatprep.mubr.bf16.mxu1 %v6564_v40  ;;  %6136 = vmatprep.mubr.bf16.mxu0 %v5257_v9  ;;  %v1219_v40 = vrot.slane %v1218_v31, 4  ;;  %v1275_v6 = vrot.slane %v1273_v63, 4  ;;  %v1281_v7 = vrot.slane %v1279_v0, 5  ;;  %v1284_v13 = vshrl.u32 %v959_v8, 16 }
  0x70   : > { %6165 = vmatpush3.bf16.msra.mxu1 %v6574_v45  ;;  %6213 = vmatpush3.bf16.msra.mxu0 %v6575_v57  ;;  %v1241_v42 = vrot.slane %v1239_v35, 5  ;;  %v1251_v45 = vrot.slane %v1249_v38, 4  ;;  %v1287_v14 = vshll.u32 %v959_v8, 16  ;;  %v1293_v17 = vshll.u32 %v960_v11, 16  ;;  %v963_v35 = vld [vmem:[%s6888_s11 + $0x2b0] sm:$0xf] }
  0x71   : > { %6166 = vmatprep.subr.bf16.mxu1 %v6578_v61  ;;  %6214 = vmatprep.subr.bf16.mxu0 %v6579_v1  ;;  %v1224_v47 = vsel %vm6966_vm2, %v1219_v40, %v1223_v25  ;;  %v1276_v16 = vor.u32 %v1275_v6, %v1271_v5  ;;  %v1297_v18 = vshrl.u32 %v960_v11, 16  ;;  %v1303_v19 = vshll.u32 %v961_v12, 16  ;;  %v964_v38 = vld [vmem:[%s6888_s11 + $0x2c0] sm:$0x1]  ;;  %v6580_v12 = vld [vmem:[%s6888_s11 + $0x8] ss:$16 sps:$4 sm:$0xff]  }
  0x72   : > { %v1242_v49 = vor.u32 %v1241_v42, %v1238_v41  ;;  %v1252_v51 = vor.u32 %v1251_v45, %v1247_v44  ;;  %v5259_v55 = vcombine.low %v1224_v47, %v1234_v50  ;;  %v1286_v22 = vrot.slane %v1284_v13, 4 }
  0x73   : > { %v1289_v23 = vrot.slane %v1287_v14, 5  ;;  %v1277_v24 = vrot.slane %v1276_v16, 4  ;;  %v1295_v25 = vrot.slane %v1293_v17, 5  ;;  %v1299_v26 = vrot.slane %v1297_v18, 4  ;;  %v6581_v17 = vld [vmem:[%s6888_s11 + $0xc] ss:$16 sps:$4 sm:$0xff]  }
  0x74   : > { %6167 = vmatpush3.bf16.msra.mxu1 %v6578_v61  ;;  %6215 = vmatpush3.bf16.msra.mxu0 %v6579_v1  ;;  %v1243_v57 = vrot.slane %v1242_v49, 4  ;;  %v1253_v61 = vrot.slane %v1252_v51, 4  ;;  %v1305_v27 = vrot.slane %v1303_v19, 5  ;;  %v1308_v39 = vshrl.u32 %v962_v34, 16  ;;  %v6582_v19 = vld [vmem:[%s6888_s11 + $0x38] ss:$16 sps:$4 sm:$0xff]  }
  0x75   : > { %6248 = vmatprep.subr.bf16.mxu1 %v7117_v15  ;;  %6296 = vmatprep.subr.bf16.mxu0 %v7128_v29  ;;  %v1282_v31 = vsel %vm6966_vm2, %v1277_v24, %v1281_v7  ;;  %v1300_v32 = vor.u32 %v1299_v26, %v1295_v25  ;;  %v1311_v40 = vshll.u32 %v962_v34, 16  ;;  %v1317_v42 = vshll.u32 %v963_v35, 16  ;;  %v6596_v24 = vld [vmem:[%s8132_s1 + $0x168] sm:$0xff]   ;;  %v6591_v26 = vld [vmem:[%s8132_s1 + $0x1b0] sm:$0xff]  }
  0x76   : > { %6089 = vmatmul.mubr.bf16.gmra.mxu1 %v6565_v10  ;;  %6137 = vmatmul.mubr.bf16.gmra.mxu0 %v5258_v30  ;;  %v1248_v1 = vsel %vm6966_vm2, %v1243_v57, %v1247_v44  ;;  %v1258_v4 = vsel %vm6966_vm2, %v1253_v61, %v1257_v46  ;;  %v1266_v10 = vor.u32 %v1265_v3, %v1262_v2  ;;  %v1321_v43 = vshrl.u32 %v963_v35, 16  ;;  %v966_v57 = vld [vmem:[%s6888_s11 + $0x2e0] sm:$0xf]  ;;  %v6593_v34 = vld [vmem:[%s6888_s11 + $0xcc] ss:$16 sps:$4 sm:$0xff]  }
  0x77   : > { %6092 = vmatprep.mubr.bf16.mxu1 %v6568_v21  ;;  %6140 = vmatprep.mubr.bf16.mxu0 %v5259_v55  ;;  %v5260_v9 = vcombine.low %v1248_v1, %v1258_v4  ;;  %v6573_v21 = vld [vmem:[%s6888_s11 + $0x270] ss:$16 sps:$4 sm:$0xff]   ;;  %v1290_v30 = vor.u32 %v1289_v23, %v1286_v22  ;;  %v1301_v41 = vrot.slane %v1300_v32, 4  ;;  %v1327_v44 = vshll.u32 %v964_v38, 16  ;;  %v6586_v22 = vld [vmem:[%s6888_s11 + $0x68] ss:$16 sps:$4 sm:$0xff]  }
  0x78   : > { %v1267_v20 = vrot.slane %v1266_v10, 4  ;;  %v1310_v46 = vrot.slane %v1308_v39, 4  ;;  %v1313_v47 = vrot.slane %v1311_v40, 5  ;;  %v1319_v49 = vrot.slane %v1317_v42, 5  ;;  %v6577_v55 = vld [vmem:[%s6888_s11 + $0x2d0] ss:$16 sps:$4 sm:$0xff]  }
  0x79   : > { %v1291_v37 = vrot.slane %v1290_v30, 4  ;;  %v1323_v50 = vrot.slane %v1321_v43, 4  ;;  %v1329_v51 = vrot.slane %v1327_v44, 5  ;;  %v1341_v62 = vshll.u32 %v966_v57, 16  ;;  %v6590_v23 = vld [vmem:[%s8132_s1 + $0x170] sm:$0xff]   ;;  %v6602_v30 = vld [vmem:[%s8132_s1 + $0x160] sm:$0xff]  }
  0x7a   : > { %v1272_v28 = vsel %vm6966_vm2, %v1267_v20, %v1271_v5  ;;  %v1314_v54 = vor.u32 %v1313_v47, %v1310_v46  ;;  %v1345_v63 = vshrl.u32 %v966_v57, 16  ;;  %v1351_v0 = vshll.u32 %v967_v58, 16  ;;  %v6589_v32 = vld [vmem:[%s6888_s11 + $0x9c] ss:$16 sps:$4 sm:$0xff]   ;;  %v6594_v35 = vld [vmem:[%s6888_s11 + $0xf8] ss:$16 sps:$4 sm:$0xff]  }
  0x7b   : > { %v5261_v36 = vcombine.low %v1272_v28, %v1282_v31  ;;  %v1296_v45 = vsel %vm6966_vm2, %v1291_v37, %v1295_v25  ;;  %v1324_v61 = vor.u32 %v1323_v50, %v1319_v49  ;;  %v1343_v5 = vrot.slane %v1341_v62, 5  ;;  %v6583_v25 = vld [vmem:[%s6888_s11 + $0x3c] ss:$16 sps:$4 sm:$0xff]   ;;  %v6588_v28 = vld [vmem:[%s6888_s11 + $0x98] ss:$16 sps:$4 sm:$0xff]   ;;  %v6614_v37 = vld [vmem:[%s8132_s1 + $0x150] sm:$0xff]  }
  0x7c   : > { %v1315_v1 = vrot.slane %v1314_v54, 4  ;;  %v1347_v6 = vrot.slane %v1345_v63, 4  ;;  %v1353_v7 = vrot.slane %v1351_v0, 5  ;;  %v6592_v31 = vld [vmem:[%s6888_s11 + $0xc8] ss:$16 sps:$4 sm:$0xff]   ;;  %v6626_v44 = vld [vmem:[%s8132_s1 + $0x140] sm:$0xff]  }
  0x7d   : > { %v1325_v4 = vrot.slane %v1324_v61, 4  ;;  %v6609_v38 = vld [vmem:[%s8132_s1 + $0x198] sm:$0xff]   ;;  %v6620_v39 = vld [vmem:[%s8132_s1 + $0x148] sm:$0xff]  }
  0x7e   : > { %6093 = vmatmul.mubr.bf16.gmra.mxu1 %v6569_v48  ;;  %6141 = vmatmul.mubr.bf16.gmra.mxu0 %v5260_v9  ;;  %v1306_v48 = vsel %vm6966_vm2, %v1301_v41, %v1305_v27  ;;  %v1320_v8 = vsel %vm6966_vm2, %v1315_v1, %v1319_v49  ;;  %v1348_v11 = vor.u32 %v1347_v6, %v1343_v5  ;;  %v6587_v27 = vld [vmem:[%s6888_s11 + $0x6c] ss:$16 sps:$4 sm:$0xff]   ;;  %v6615_v41 = vld [vmem:[%s8132_s1 + $0x190] sm:$0xff]   ;;  %v6600_v43 = vld [vmem:[%s6888_s11 + $0x158] ss:$16 sps:$4 sm:$0xff]  }
  0x7f   : > { %6096 = vmatprep.mubr.bf16.mxu1 %v6572_v52  ;;  %6144 = vmatprep.mubr.bf16.mxu0 %v5261_v36  ;;  %v965_v52 = vld [vmem:[%s6888_s11 + $0x2d0] sm:$0xf]  ;;  %v5262_v53 = vcombine.low %v1296_v45, %v1306_v48  ;;  %v1330_v10 = vsel %vm6966_vm2, %v1325_v4, %v1329_v51  ;;  %v6598_v36 = vld [vmem:[%s6888_s11 + $0x128] ss:$16 sps:$4 sm:$0xff]   ;;  %v6595_v40 = vld [vmem:[%s6888_s11 + $0xfc] ss:$16 sps:$4 sm:$0xff]  }
  0x80   : > { %v1332_v59 = vshrl.u32 %v965_v52, 16  ;;  %v1335_v60 = vshll.u32 %v965_v52, 16  ;;  %v5263_v13 = vcombine.low %v1320_v8, %v1330_v10  ;;  %v1349_v16 = vrot.slane %v1348_v11, 4  ;;  %v6599_v42 = vld [vmem:[%s6888_s11 + $0x12c] ss:$16 sps:$4 sm:$0xff]   ;;  %v6627_v51 = vld [vmem:[%s8132_s1 + $0x180] sm:$0xff]  }
  0x81   : > { %v6604_v45 = vld [vmem:[%s6888_s11 + $0x188] ss:$16 sps:$4 sm:$0xff]   ;;  %v6601_v47 = vld [vmem:[%s6888_s11 + $0x15c] ss:$16 sps:$4 sm:$0xff]  }
  0x82   : > { %v1334_v2 = vrot.slane %v1332_v59, 4  ;;  %v1337_v3 = vrot.slane %v1335_v60, 5  ;;  %v1354_v20 = vsel %vm6966_vm2, %v1349_v16, %v1353_v7  ;;  %v6621_v46 = vld [vmem:[%s8132_s1 + $0x188] sm:$0xff]   ;;  %v7236_v48 = vld [vmem:[%s8132_s1 + $0x1f8] sm:$0xff]  }
  0x83   : > { %v6605_v49 = vld [vmem:[%s6888_s11 + $0x18c] ss:$16 sps:$4 sm:$0xff]   ;;  %v6606_v50 = vld [vmem:[%s6888_s11 + $0x1b8] ss:$16 sps:$4 sm:$0xff]  }
  0x84   : > { %v1338_v9 = vor.u32 %v1337_v3, %v1334_v2  ;;  %v6610_v52 = vld [vmem:[%s6888_s11 + $0x1e8] ss:$16 sps:$4 sm:$0xff]   ;;  %v6607_v54 = vld [vmem:[%s6888_s11 + $0x1bc] ss:$16 sps:$4 sm:$0xff]  }
  0x85   : > { %v6611_v57 = vld [vmem:[%s6888_s11 + $0x1ec] ss:$16 sps:$4 sm:$0xff]   ;;  %v2450_v58 = vld [vmem:[%s6888_s11 + $0x18] sm:$0xf]  ;;  %v2451_v3 = vld [vmem:[%s6888_s11 + $0x28] sm:$0x1] }
  0x86   : > { %6097 = vmatmul.mubr.bf16.gmra.mxu1 %v6573_v21  ;;  %6145 = vmatmul.mubr.bf16.gmra.mxu0 %v5262_v53  ;;  %v1339_v14 = vrot.slane %v1338_v9, 4  ;;  %v7248_v53 = vld [vmem:[%s8132_s1 + $0x238] sm:$0xff]   ;;  %v2507_v62 = vshll.u32 %v2450_v58, 16  ;;  %v2511_v63 = vshrl.u32 %v2450_v58, 16  ;;  %v2453_v8 = vld [vmem:[%s6888_s11 + $0x48] sm:$0xf] }
  0x87   : > { %6100 = vmatprep.mubr.bf16.mxu1 %v6576_v33  ;;  %6148 = vmatprep.mubr.bf16.mxu0 %v5263_v13  ;;  %v6608_v33 = vld [vmem:[%s8132_s1 + $0x158] sm:$0xff]   ;;  %v2535_v13 = vshrl.u32 %v2453_v8, 16 }
  0x88   : > { %v1344_v18 = vsel %vm6966_vm2, %v1339_v14, %v1343_v5  ;;  %v6612_v61 = vld [vmem:[%s6888_s11 + $0x218] ss:$16 sps:$4 sm:$0xff]   ;;  %v7258_v4 = vrot.slane %v2507_v62, 5  ;;  %v2513_v5 = vrot.slane %v2511_v63, 4  ;;  %v6613_v14 = vld [vmem:[%s6888_s11 + $0x21c] ss:$16 sps:$4 sm:$0xff]  }
  0x89   : > { %v5264_v21 = vcombine.low %v1344_v18, %v1354_v20  ;;  %v6616_v0 = vld [vmem:[%s6888_s11 + $0x248] ss:$16 sps:$4 sm:$0xff]   ;;  %v6617_v20 = vld [vmem:[%s6888_s11 + $0x24c] ss:$16 sps:$4 sm:$0xff]  }
  0x8a   : > { %v2452_v6 = vld [vmem:[%s6888_s11 + $0x38] sm:$0xf]  ;;  %v2514_v16 = vor.u32 %v2513_v5, %v7258_v4 }
  0x8b   : > { %v2454_v9 = vld [vmem:[%s6888_s11 + $0x58] sm:$0x1]  ;;  %v2522_v10 = vshrl.u32 %v2452_v6, 16  ;;  %v2525_v11 = vshll.u32 %v2452_v6, 16 }
  0x8d   : > { %v2524_v18 = vrot.slane %v2522_v10, 4  ;;  %v2461_v10 = vld [vmem:[%s6888_s11 + $0xc8] sm:$0xf] }
  0x8e   : > { %6101 = vmatmul.mubr.bf16.gmra.mxu1 %v6577_v55  ;;  %6149 = vmatmul.mubr.bf16.gmra.mxu0 %v5264_v21  ;;  %v2449_v55 = vld [vmem:[%s6888_s11 + $0x8] sm:$0xf] }
  0x8f   : > { %6168 = vmatprep.mubr.bf16.mxu1 %v6580_v12  ;;  %6216 = vmatprep.mubr.bf16.mxu0 %v6581_v17  ;;  %v2498_v59 = vshrl.u32 %v2449_v55, 16  ;;  %v2501_v60 = vshll.u32 %v2449_v55, 16  ;;  %v2531_v12 = vshll.u32 %v2453_v8, 16  ;;  %v2517_v17 = vshll.u32 %v2451_v3, 16  ;;  %v6623_v55 = vld [vmem:[%s6888_s11 + $0x2ac] ss:$16 sps:$4 sm:$0xff]  }
  0x91   : > { %v2500_v1 = vrot.slane %v2498_v59, 4  ;;  %v2503_v2 = vrot.slane %v2501_v60, 5 }
  0x93   : > { %v2504_v7 = vor.u32 %v2503_v2, %v2500_v1  ;;  %v6624_v1 = vld [vmem:[%s6888_s11 + $0x2d8] ss:$16 sps:$4 sm:$0xff]  }
  0x95   : > { %v2505_v21 = vrot.slane %v2504_v7, 4 }
  0x96   : > { %6169 = vmatmul.mubr.bf16.vlgmr.msra.gmra.mxu1 %v6582_v19  ;;  %6217 = vmatmul.mubr.bf16.vlgmr.msra.gmra.mxu0 %v6583_v25  ;;  %v2527_v19 = vrot.slane %v2525_v11, 5  ;;  %v6618_v25 = vld [vmem:[%s6888_s11 + $0x278] ss:$16 sps:$4 sm:$0xff]  }
  0x97   : > { %6249 = vmatpush3.bf16.msra.mxu1 %v7117_v15  ;;  %6172 = vmatprep.mubr.bf16.mxu1 %v6586_v22  ;;  %v6597_v15 = vld [vmem:[%s8132_s1 + $0x1a8] sm:$0xff]   ;;  %v7266_v22 = vrot.slane %v2531_v12, 5  ;;  %v2462_v11 = vld [vmem:[%s6888_s11 + $0xd8] sm:$0xf] }
  0x98   : > { %6250 = vmatprep.subr.bf16.mxu1 %v6590_v23  ;;  %6297 = vmatpush3.bf16.msra.mxu0 %v7128_v29  ;;  %v6603_v29 = vld [vmem:[%s8132_s1 + $0x1a0] sm:$0xff]  }
  0x99   : > { %6220 = vmatprep.mubr.bf16.mxu0 %v6587_v27  ;;  %6298 = vmatprep.subr.bf16.mxu0 %v6591_v26  ;;  %v2455_v27 = vld [vmem:[%s6888_s11 + $0x68] sm:$0xf] }
  0x9b   : > { %6251 = vmatpush3.bf16.msra.mxu1 %v6590_v23  ;;  %v2537_v23 = vrot.slane %v2535_v13, 4  ;;  %v2463_v13 = vld [vmem:[%s6888_s11 + $0xe8] sm:$0x1] }
  0x9c   : > { %6252 = vmatprep.subr.bf16.mxu1 %v6596_v24  ;;  %6299 = vmatpush3.bf16.msra.mxu0 %v6591_v26  ;;  %v2528_v26 = vor.u32 %v2527_v19, %v2524_v18  ;;  %v2603_v19 = vshll.u32 %v2462_v11, 16 }
  0x9d   : > { %6300 = vmatprep.subr.bf16.mxu0 %v6597_v15 }
  0x9e   : > { %6173 = vmatmul.mubr.bf16.gmra.mxu1 %v6588_v28  ;;  %6221 = vmatmul.mubr.bf16.gmra.mxu0 %v6589_v32  ;;  %v2456_v28 = vld [vmem:[%s6888_s11 + $0x78] sm:$0xf]  ;;  %v2546_v32 = vshrl.u32 %v2455_v27, 16 }
  0x9f   : > { %6176 = vmatprep.mubr.bf16.mxu1 %v6592_v31  ;;  %6253 = vmatpush3.bf16.msra.mxu1 %v6596_v24  ;;  %v2541_v24 = vshll.u32 %v2454_v9, 16  ;;  %v2519_v31 = vrot.slane %v2517_v17, 5 }
  0xa0   : > { %6254 = vmatprep.subr.bf16.mxu1 %v6602_v30  ;;  %6224 = vmatprep.mubr.bf16.mxu0 %v6593_v34  ;;  %v6622_v34 = vld [vmem:[%s6888_s11 + $0x2a8] ss:$16 sps:$4 sm:$0xff]  }
  0xa1   : > { %6301 = vmatpush3.bf16.msra.mxu0 %v6597_v15  ;;  %v2457_v15 = vld [vmem:[%s6888_s11 + $0x88] sm:$0x1] }
  0xa2   : > { %6302 = vmatprep.subr.bf16.mxu0 %v6603_v29 }
  0xa3   : > { %6255 = vmatpush3.bf16.msra.mxu1 %v6602_v30  ;;  %v2515_v30 = vrot.slane %v2514_v16, 4  ;;  %v2597_v16 = vshll.u32 %v2461_v10, 16 }
  0xa4   : > { %6256 = vmatprep.subr.bf16.mxu1 %v6608_v33 }
  0xa5   : > { %6303 = vmatpush3.bf16.msra.mxu0 %v6603_v29  ;;  %v2555_v29 = vshll.u32 %v2456_v28, 16 }
  0xa6   : > { %6177 = vmatmul.mubr.bf16.gmra.mxu1 %v6594_v35  ;;  %6304 = vmatprep.subr.bf16.mxu0 %v6609_v38  ;;  %v2538_v35 = vor.u32 %v2537_v23, %v7266_v22 }
  0xa7   : > { %6180 = vmatprep.mubr.bf16.mxu1 %v6598_v36  ;;  %6257 = vmatpush3.bf16.msra.mxu1 %v6608_v33  ;;  %v2549_v33 = vshll.u32 %v2455_v27, 16  ;;  %v2559_v36 = vshrl.u32 %v2456_v28, 16 }
  0xa8   : > { %6258 = vmatprep.subr.bf16.mxu1 %v6614_v37  ;;  %6225 = vmatmul.mubr.bf16.gmra.mxu0 %v6595_v40  ;;  %v2565_v40 = vshll.u32 %v2457_v15, 16  ;;  %v2464_v15 = vld [vmem:[%s6888_s11 + $0xf8] sm:$0xf] }
  0xa9   : > { %6228 = vmatprep.mubr.bf16.mxu0 %v6599_v42  ;;  %6305 = vmatpush3.bf16.msra.mxu0 %v6609_v38  ;;  %v2548_v38 = vrot.slane %v2546_v32, 4  ;;  %v2529_v42 = vrot.slane %v2528_v26, 4  ;;  %v6628_v26 = vld [vmem:[%s6888_s11 + $0x30] ss:$16 sps:$4 sm:$0xff]  }
  0xaa   : > { %6306 = vmatprep.subr.bf16.mxu0 %v6615_v41  ;;  %v2567_v62 = vrot.slane %v2565_v40, 5 }
  0xab   : > { %6259 = vmatpush3.bf16.msra.mxu1 %v6614_v37  ;;  %v2543_v37 = vrot.slane %v2541_v24, 5  ;;  %v2534_v7 = vsel %vm6966_vm2, %v2529_v42, %v7266_v22  ;;  %v2599_v24 = vrot.slane %v2597_v16, 5 }
  0xac   : > { %6260 = vmatprep.subr.bf16.mxu1 %v6620_v39 }
  0xad   : > { %6307 = vmatpush3.bf16.msra.mxu0 %v6615_v41  ;;  %v2510_v41 = vsel %vm6966_vm2, %v2505_v21, %v7258_v4  ;;  %v6625_v21 = vld [vmem:[%s6888_s11 + $0x2dc] ss:$16 sps:$4 sm:$0xff]  }
  0xae   : > { %6181 = vmatmul.mubr.bf16.gmra.mxu1 %v6600_v43  ;;  %6308 = vmatprep.subr.bf16.mxu0 %v6621_v46  ;;  %v2557_v43 = vrot.slane %v2555_v29, 5  ;;  %v2618_v29 = vshrl.u32 %v2464_v15, 16 }
  0xaf   : > { %6184 = vmatprep.mubr.bf16.mxu1 %v6604_v45  ;;  %6261 = vmatpush3.bf16.msra.mxu1 %v6620_v39  ;;  %v2551_v39 = vrot.slane %v2549_v33, 5  ;;  %v2458_v45 = vld [vmem:[%s6888_s11 + $0x98] sm:$0xf] }
  0xb0   : > { %6262 = vmatprep.subr.bf16.mxu1 %v6626_v44  ;;  %6229 = vmatmul.mubr.bf16.gmra.mxu0 %v6601_v47  ;;  %v2520_v47 = vsel %vm6966_vm2, %v2515_v30, %v2519_v31  ;;  %v2605_v30 = vrot.slane %v2603_v19, 5  ;;  %v2620_v42 = vrot.slane %v2618_v29, 4 }
  0xb1   : > { %6232 = vmatprep.mubr.bf16.mxu0 %v6605_v49  ;;  %6309 = vmatpush3.bf16.msra.mxu0 %v6621_v46  ;;  %v6619_v46 = vld [vmem:[%s6888_s11 + $0x27c] ss:$16 sps:$4 sm:$0xff]   ;;  %v2552_v49 = vor.u32 %v2551_v39, %v2548_v38  ;;  %v5369_v6 = vcombine.low %v2510_v41, %v2520_v47 }
  0xb2   : > { %6310 = vmatprep.subr.bf16.mxu0 %v6627_v51 }
  0xb3   : > { %6263 = vmatpush3.bf16.msra.mxu1 %v6626_v44  ;;  %v2561_v44 = vrot.slane %v2559_v36, 4  ;;  %v2621_v36 = vshll.u32 %v2464_v15, 16 }
  0xb4   : > { %6344 = vmatprep.subr.bf16.mxu1 %v7236_v48 }
  0xb5   : > { %6311 = vmatpush3.bf16.msra.mxu0 %v6627_v51  ;;  %v2460_v51 = vld [vmem:[%s6888_s11 + $0xb8] sm:$0x1]  ;;  %v2562_v58 = vor.u32 %v2561_v44, %v2557_v43 }
  0xb6   : > { %6185 = vmatmul.mubr.bf16.gmra.mxu1 %v6606_v50  ;;  %6392 = vmatprep.subr.bf16.mxu0 %v7248_v53  ;;  %v2459_v50 = vld [vmem:[%s6888_s11 + $0xa8] sm:$0xf]  ;;  %v2589_v5 = vshll.u32 %v2460_v51, 16 }
  0xb7   : > { %6188 = vmatprep.mubr.bf16.mxu1 %v6610_v52  ;;  %v2570_v52 = vshrl.u32 %v2458_v45, 16  ;;  %v2579_v59 = vshll.u32 %v2459_v50, 16  ;;  %v2583_v60 = vshrl.u32 %v2459_v50, 16  ;;  %v2563_v2 = vrot.slane %v2562_v58, 4 }
  0xb8   : > { %6233 = vmatmul.mubr.bf16.gmra.mxu0 %v6607_v54  ;;  %v2573_v54 = vshll.u32 %v2458_v45, 16  ;;  %v2591_v28 = vrot.slane %v2589_v5, 5  ;;  %v6634_v45 = vld [vmem:[%s8132_s1 + $0x1f0] sm:$0xff]  }
  0xb9   : > { %6236 = vmatprep.mubr.bf16.mxu0 %v6611_v57  ;;  %v2539_v57 = vrot.slane %v2538_v35, 4  ;;  %v2572_v63 = vrot.slane %v2570_v52, 4  ;;  %v7285_v3 = vrot.slane %v2579_v59, 5  ;;  %v2585_v4 = vrot.slane %v2583_v60, 4  ;;  %v2466_v35 = vld [vmem:[%s6888_s11 + $0x118] sm:$0x1] }
  0xba   : > { %v2568_v17 = vsel %vm6966_vm2, %v2563_v2, %v2567_v62  ;;  %v2637_v44 = vshll.u32 %v2466_v35, 16  ;;  %v2469_v60 = vld [vmem:[%s6888_s11 + $0x148] sm:$0x1]  ;;  %v6633_v35 = vld [vmem:[%s6888_s11 + $0xc0] ss:$16 sps:$4 sm:$0xff]  }
  0xbb   : > { %v2544_v8 = vsel %vm6966_vm2, %v2539_v57, %v2543_v37  ;;  %v2586_v18 = vor.u32 %v2585_v4, %v7285_v3  ;;  %v6629_v57 = vld [vmem:[%s6888_s11 + $0x60] ss:$16 sps:$4 sm:$0xff]  }
  0xbc   : > { %v5370_v22 = vcombine.low %v2534_v7, %v2544_v8  ;;  %v2661_v8 = vshll.u32 %v2469_v60, 16 }
  0xbd   : > { %v2587_v37 = vrot.slane %v2586_v18, 4  ;;  %v2472_v18 = vld [vmem:[%s6888_s11 + $0x178] sm:$0x1] }
  0xbe   : > { %6189 = vmatmul.mubr.bf16.gmra.mxu1 %v6612_v61  ;;  %v2553_v61 = vrot.slane %v2552_v49, 4 }
  0xbf   : > { %6192 = vmatprep.mubr.bf16.mxu1 %v6616_v0  ;;  %v2575_v0 = vrot.slane %v2573_v54, 5  ;;  %v2467_v54 = vld [vmem:[%s6888_s11 + $0x128] sm:$0xf]  ;;  %v2592_v59 = vsel %vm6966_vm2, %v2587_v37, %v2591_v28  ;;  %v6636_v37 = vld [vmem:[%s6888_s11 + $0xf0] ss:$16 sps:$4 sm:$0xff]  }
  0xc0   : > { %6237 = vmatmul.mubr.bf16.gmra.mxu0 %v6613_v14  ;;  %v2558_v12 = vsel %vm6966_vm2, %v2553_v61, %v2557_v43  ;;  %v2594_v14 = vshrl.u32 %v2461_v10, 16  ;;  %v2623_v43 = vrot.slane %v2621_v36, 5  ;;  %v2642_v61 = vshrl.u32 %v2467_v54, 16 }
  0xc1   : > { %6240 = vmatprep.mubr.bf16.mxu0 %v6617_v20  ;;  %v2576_v9 = vor.u32 %v2575_v0, %v2572_v63  ;;  %v2607_v20 = vshrl.u32 %v2462_v11, 16  ;;  %v5371_v32 = vcombine.low %v2558_v12, %v2568_v17  ;;  %v2645_v62 = vshll.u32 %v2467_v54, 16  ;;  %v6632_v63 = vld [vmem:[%s6888_s11 + $0x90] ss:$16 sps:$4 sm:$0xff]   ;;  %v2471_v17 = vld [vmem:[%s6888_s11 + $0x168] sm:$0xf] }
  0xc2   : > { %v2596_v23 = vrot.slane %v2594_v14, 4  ;;  %v2624_v51 = vor.u32 %v2623_v43, %v2620_v42 }
  0xc3   : > { %v2577_v27 = vrot.slane %v2576_v9, 4  ;;  %v2609_v31 = vrot.slane %v2607_v20, 4  ;;  %v2647_v7 = vrot.slane %v2645_v62, 5 }
  0xc4   : > { %v2600_v33 = vor.u32 %v2599_v24, %v2596_v23  ;;  %v2625_v9 = vrot.slane %v2624_v51, 4  ;;  %v2675_v23 = vshll.u32 %v2471_v17, 16  ;;  %v2679_v24 = vshrl.u32 %v2471_v17, 16 }
  0xc5   : > { %v2610_v38 = vor.u32 %v2609_v31, %v2605_v30  ;;  %v2582_v58 = vsel %vm6966_vm2, %v2577_v27, %v7285_v3  ;;  %v6635_v3 = vld [vmem:[%s8132_s1 + $0x230] sm:$0xff]   ;;  %v2663_v27 = vrot.slane %v2661_v8, 5  ;;  %v6639_v31 = vld [vmem:[%s8132_s1 + $0x228] sm:$0xff]  }
  0xc6   : > { %6193 = vmatmul.mubr.bf16.gmra.mxu1 %v6618_v25  ;;  %v2613_v25 = vshll.u32 %v2463_v13, 16  ;;  %v2470_v13 = vld [vmem:[%s6888_s11 + $0x158] sm:$0xf]  ;;  %v5372_v14 = vcombine.low %v2582_v58, %v2592_v59 }
  0xc7   : > { %6196 = vmatprep.mubr.bf16.mxu1 %v6622_v34  ;;  %v2465_v34 = vld [vmem:[%s6888_s11 + $0x108] sm:$0xf]  ;;  %v2611_v47 = vrot.slane %v2610_v38, 4  ;;  %v2666_v19 = vshrl.u32 %v2470_v13, 16  ;;  %v2669_v20 = vshll.u32 %v2470_v13, 16 }
  0xc8   : > { %6241 = vmatmul.mubr.bf16.gmra.mxu0 %v6619_v46  ;;  %v2627_v39 = vshll.u32 %v2465_v34, 16  ;;  %v2631_v40 = vshrl.u32 %v2465_v34, 16  ;;  %v2615_v41 = vrot.slane %v2613_v25, 5  ;;  %v2601_v46 = vrot.slane %v2600_v33, 4  ;;  %v6642_v25 = vld [vmem:[%s8132_s1 + $0x1e0] sm:$0xff]  }
  0xc9   : > { %6244 = vmatprep.mubr.bf16.mxu0 %v6623_v55  ;;  %v2468_v55 = vld [vmem:[%s6888_s11 + $0x138] sm:$0xf]  ;;  %v2668_v28 = vrot.slane %v2666_v19, 4  ;;  %v2681_v33 = vrot.slane %v2679_v24, 4  ;;  %v2685_v34 = vshll.u32 %v2472_v18, 16  ;;  %v6654_v18 = vld [vmem:[%s8132_s1 + $0x1c8] sm:$0xff]  }
  0xca   : > { %v7308_v49 = vrot.slane %v2627_v39, 5  ;;  %v2633_v50 = vrot.slane %v2631_v40, 4  ;;  %v2606_v0 = vsel %vm6966_vm2, %v2601_v46, %v2605_v30  ;;  %v2651_v2 = vshll.u32 %v2468_v55, 16  ;;  %v2473_v40 = vld [vmem:[%s6888_s11 + $0x188] sm:$0xf] }
  0xcb   : > { %v2655_v4 = vshrl.u32 %v2468_v55, 16  ;;  %v2616_v5 = vsel %vm6966_vm2, %v2611_v47, %v2615_v41  ;;  %v2671_v30 = vrot.slane %v2669_v20, 5  ;;  %v2474_v41 = vld [vmem:[%s6888_s11 + $0x198] sm:$0xf]  ;;  %v2693_v46 = vshll.u32 %v2473_v40, 16 }
  0xcc   : > { %v2634_v52 = vor.u32 %v2633_v50, %v7308_v49  ;;  %v2653_v11 = vrot.slane %v2651_v2, 5  ;;  %v6646_v47 = vld [vmem:[%s8132_s1 + $0x1d8] sm:$0xff]   ;;  %v6643_v50 = vld [vmem:[%s8132_s1 + $0x220] sm:$0xff]   ;;  %v2699_v51 = vshll.u32 %v2474_v41, 16 }
  0xcd   : > { %v2657_v12 = vrot.slane %v2655_v4, 4  ;;  %v2672_v36 = vor.u32 %v2671_v30, %v2668_v28  ;;  %v2695_v59 = vrot.slane %v2693_v46, 5  ;;  %v6640_v19 = vld [vmem:[%s6888_s11 + $0x150] ss:$16 sps:$4 sm:$0xff]   ;;  %v2479_v30 = vld [vmem:[%s6888_s11 + $0x1e8] sm:$0xf] }
  0xce   : > { %6197 = vmatmul.mubr.bf16.gmra.mxu1 %v6624_v1  ;;  %v2639_v1 = vrot.slane %v2637_v44, 5  ;;  %v2635_v10 = vrot.slane %v2634_v52, 4  ;;  %v2475_v44 = vld [vmem:[%s6888_s11 + $0x1a8] sm:$0x1]  ;;  %v2703_v52 = vshrl.u32 %v2474_v41, 16  ;;  %v6658_v41 = vld [vmem:[%s8132_s1 + $0x1c0] sm:$0xff]  }
  0xcf   : > { %6264 = vmatprep.mubr.bf16.mxu1 %v5369_v6  ;;  %v2644_v6 = vrot.slane %v2642_v61, 4  ;;  %v2673_v43 = vrot.slane %v2672_v36, 4  ;;  %v2709_v54 = vshll.u32 %v2475_v44, 16  ;;  %v2701_v61 = vrot.slane %v2699_v51, 5  ;;  %v2482_v46 = vld [vmem:[%s6888_s11 + $0x218] sm:$0xf] }
  0xd0   : > { %6245 = vmatmul.mubr.bf16.gmra.mxu0 %v6625_v21  ;;  %v5373_v21 = vcombine.low %v2606_v0, %v2616_v5  ;;  %v2640_v29 = vsel %vm6966_vm2, %v2635_v10, %v2639_v1  ;;  %v2705_v62 = vrot.slane %v2703_v52, 4  ;;  %v2476_v0 = vld [vmem:[%s6888_s11 + $0x1b8] sm:$0xf]  ;;  %v6650_v1 = vld [vmem:[%s8132_s1 + $0x1d0] sm:$0xff]   ;;  %v2483_v52 = vld [vmem:[%s6888_s11 + $0x228] sm:$0xf] }
  0xd1   : > { %6312 = vmatprep.mubr.bf16.mxu0 %v6628_v26  ;;  %v2648_v16 = vor.u32 %v2647_v7, %v2644_v6  ;;  %v2478_v5 = vld [vmem:[%s6888_s11 + $0x1d8] sm:$0x1]  ;;  %v2717_v6 = vshll.u32 %v2476_v0, 16 }
  0xd2   : > { %v2706_v7 = vor.u32 %v2705_v62, %v2701_v61  ;;  %v2733_v10 = vshll.u32 %v2478_v5, 16 }
  0xd3   : > { %v2649_v26 = vrot.slane %v2648_v16, 4  ;;  %v2719_v17 = vrot.slane %v2717_v6, 5 }
  0xd4   : > { %v2707_v20 = vrot.slane %v2706_v7, 4 }
  0xd5   : > { %v2654_v38 = vsel %vm6966_vm2, %v2649_v26, %v2653_v11 }
  0xd6   : > { %6265 = vmatmul.mubr.bf16.vlgmr.msra.gmra.mxu1 %v5370_v22  ;;  %v2658_v22 = vor.u32 %v2657_v12, %v2653_v11  ;;  %v6647_v11 = vld [vmem:[%s8132_s1 + $0x218] sm:$0xff]   ;;  %v6637_v12 = vld [vmem:[%s6888_s11 + $0x120] ss:$16 sps:$4 sm:$0xff]  }
  0xd7   : > { %6345 = vmatpush3.bf16.msra.mxu1 %v7236_v48  ;;  %6268 = vmatprep.mubr.bf16.mxu1 %v5371_v32  ;;  %v6638_v48 = vld [vmem:[%s8132_s1 + $0x1e8] sm:$0xff]   ;;  %v7342_v32 = vrot.slane %v2675_v23, 5  ;;  %v7386_v23 = vrot.slane %v2733_v10, 5 }
  0xd8   : > { %6346 = vmatprep.subr.bf16.mxu1 %v6634_v45  ;;  %6313 = vmatmul.mubr.bf16.vlgmr.msra.gmra.mxu0 %v6629_v57  ;;  %v2659_v15 = vrot.slane %v2658_v22, 4  ;;  %v2687_v57 = vrot.slane %v2685_v34, 5  ;;  %v2738_v34 = vshrl.u32 %v2479_v30, 16 }
  0xd9   : > { %6393 = vmatpush3.bf16.msra.mxu0 %v7248_v53  ;;  %6316 = vmatprep.mubr.bf16.mxu0 %v6632_v63  ;;  %v2630_v53 = vsel %vm6966_vm2, %v2625_v9, %v7308_v49  ;;  %v2682_v39 = vor.u32 %v2681_v33, %v7342_v32  ;;  %v2711_v63 = vrot.slane %v2709_v54, 5  ;;  %v2678_v2 = vsel %vm6966_vm2, %v2673_v43, %v7342_v32  ;;  %v2481_v33 = vld [vmem:[%s6888_s11 + $0x208] sm:$0x1]  ;;  %v2484_v54 = vld [vmem:[%s6888_s11 + $0x238] sm:$0x1] }
  0xda   : > { %6394 = vmatprep.subr.bf16.mxu0 %v6635_v3  ;;  %v2664_v42 = vsel %vm6966_vm2, %v2659_v15, %v2663_v27  ;;  %v5374_v49 = vcombine.low %v2630_v53, %v2640_v29  ;;  %v6651_v53 = vld [vmem:[%s8132_s1 + $0x210] sm:$0xff]  }
  0xdb   : > { %6347 = vmatpush3.bf16.msra.mxu1 %v6634_v45  ;;  %v2690_v45 = vshrl.u32 %v2473_v40, 16  ;;  %v2683_v55 = vrot.slane %v2682_v39, 4  ;;  %v5375_v60 = vcombine.low %v2654_v38, %v2664_v42  ;;  %v2712_v27 = vsel %vm6966_vm2, %v2707_v20, %v2711_v63 }
  0xdc   : > { %6348 = vmatprep.subr.bf16.mxu1 %v6638_v48  ;;  %v2757_v38 = vshll.u32 %v2481_v33, 16  ;;  %v2740_v39 = vrot.slane %v2738_v34, 4  ;;  %v2488_v34 = vld [vmem:[%s6888_s11 + $0x278] sm:$0xf] }
  0xdd   : > { %6395 = vmatpush3.bf16.msra.mxu0 %v6635_v3  ;;  %v2692_v58 = vrot.slane %v2690_v45, 4  ;;  %v2477_v3 = vld [vmem:[%s6888_s11 + $0x1c8] sm:$0xf]  ;;  %v2688_v13 = vsel %vm6966_vm2, %v2683_v55, %v2687_v57  ;;  %v2762_v55 = vshrl.u32 %v2482_v46, 16  ;;  %v2765_v57 = vshll.u32 %v2482_v46, 16 }
  0xde   : > { %6269 = vmatmul.mubr.bf16.gmra.mxu1 %v5372_v14  ;;  %6396 = vmatprep.subr.bf16.mxu0 %v6639_v31  ;;  %v2723_v8 = vshll.u32 %v2477_v3, 16  ;;  %v2727_v9 = vshrl.u32 %v2477_v3, 16  ;;  %v5376_v26 = vcombine.low %v2678_v2, %v2688_v13  ;;  %v2759_v45 = vrot.slane %v2757_v38, 5  ;;  %v6644_v2 = vld [vmem:[%s6888_s11 + $0x1b0] ss:$16 sps:$4 sm:$0xff]  }
  0xdf   : > { %6272 = vmatprep.mubr.bf16.mxu1 %v5373_v21  ;;  %6349 = vmatpush3.bf16.msra.mxu1 %v6638_v48  ;;  %v2696_v4 = vor.u32 %v2695_v59, %v2692_v58  ;;  %v2714_v48 = vshrl.u32 %v2476_v0, 16  ;;  %v2771_v59 = vshll.u32 %v2483_v52, 16  ;;  %v2764_v63 = vrot.slane %v2762_v55, 4 }
  0xe0   : > { %6350 = vmatprep.subr.bf16.mxu1 %v6642_v25  ;;  %6317 = vmatmul.mubr.bf16.gmra.mxu0 %v6633_v35  ;;  %v7384_v21 = vrot.slane %v2723_v8, 5  ;;  %v2729_v22 = vrot.slane %v2727_v9, 4  ;;  %v2741_v35 = vshll.u32 %v2479_v30, 16  ;;  %v2767_v0 = vrot.slane %v2765_v57, 5  ;;  %v6648_v30 = vld [vmem:[%s6888_s11 + $0x210] ss:$16 sps:$4 sm:$0xff]  }
  0xe1   : > { %6320 = vmatprep.mubr.bf16.mxu0 %v6636_v37  ;;  %6397 = vmatpush3.bf16.msra.mxu0 %v6639_v31  ;;  %v2697_v14 = vrot.slane %v2696_v4, 4  ;;  %v2716_v16 = vrot.slane %v2714_v48, 4  ;;  %v2480_v31 = vld [vmem:[%s6888_s11 + $0x1f8] sm:$0xf]  ;;  %v2773_v3 = vrot.slane %v2771_v59, 5  ;;  %v2810_v38 = vshrl.u32 %v2488_v34, 16 }
  0xe2   : > { %6398 = vmatprep.subr.bf16.mxu0 %v6643_v50  ;;  %v2730_v28 = vor.u32 %v2729_v22, %v7384_v21  ;;  %v2747_v36 = vshll.u32 %v2480_v31, 16  ;;  %v2751_v37 = vshrl.u32 %v2480_v31, 16  ;;  %v2743_v40 = vrot.slane %v2741_v35, 5 }
  0xe3   : > { %6351 = vmatpush3.bf16.msra.mxu1 %v6642_v25  ;;  %v2702_v24 = vsel %vm6966_vm2, %v2697_v14, %v2701_v61  ;;  %v2720_v25 = vor.u32 %v2719_v17, %v2716_v16  ;;  %v2781_v61 = vshll.u32 %v2484_v54, 16  ;;  %v2768_v8 = vor.u32 %v2767_v0, %v2764_v63  ;;  %v2487_v16 = vld [vmem:[%s6888_s11 + $0x268] sm:$0x1]  ;;  %v2492_v0 = vld [vmem:[%s6888_s11 + $0x2b8] sm:$0xf] }
  0xe4   : > { %6352 = vmatprep.subr.bf16.mxu1 %v6646_v47  ;;  %v5377_v15 = vcombine.low %v2702_v24, %v2712_v27  ;;  %v2731_v29 = vrot.slane %v2730_v28, 4  ;;  %v2749_v43 = vrot.slane %v2747_v36, 5  ;;  %v2753_v44 = vrot.slane %v2751_v37, 4  ;;  %v2489_v36 = vld [vmem:[%s6888_s11 + $0x288] sm:$0xf] }
  0xe5   : > { %6399 = vmatpush3.bf16.msra.mxu0 %v6643_v50  ;;  %v2721_v32 = vrot.slane %v2720_v25, 4  ;;  %v2744_v51 = vor.u32 %v2743_v40, %v2740_v39  ;;  %v2783_v48 = vrot.slane %v2781_v61, 5  ;;  %v2769_v14 = vrot.slane %v2768_v8, 4  ;;  %v6645_v25 = vld [vmem:[%s6888_s11 + $0x1e0] ss:$16 sps:$4 sm:$0xff]  }
  0xe6   : > { %6273 = vmatmul.mubr.bf16.gmra.mxu1 %v5374_v49  ;;  %6400 = vmatprep.subr.bf16.mxu0 %v6647_v11  ;;  %v6641_v49 = vld [vmem:[%s6888_s11 + $0x180] ss:$16 sps:$4 sm:$0xff]   ;;  %v2736_v50 = vsel %vm6966_vm2, %v2731_v29, %v7386_v23  ;;  %v2754_v58 = vor.u32 %v2753_v44, %v2749_v43  ;;  %v2805_v22 = vshll.u32 %v2487_v16, 16  ;;  %v2490_v37 = vld [vmem:[%s6888_s11 + $0x298] sm:$0x1]  ;;  %v2813_v39 = vshll.u32 %v2488_v34, 16 }
  0xe7   : > { %6276 = vmatprep.mubr.bf16.mxu1 %v5375_v60  ;;  %6353 = vmatpush3.bf16.msra.mxu1 %v6646_v47  ;;  %v2726_v42 = vsel %vm6966_vm2, %v2721_v32, %v7384_v21  ;;  %v6655_v47 = vld [vmem:[%s8132_s1 + $0x208] sm:$0xff]   ;;  %v2775_v60 = vshrl.u32 %v2483_v52, 16  ;;  %v2745_v62 = vrot.slane %v2744_v51, 4 }
  0xe8   : > { %6354 = vmatprep.subr.bf16.mxu1 %v6650_v1  ;;  %6321 = vmatmul.mubr.bf16.gmra.mxu0 %v6637_v12  ;;  %v2755_v4 = vrot.slane %v2754_v58, 4  ;;  %v5378_v6 = vcombine.low %v2726_v42, %v2736_v50  ;;  %v2486_v12 = vld [vmem:[%s6888_s11 + $0x258] sm:$0xf]  ;;  %v2807_v33 = vrot.slane %v2805_v22, 5  ;;  %v2823_v42 = vshrl.u32 %v2489_v36, 16 }
  0xe9   : > { %6324 = vmatprep.mubr.bf16.mxu0 %v6640_v19  ;;  %6401 = vmatpush3.bf16.msra.mxu0 %v6647_v11  ;;  %v2777_v5 = vrot.slane %v2775_v60, 4  ;;  %v2750_v7 = vsel %vm6966_vm2, %v2745_v62, %v2749_v43  ;;  %v2485_v11 = vld [vmem:[%s6888_s11 + $0x248] sm:$0xf]  ;;  %v2795_v20 = vshll.u32 %v2486_v12, 16  ;;  %v2799_v21 = vshrl.u32 %v2486_v12, 16 }
  0xea   : > { %6402 = vmatprep.subr.bf16.mxu0 %v6651_v53  ;;  %v2760_v9 = vsel %vm6966_vm2, %v2755_v4, %v2759_v45  ;;  %v2786_v17 = vshrl.u32 %v2485_v11, 16  ;;  %v2829_v43 = vshll.u32 %v2490_v37, 16  ;;  %v2815_v50 = vrot.slane %v2813_v39, 5  ;;  %v2491_v63 = vld [vmem:[%s6888_s11 + $0x2a8] sm:$0xf] }
  0xeb   : > { %6355 = vmatpush3.bf16.msra.mxu1 %v6650_v1  ;;  %v6659_v1 = vld [vmem:[%s8132_s1 + $0x200] sm:$0xff]   ;;  %v2778_v10 = vor.u32 %v2777_v5, %v2773_v3  ;;  %v5379_v13 = vcombine.low %v2750_v7, %v2760_v9  ;;  %v2801_v32 = vrot.slane %v2799_v21, 4  ;;  %v2825_v54 = vrot.slane %v2823_v42, 4 }
  0xec   : > { %6356 = vmatprep.subr.bf16.mxu1 %v6654_v18  ;;  %v2788_v27 = vrot.slane %v2786_v17, 4  ;;  %v2831_v55 = vrot.slane %v2829_v43, 5  ;;  %v6649_v4 = vld [vmem:[%s6888_s11 + $0x240] ss:$16 sps:$4 sm:$0xff]   ;;  %v2837_v7 = vshll.u32 %v2491_v63, 16  ;;  %v2843_v9 = vshll.u32 %v2492_v0, 16 }
  0xed   : > { %6403 = vmatpush3.bf16.msra.mxu0 %v6651_v53  ;;  %v2779_v19 = vrot.slane %v2778_v10, 4  ;;  %v2847_v10 = vshrl.u32 %v2492_v0, 16  ;;  %v6656_v0 = vld [vmem:[%s6888_s11 + $0x2d0] ss:$16 sps:$4 sm:$0xff]  }
  0xee   : > { %6277 = vmatmul.mubr.bf16.gmra.mxu1 %v5376_v26  ;;  %6404 = vmatprep.subr.bf16.mxu0 %v6655_v47  ;;  %v2774_v26 = vsel %vm6966_vm2, %v2769_v14, %v2773_v3  ;;  %v6652_v14 = vld [vmem:[%s6888_s11 + $0x270] ss:$16 sps:$4 sm:$0xff]  }
  0xef   : > { %6280 = vmatprep.mubr.bf16.mxu1 %v5377_v15  ;;  %6357 = vmatpush3.bf16.msra.mxu1 %v6654_v18  ;;  %v2789_v18 = vshll.u32 %v2485_v11, 16  ;;  %v2784_v31 = vsel %vm6966_vm2, %v2779_v19, %v2783_v48  ;;  %v2797_v15 = vrot.slane %v2795_v20, 5  ;;  %v2493_v48 = vld [vmem:[%s6888_s11 + $0x2c8] sm:$0x1]  ;;  %v2845_v20 = vrot.slane %v2843_v9, 5 }
  0xf0   : > { %6358 = vmatprep.subr.bf16.mxu1 %v6658_v41  ;;  %6325 = vmatmul.mubr.bf16.gmra.mxu0 %v6641_v49  ;;  %v5380_v46 = vcombine.low %v2774_v26, %v2784_v31  ;;  %v2812_v49 = vrot.slane %v2810_v38, 4  ;;  %v2853_v11 = vshll.u32 %v2493_v48, 16  ;;  %v2849_v21 = vrot.slane %v2847_v10, 4  ;;  %v2495_v31 = vld [vmem:[%s6888_s11 + $0x2e8] sm:$0xf] }
  0xf1   : > { %6328 = vmatprep.mubr.bf16.mxu0 %v6644_v2  ;;  %6405 = vmatpush3.bf16.msra.mxu0 %v6655_v47  ;;  %v2791_v28 = vrot.slane %v2789_v18, 5  ;;  %v2802_v40 = vor.u32 %v2801_v32, %v2797_v15  ;;  %v2839_v18 = vrot.slane %v2837_v7, 5  ;;  %v5538_v48 = vld [vmem:[%s6888_s11 + $0x40] sm:$0xf] }
  0xf2   : > { %6406 = vmatprep.subr.bf16.mxu0 %v6659_v1  ;;  %v2816_v60 = vor.u32 %v2815_v50, %v2812_v49  ;;  %v2855_v22 = vrot.slane %v2853_v11, 5  ;;  %v2850_v34 = vor.u32 %v2849_v21, %v2845_v20 }
  0xf3   : > { %6359 = vmatpush3.bf16.msra.mxu1 %v6658_v41  ;;  %v2792_v29 = vor.u32 %v2791_v28, %v2788_v27  ;;  %v2819_v41 = vshll.u32 %v2489_v36, 16  ;;  %v2803_v51 = vrot.slane %v2802_v40, 4  ;;  %v2871_v36 = vshrl.u32 %v2495_v31, 16 }
  0xf4   : > { %v2817_v5 = vrot.slane %v2816_v60, 4  ;;  %v2851_v43 = vrot.slane %v2850_v34, 4  ;;  %v5542_v34 = vld [vmem:[%s6888_s11 + $0x80] sm:$0x1] }
  0xf5   : > { %6407 = vmatpush3.bf16.msra.mxu0 %v6659_v1  ;;  %v2793_v47 = vrot.slane %v2792_v29, 4  ;;  %v2821_v52 = vrot.slane %v2819_v41, 5  ;;  %v2808_v61 = vsel %vm6966_vm2, %v2803_v51, %v2807_v33  ;;  %v2867_v29 = vshll.u32 %v2495_v31, 16 }
  0xf6   : > { %v7426_v23 = vpop.f32.mrf.mxu0  ;;  %v7428_v24 = vpop.f32.mrf.mxu1  ;;  %6281 = vmatmul.mubr.bf16.gmra.mxu1 %v5378_v6  ;;  %v2834_v6 = vshrl.u32 %v2491_v63, 16 }
  0xf7   : > { %6284 = vmatprep.mubr.bf16.mxu1 %v5379_v13  ;;  %v2798_v59 = vsel %vm6966_vm2, %v2793_v47, %v2797_v15  ;;  %v2826_v62 = vor.u32 %v2825_v54, %v2821_v52  ;;  %v2822_v16 = vsel %vm6966_vm2, %v2817_v5, %v2821_v52  ;;  %v2496_v15 = vld [vmem:[%s6888_s11 + $0x2f8] sm:$0x1]  ;;  %v2873_v47 = vrot.slane %v2871_v36, 4  ;;  %v6653_v52 = vld [vmem:[%s6888_s11 + $0x2a0] ss:$16 sps:$4 sm:$0xff]  }
  0xf8   : > { %v7437_v35 = vpop.f32.mrf.mxu0  ;;  %v7439_v53 = vpop.f32.mrf.mxu1  ;;  %6329 = vmatmul.mubr.bf16.gmra.mxu0 %v6645_v25  ;;  %v5381_v3 = vcombine.low %v2798_v59, %v2808_v61  ;;  %v2836_v17 = vrot.slane %v2834_v6, 4  ;;  %v2494_v25 = vld [vmem:[%s6888_s11 + $0x2d8] sm:$0xf]  ;;  %v2877_v37 = vshll.u32 %v2496_v15, 16  ;;  %v2856_v59 = vsel %vm6966_vm2, %v2851_v43, %v2855_v22  ;;  %v5539_v6 = vld [vmem:[%s6888_s11 + $0x50] sm:$0x1] }
  0xf9   : > { %6332 = vmatprep.mubr.bf16.mxu0 %v6648_v30  ;;  %v2827_v8 = vrot.slane %v2826_v62, 4  ;;  %v2858_v32 = vshrl.u32 %v2494_v25, 16  ;;  %v2861_v33 = vshll.u32 %v2494_v25, 16  ;;  %v5540_v15 = vld [vmem:[%s6888_s11 + $0x60] sm:$0xf] }
  0xfa   : > { %v7443_v44 = vpop.f32.mrf.mxu0  ;;  %v7445_v45 = vpop.f32.mrf.mxu1  ;;  %v2840_v30 = vor.u32 %v2839_v18, %v2836_v17  ;;  %v2879_v49 = vrot.slane %v2877_v37, 5  ;;  %v6660_v18 = vld [vmem:[%s6888_s11 + $0x34] ss:$16 sps:$4 sm:$0xff]  }
  0xfb   : > { %v2832_v19 = vsel %vm6966_vm2, %v2827_v8, %v2831_v55  ;;  %v2860_v41 = vrot.slane %v2858_v32, 4  ;;  %v2863_v42 = vrot.slane %v2861_v33, 5  ;;  %v5541_v33 = vld [vmem:[%s6888_s11 + $0x70] sm:$0xf] }
  0xfc   : > { %v7447_v57 = vpop.f32.mrf.mxu0  ;;  %v7449_v58 = vpop.f32.mrf.mxu1  ;;  %v5382_v28 = vcombine.low %v2822_v16, %v2832_v19  ;;  %v2841_v40 = vrot.slane %v2840_v30, 4  ;;  %v4038_v16 = vshrl.u32 %v5538_v48, 16  ;;  %v4058_v43 = vshll.u32 %v5541_v33, 16 }
  0xfd   : > { %v2864_v55 = vor.u32 %v2863_v42, %v2860_v41  ;;  %v4052_v42 = vshll.u32 %v5540_v15, 16 }
  0xfe   : > { %v7457_v1 = vpop.f32.mrf.mxu0  ;;  %v7459_v2 = vpop.f32.mrf.mxu1  ;;  %6285 = vmatmul.mubr.bf16.gmra.mxu1 %v5380_v46  ;;  %v2869_v46 = vrot.slane %v2867_v29, 5  ;;  %v2846_v54 = vsel %vm6966_vm2, %v2841_v40, %v2845_v20  ;;  %v4044_v20 = vshll.u32 %v5539_v6, 16  ;;  %v4040_v31 = vrot.slane %v4038_v16, 4  ;;  %v5544_v6 = vld [vmem:[%s6888_s11 + $0xa0] sm:$0xf] }
  0xff   : > { %6288 = vmatprep.mubr.bf16.mxu1 %v5381_v3  ;;  %v5383_v63 = vcombine.low %v2846_v54, %v2856_v59  ;;  %v5537_v3 = vld [vmem:[%s6888_s11 + $0x30] sm:$0xf]  ;;  %v4049_v29 = vshrl.u32 %v5540_v15, 16  ;;  %v5546_v15 = vld [vmem:[%s6888_s11 + $0xc0] sm:$0xf] }
 0x100   : > { %v7463_v12 = vpop.f32.mrf.mxu0  ;;  %v7465_v13 = vpop.f32.mrf.mxu1  ;;  %6333 = vmatmul.mubr.bf16.gmra.mxu0 %v6649_v4  ;;  %v2874_v60 = vor.u32 %v2873_v47, %v2869_v46  ;;  %v2865_v4 = vrot.slane %v2864_v55, 4  ;;  %v4025_v7 = vshrl.u32 %v5537_v3, 16  ;;  %v4028_v11 = vshll.u32 %v5537_v3, 16  ;;  %v5543_v3 = vld [vmem:[%s6888_s11 + $0x90] sm:$0xf] }
 0x101   : > { %6336 = vmatprep.mubr.bf16.mxu0 %v6652_v14  ;;  %v4034_v14 = vshll.u32 %v5538_v48, 16  ;;  %v4046_v32 = vrot.slane %v4044_v20, 5  ;;  %v4051_v47 = vrot.slane %v4049_v29, 4 }
 0x102   : > { %v7473_v26 = vpop.f32.mrf.mxu0  ;;  %v7475_v27 = vpop.f32.mrf.mxu1  ;;  %v2875_v5 = vrot.slane %v2874_v60, 4  ;;  %v2870_v10 = vsel %vm6966_vm2, %v2865_v4, %v2869_v46  ;;  %v4027_v19 = vrot.slane %v4025_v7, 4  ;;  %v6657_v46 = vld [vmem:[%s6888_s11 + $0x300] ss:$16 sps:$4 sm:$0xff]   ;;  %v4060_v4 = vrot.slane %v4058_v43, 5 }
 0x103   : > { %v4036_v30 = vrot.slane %v4034_v14, 5  ;;  %v5545_v7 = vld [vmem:[%s6888_s11 + $0xb0] sm:$0x1] }
 0x104   : > { %v7479_v38 = vpop.f32.mrf.mxu0  ;;  %v7481_v39 = vpop.f32.mrf.mxu1  ;;  %v2880_v17 = vsel %vm6966_vm2, %v2875_v5, %v2879_v49  ;;  %v4062_v49 = vshrl.u32 %v5541_v33, 16 }
 0x105   : > { %v5384_v25 = vcombine.low %v2870_v10, %v2880_v17  ;;  %v4041_v41 = vor.u32 %v4040_v31, %v4036_v30  ;;  %v4082_v31 = vshll.u32 %v5544_v6, 16 }
 0x106   : > { %v7483_v50 = vpop.f32.mrf.mxu0  ;;  %v7485_v51 = vpop.f32.mrf.mxu1  ;;  %6289 = vmatmul.mubr.bf16.gmra.mxu1 %v5382_v28  ;;  %v4030_v28 = vrot.slane %v4028_v11, 5  ;;  %v4064_v5 = vrot.slane %v4062_v49, 4  ;;  %v4097_v49 = vshrl.u32 %v5546_v15, 16 }
 0x107   : > { %6292 = vmatprep.mubr.bf16.mxu1 %v5383_v63  ;;  %v4042_v60 = vrot.slane %v4041_v41, 4  ;;  %v6661_v63 = vld [vmem:[%s6888_s11 + $0x64] ss:$16 sps:$4 sm:$0xff]   ;;  %v4092_v41 = vshll.u32 %v5545_v7, 16  ;;  %v4084_v43 = vrot.slane %v4082_v31, 5 }
 0x108   : > { %v7492_v61 = vpop.f32.mrf.mxu0  ;;  %v7494_v62 = vpop.f32.mrf.mxu1  ;;  %6337 = vmatmul.mubr.bf16.gmra.mxu0 %v6653_v52  ;;  %v4031_v40 = vor.u32 %v4030_v28, %v4027_v19  ;;  %v4068_v52 = vshll.u32 %v5542_v34, 16  ;;  %v4065_v20 = vor.u32 %v4064_v5, %v4060_v4  ;;  %v4076_v28 = vshll.u32 %v5543_v3, 16 }
 0x109   : > { %6340 = vmatprep.mubr.bf16.mxu0 %v6656_v0  ;;  %v4054_v0 = vrot.slane %v4052_v42, 5  ;;  %v4047_v16 = vsel %vm6966_vm2, %v4042_v60, %v4046_v32 }
 0x10a   : > { %v7500_v8 = vpop.f32.mrf.mxu0  ;;  %v7502_v9 = vpop.f32.mrf.mxu1  ;;  %v4032_v59 = vrot.slane %v4031_v40, 4  ;;  %v4070_v48 = vrot.slane %v4068_v52, 5  ;;  %v4066_v32 = vrot.slane %v4065_v20, 4  ;;  %v4078_v42 = vrot.slane %v4076_v28, 5  ;;  %v6663_v20 = vld [vmem:[%s6888_s11 + $0xc4] ss:$16 sps:$4 sm:$0xff]  }
 0x10b   : > { %v4055_v17 = vor.u32 %v4054_v0, %v4051_v47  ;;  %v5547_v47 = vld [vmem:[%s6888_s11 + $0xd0] sm:$0xf]  ;;  %v4094_v0 = vrot.slane %v4092_v41, 5 }
 0x10c   : > { %v7509_v21 = vpop.f32.mrf.mxu0  ;;  %v7511_v22 = vpop.f32.mrf.mxu1  ;;  %v4037_v14 = vsel %vm6966_vm2, %v4032_v59, %v4036_v30  ;;  %v4086_v30 = vshrl.u32 %v5544_v6, 16  ;;  %v4071_v6 = vsel %vm6966_vm2, %v4066_v32, %v4070_v48  ;;  %v4110_v48 = vshrl.u32 %v5547_v47, 16 }
 0x10d   : > { %v5601_v19 = vcombine.low %v4037_v14, %v4047_v16  ;;  %v4056_v29 = vrot.slane %v4055_v17, 4  ;;  %v5548_v14 = vld [vmem:[%s6888_s11 + $0xe0] sm:$0x1]  ;;  %v4099_v16 = vrot.slane %v4097_v49, 4 }
 0x10e   : > { %v7516_v36 = vpop.f32.mrf.mxu0  ;;  %v7518_v37 = vpop.f32.mrf.mxu1  ;;  %6293 = vmatmul.mubr.bf16.gmra.mxu1 %v5384_v25  ;;  %v6662_v25 = vld [vmem:[%s6888_s11 + $0x94] ss:$16 sps:$4 sm:$0xff]   ;;  %v4088_v60 = vrot.slane %v4086_v30, 4 }
 0x10f   : > { %6360 = vmatprep.mubr.bf16.mxu1 %v6660_v18  ;;  %v4073_v18 = vshrl.u32 %v5543_v3, 16  ;;  %v4100_v3 = vshll.u32 %v5546_v15, 16 }
 0x110   : > { %v7521_v54 = vpop.f32.mrf.mxu0  ;;  %v7523_v55 = vpop.f32.mrf.mxu1  ;;  %6341 = vmatmul.mubr.bf16.gmra.mxu0 %v6657_v46  ;;  %v4061_v46 = vsel %vm6966_vm2, %v4056_v29, %v4060_v4  ;;  %v4106_v4 = vshll.u32 %v5547_v47, 16  ;;  %v5549_v29 = vld [vmem:[%s6888_s11 + $0xf0] sm:$0xf] }
 0x111   : > { %v4075_v40 = vrot.slane %v4073_v18, 4  ;;  %6408 = vmatprep.mubr.bf16.mxu0 %v5601_v19  ;;  %v5602_v17 = vcombine.low %v4061_v46, %v4071_v6  ;;  %v4102_v28 = vrot.slane %v4100_v3, 5  ;;  %v4112_v46 = vrot.slane %v4110_v48, 4 }
 0x112   : > { %v7529_v10 = vpop.f32.mrf.mxu0  ;;  %v7531_v11 = vpop.f32.mrf.mxu1  ;;  %v4108_v32 = vrot.slane %v4106_v4, 5 }
 0x113   : > { %v4079_v7 = vor.u32 %v4078_v42, %v4075_v40  ;;  %v4103_v41 = vor.u32 %v4102_v28, %v4099_v16  ;;  %v4116_v42 = vshll.u32 %v5548_v14, 16  ;;  %v5551_v14 = vld [vmem:[%s6888_s11 + $0x110] sm:$0x1]  ;;  %v4121_v16 = vshrl.u32 %v5549_v29, 16 }
 0x114   : > { %v7539_v33 = vpop.f32.mrf.mxu0  ;;  %v7541_v34 = vpop.f32.mrf.mxu1 }
 0x115   : > { %v4080_v15 = vrot.slane %v4079_v7, 4  ;;  %v4104_v6 = vrot.slane %v4103_v41, 4  ;;  %v4118_v7 = vrot.slane %v4116_v42, 5 }
 0x116   : > { %v6074_v52 = vpop.f32.mrf.mxu1  ;;  %v6122_v59 = vpop.f32.mrf.mxu0  ;;  %6361 = vmatmul.mubr.bf16.vlgmr.msra.gmra.mxu1 %v6661_v63  ;;  %v4089_v63 = vor.u32 %v4088_v60, %v4084_v43  ;;  %v5550_v60 = vld [vmem:[%s6888_s11 + $0x100] sm:$0xf] }
 0x117   : > { %v802_v5 = vadd.f32 %v6074_v52, %v7426_v23  ;;  %6364 = vmatprep.mubr.bf16.mxu1 %v6662_v25 }
 0x118   : > { %v793_v18 = vpop.f32.mrf.mxu1  ;;  %v1518_v19 = vpop.f32.mrf.mxu0  ;;  %v4090_v30 = vrot.slane %v4089_v63, 4  ;;  %6409 = vmatmul.mubr.bf16.vlgmr.msra.gmra.mxu0 %v5602_v17  ;;  %v5552_v63 = vld [vmem:[%s6888_s11 + $0x120] sm:$0xf]  ;;  %v4109_v17 = vsel %vm6966_vm2, %v4104_v6, %v4108_v32 }
 0x119   : > { %v7551_v31 = vadd.f32 %v6122_v59, %v802_v5  ;;  %v794_v23 = vadd.f32 %v793_v18, %v7437_v35  ;;  %v4085_v59 = vsel %vm6966_vm2, %v4080_v15, %v4084_v43  ;;  %v6664_v35 = vld [vmem:[%s6888_s11 + $0xf4] ss:$16 sps:$4 sm:$0xff]   ;;  %v4113_v43 = vor.u32 %v4112_v46, %v4108_v32  ;;  %v5554_v32 = vld [vmem:[%s6888_s11 + $0x140] sm:$0x1] }
 0x11a   : > { %v6075_v25 = vpop.f32.mrf.mxu1  ;;  %v6123_v40 = vpop.f32.mrf.mxu0  ;;  %v4095_v5 = vsel %vm6966_vm2, %v4090_v30, %v4094_v0  ;;  %v4123_v0 = vrot.slane %v4121_v16, 4  ;;  %v4130_v15 = vshll.u32 %v5550_v60, 16  ;;  %v5553_v30 = vld [vmem:[%s6888_s11 + $0x130] sm:$0xf]  ;;  %v4145_v46 = vshrl.u32 %v5552_v63, 16 }
 0x11b   : > { %v7555_v49 = vadd.f32 %v1518_v19, %v794_v23  ;;  %v805_v52 = vadd.f32 %v6075_v25, %v7443_v44  ;;  %v5603_v19 = vcombine.low %v4085_v59, %v4095_v5  ;;  %v4124_v23 = vshll.u32 %v5549_v29, 16 }
 0x11c   : > { %v796_v47 = vpop.f32.mrf.mxu1  ;;  %v1521_v3 = vpop.f32.mrf.mxu0  ;;  %v4140_v59 = vshll.u32 %v5551_v14, 16 }
 0x11d   : > { %v7565_v18 = vadd.f32 %v6123_v40, %v805_v52  ;;  %v797_v44 = vadd.f32 %v796_v47, %v7447_v57  ;;  %6412 = vmatprep.mubr.bf16.mxu0 %v5603_v19  ;;  %v4114_v57 = vrot.slane %v4113_v43, 4  ;;  %v4134_v40 = vshrl.u32 %v5550_v60, 16 }
 0x11e   : > { %v6078_v28 = vpop.f32.mrf.mxu1  ;;  %v6126_v4 = vpop.f32.mrf.mxu0  ;;  %6365 = vmatmul.mubr.bf16.gmra.mxu1 %v6663_v20  ;;  %v4126_v20 = vrot.slane %v4124_v23, 5  ;;  %v4132_v52 = vrot.slane %v4130_v15, 5  ;;  %v4142_v16 = vrot.slane %v4140_v59, 5  ;;  %v4147_v19 = vrot.slane %v4145_v46, 4  ;;  %v6666_v23 = vld [vmem:[%s6888_s11 + $0x154] ss:$16 sps:$4 sm:$0xff]  }
 0x11f   : > { %v7571_v48 = vadd.f32 %v1521_v3, %v797_v44  ;;  %v818_v25 = vadd.f32 %v6078_v28, %v7457_v1  ;;  %6368 = vmatprep.mubr.bf16.mxu1 %v6664_v35  ;;  %v4119_v47 = vsel %vm6966_vm2, %v4114_v57, %v4118_v7  ;;  %v4136_v3 = vrot.slane %v4134_v40, 4  ;;  %v6665_v44 = vld [vmem:[%s6888_s11 + $0x124] ss:$16 sps:$4 sm:$0xff]  }
 0x120   : > { %v809_v41 = vpop.f32.mrf.mxu1  ;;  %v1534_v42 = vpop.f32.mrf.mxu0  ;;  %v5604_v35 = vcombine.low %v4109_v17, %v4119_v47  ;;  %v4127_v6 = vor.u32 %v4126_v20, %v4123_v0  ;;  %v4154_v17 = vshll.u32 %v5553_v30, 16  ;;  %v4164_v57 = vshll.u32 %v5554_v32, 16  ;;  %v5555_v20 = vld [vmem:[%s6888_s11 + $0x150] sm:$0xf] }
 0x121   : > { %v7576_v29 = vadd.f32 %v6126_v4, %v818_v25  ;;  %v810_v1 = vadd.f32 %v809_v41, %v7463_v12  ;;  %v4137_v28 = vor.u32 %v4136_v3, %v4132_v52  ;;  %v4148_v4 = vshll.u32 %v5552_v63, 16  ;;  %v5556_v3 = vld [vmem:[%s6888_s11 + $0x160] sm:$0xf] }
 0x122   : > { %v6079_v60 = vpop.f32.mrf.mxu1  ;;  %v6127_v5 = vpop.f32.mrf.mxu0  ;;  %6413 = vmatmul.mubr.bf16.gmra.mxu0 %v5604_v35  ;;  %v4128_v12 = vrot.slane %v4127_v6, 4  ;;  %v4158_v25 = vshrl.u32 %v5553_v30, 16  ;;  %v4156_v46 = vrot.slane %v4154_v17, 5  ;;  %v5558_v17 = vld [vmem:[%s6888_s11 + $0x180] sm:$0xf] }
 0x123   : > { %v7582_v43 = vadd.f32 %v1534_v42, %v810_v1  ;;  %v821_v14 = vadd.f32 %v6079_v60, %v7473_v26  ;;  %v4138_v41 = vrot.slane %v4137_v28, 4  ;;  %v4150_v42 = vrot.slane %v4148_v4, 5 }
 0x124   : > { %v812_v7 = vpop.f32.mrf.mxu1  ;;  %v1537_v15 = vpop.f32.mrf.mxu0  ;;  %v4133_v26 = vsel %vm6966_vm2, %v4128_v12, %v4132_v52  ;;  %v4160_v47 = vrot.slane %v4158_v25, 4  ;;  %v4166_v1 = vrot.slane %v4164_v57, 5  ;;  %v4172_v28 = vshll.u32 %v5555_v20, 16 }
 0x125   : > { %v7586_v0 = vadd.f32 %v6127_v5, %v821_v14  ;;  %v813_v40 = vadd.f32 %v812_v7, %v7479_v38  ;;  %v4143_v38 = vsel %vm6966_vm2, %v4138_v41, %v4142_v16  ;;  %v4151_v35 = vor.u32 %v4150_v42, %v4147_v19  ;;  %v6667_v16 = vld [vmem:[%s6888_s11 + $0x184] ss:$16 sps:$4 sm:$0xff]  }
 0x126   : > { %v6082_v63 = vpop.f32.mrf.mxu1  ;;  %v6130_v59 = vpop.f32.mrf.mxu0  ;;  %6369 = vmatmul.mubr.bf16.gmra.mxu1 %v6665_v44  ;;  %v5605_v52 = vcombine.low %v4133_v26, %v4143_v38  ;;  %v4161_v60 = vor.u32 %v4160_v47, %v4156_v46  ;;  %v5557_v44 = vld [vmem:[%s6888_s11 + $0x170] sm:$0x1]  ;;  %v4169_v14 = vshrl.u32 %v5555_v20, 16  ;;  %v4178_v12 = vshll.u32 %v5556_v3, 16  ;;  %v6668_v41 = vld [vmem:[%s6888_s11 + $0x1b4] ss:$16 sps:$4 sm:$0xff]  }
 0x127   : > { %v7593_v30 = vadd.f32 %v1537_v15, %v813_v40  ;;  %v834_v32 = vadd.f32 %v6082_v63, %v7483_v50  ;;  %6372 = vmatprep.mubr.bf16.mxu1 %v6666_v23  ;;  %v4152_v7 = vrot.slane %v4151_v35, 4  ;;  %v4174_v57 = vrot.slane %v4172_v28, 5 }
 0x128   : > { %v825_v5 = vpop.f32.mrf.mxu1  ;;  %v1550_v6 = vpop.f32.mrf.mxu0  ;;  %6416 = vmatprep.mubr.bf16.mxu0 %v5605_v52  ;;  %v4162_v50 = vrot.slane %v4161_v60, 4  ;;  %v4171_v25 = vrot.slane %v4169_v14, 4  ;;  %v4182_v40 = vshrl.u32 %v5556_v3, 16  ;;  %v4180_v26 = vrot.slane %v4178_v12, 5  ;;  %v5559_v52 = vld [vmem:[%s6888_s11 + $0x190] sm:$0xf] }
 0x129   : > { %v7599_v4 = vadd.f32 %v6130_v59, %v834_v32  ;;  %v826_v15 = vadd.f32 %v825_v5, %v7492_v61  ;;  %v4157_v42 = vsel %vm6966_vm2, %v4152_v7, %v4156_v46  ;;  %v4188_v35 = vshll.u32 %v5557_v44, 16  ;;  %v5560_v46 = vld [vmem:[%s6888_s11 + $0x1a0] sm:$0x1] }
 0x12a   : > { %v6083_v19 = vpop.f32.mrf.mxu1  ;;  %v6131_v23 = vpop.f32.mrf.mxu0  ;;  %v4167_v63 = vsel %vm6966_vm2, %v4162_v50, %v4166_v1  ;;  %v4175_v38 = vor.u32 %v4174_v57, %v4171_v25  ;;  %v4184_v32 = vrot.slane %v4182_v40, 4  ;;  %v4196_v1 = vshll.u32 %v5558_v17, 16 }
 0x12b   : > { %v7607_v20 = vadd.f32 %v1550_v6, %v826_v15  ;;  %v837_v61 = vadd.f32 %v6083_v19, %v7500_v8  ;;  %v5606_v3 = vcombine.low %v4157_v42, %v4167_v63  ;;  %v4193_v6 = vshrl.u32 %v5558_v17, 16 }
 0x12c   : > { %v828_v59 = vpop.f32.mrf.mxu1  ;;  %v1553_v47 = vpop.f32.mrf.mxu0  ;;  %v4176_v14 = vrot.slane %v4175_v38, 4  ;;  %v4185_v8 = vor.u32 %v4184_v32, %v4180_v26  ;;  %v4190_v28 = vrot.slane %v4188_v35, 5  ;;  %v4202_v19 = vshll.u32 %v5559_v52, 16 }
 0x12d   : > { %v7613_v60 = vadd.f32 %v6131_v23, %v837_v61  ;;  %v829_v5 = vadd.f32 %v828_v59, %v7509_v21  ;;  %6417 = vmatmul.mubr.bf16.gmra.mxu0 %v5606_v3  ;;  %v4195_v50 = vrot.slane %v4193_v6, 4  ;;  %v5561_v21 = vld [vmem:[%s6888_s11 + $0x1b0] sm:$0xf]  ;;  %v4198_v57 = vrot.slane %v4196_v1, 5  ;;  %v5562_v59 = vld [vmem:[%s6888_s11 + $0x1c0] sm:$0xf] }
 0x12e   : > { %v6086_v7 = vpop.f32.mrf.mxu1  ;;  %v6134_v15 = vpop.f32.mrf.mxu0  ;;  %6373 = vmatmul.mubr.bf16.gmra.mxu1 %v6667_v16  ;;  %v4181_v23 = vsel %vm6966_vm2, %v4176_v14, %v4180_v26  ;;  %v4186_v25 = vrot.slane %v4185_v8, 4  ;;  %v4206_v40 = vshrl.u32 %v5559_v52, 16  ;;  %v4204_v61 = vrot.slane %v4202_v19, 5  ;;  %v6670_v8 = vld [vmem:[%s6888_s11 + $0x214] ss:$16 sps:$4 sm:$0xff]  }
 0x12f   : > { %v7617_v12 = vadd.f32 %v1553_v47, %v829_v5  ;;  %v850_v44 = vadd.f32 %v6086_v7, %v7516_v36  ;;  %6376 = vmatprep.mubr.bf16.mxu1 %v6668_v41  ;;  %v4212_v63 = vshll.u32 %v5560_v46, 16  ;;  %v6669_v47 = vld [vmem:[%s6888_s11 + $0x1e4] ss:$16 sps:$4 sm:$0xff]   ;;  %v4199_v38 = vor.u32 %v4198_v57, %v4195_v50  ;;  %v5563_v46 = vld [vmem:[%s6888_s11 + $0x1d0] sm:$0x1] }
 0x130   : > { %v841_v42 = vpop.f32.mrf.mxu1  ;;  %v1566_v16 = vpop.f32.mrf.mxu0  ;;  %v4191_v41 = vsel %vm6966_vm2, %v4186_v25, %v4190_v28  ;;  %v4208_v26 = vrot.slane %v4206_v40, 4  ;;  %v4217_v52 = vshrl.u32 %v5561_v21, 16  ;;  %v4220_v28 = vshll.u32 %v5561_v21, 16  ;;  %v5564_v57 = vld [vmem:[%s6888_s11 + $0x1e0] sm:$0xf] }
 0x131   : > { %v7623_v17 = vadd.f32 %v6134_v15, %v850_v44  ;;  %v842_v36 = vadd.f32 %v841_v42, %v7521_v54  ;;  %v5607_v3 = vcombine.low %v4181_v23, %v4191_v41  ;;  %v4214_v5 = vrot.slane %v4212_v63, 5 }
 0x132   : > { %v6087_v32 = vpop.f32.mrf.mxu1  ;;  %v6135_v35 = vpop.f32.mrf.mxu0  ;;  %v4200_v54 = vrot.slane %v4199_v38, 4  ;;  %v4209_v7 = vor.u32 %v4208_v26, %v4204_v61  ;;  %v4219_v44 = vrot.slane %v4217_v52, 4  ;;  %v4226_v23 = vshll.u32 %v5562_v59, 16 }
 0x133   : > { %v7630_v6 = vadd.f32 %v1566_v16, %v842_v36  ;;  %v853_v14 = vadd.f32 %v6087_v32, %v7529_v10  ;;  %6420 = vmatprep.mubr.bf16.mxu0 %v5607_v3  ;;  %v4230_v25 = vshrl.u32 %v5562_v59, 16  ;;  %v4222_v42 = vrot.slane %v4220_v28, 5 }
 0x134   : > { %v844_v15 = vpop.f32.mrf.mxu1  ;;  %v1569_v1 = vpop.f32.mrf.mxu0  ;;  %v4205_v10 = vsel %vm6966_vm2, %v4200_v54, %v4204_v61  ;;  %v4210_v40 = vrot.slane %v4209_v7, 4  ;;  %v4236_v16 = vshll.u32 %v5563_v46, 16  ;;  %v4228_v41 = vrot.slane %v4226_v23, 5 }
 0x135   : > { %v7635_v50 = vadd.f32 %v6135_v35, %v853_v14  ;;  %v845_v19 = vadd.f32 %v844_v15, %v7539_v33  ;;  %v4232_v38 = vrot.slane %v4230_v25, 4  ;;  %v5565_v33 = vld [vmem:[%s6888_s11 + $0x1f0] sm:$0xf]  ;;  %v4223_v32 = vor.u32 %v4222_v42, %v4219_v44  ;;  %v5566_v35 = vld [vmem:[%s6888_s11 + $0x200] sm:$0x1] }
 0x136   : > { %v6090_v63 = vpop.f32.mrf.mxu1  ;;  %v6138_v36 = vpop.f32.mrf.mxu0  ;;  %6377 = vmatmul.mubr.bf16.gmra.mxu1 %v6669_v47  ;;  %v4215_v59 = vsel %vm6966_vm2, %v4210_v40, %v4214_v5  ;;  %v4238_v61 = vrot.slane %v4236_v16, 5  ;;  %v4241_v52 = vshrl.u32 %v5564_v57, 16  ;;  %v4244_v7 = vshll.u32 %v5564_v57, 16  ;;  %v5567_v44 = vld [vmem:[%s6888_s11 + $0x210] sm:$0xf] }
 0x137   : > { %v7641_v21 = vadd.f32 %v1569_v1, %v845_v19  ;;  %v866_v26 = vadd.f32 %v6090_v63, %v7428_v24  ;;  %6380 = vmatprep.mubr.bf16.mxu1 %v6670_v8  ;;  %v5608_v47 = vcombine.low %v4205_v10, %v4215_v59  ;;  %v4233_v46 = vor.u32 %v4232_v38, %v4228_v41  ;;  %v6671_v19 = vld [vmem:[%s6888_s11 + $0x244] ss:$16 sps:$4 sm:$0xff]   ;;  %v5569_v59 = vld [vmem:[%s6888_s11 + $0x230] sm:$0x1] }
 0x138   : > { %v857_v3 = vpop.f32.mrf.mxu1  ;;  %v1582_v14 = vpop.f32.mrf.mxu0  ;;  %v4224_v24 = vrot.slane %v4223_v32, 4  ;;  %v4243_v15 = vrot.slane %v4241_v52, 4  ;;  %v4250_v8 = vshll.u32 %v5565_v33, 16  ;;  %v4254_v1 = vshrl.u32 %v5565_v33, 16  ;;  %v6672_v42 = vld [vmem:[%s6888_s11 + $0x274] ss:$16 sps:$4 sm:$0xff]  }
 0x139   : > { %v7648_v54 = vadd.f32 %v6138_v36, %v866_v26  ;;  %6421 = vmatmul.mubr.bf16.gmra.mxu0 %v5608_v47  ;;  %v4234_v23 = vrot.slane %v4233_v46, 4  ;;  %v4246_v25 = vrot.slane %v4244_v7, 5  ;;  %v4260_v40 = vshll.u32 %v5566_v35, 16  ;;  %v5568_v33 = vld [vmem:[%s6888_s11 + $0x220] sm:$0xf] }
 0x13a   : > { %v6091_v28 = vpop.f32.mrf.mxu1  ;;  %v6139_v5 = vpop.f32.mrf.mxu0  ;;  %v858_v10 = vadd.f32 %v857_v3, %v7439_v53  ;;  %v4229_v57 = vsel %vm6966_vm2, %v4224_v24, %v4228_v41  ;;  %v4252_v16 = vrot.slane %v4250_v8, 5  ;;  %v4256_v63 = vrot.slane %v4254_v1, 4 }
 0x13b   : > { %v869_v36 = vadd.f32 %v6091_v28, %v7445_v45  ;;  %v4239_v32 = vsel %vm6966_vm2, %v4234_v23, %v4238_v61  ;;  %v4247_v52 = vor.u32 %v4246_v25, %v4243_v15  ;;  %v4262_v47 = vrot.slane %v4260_v40, 5  ;;  %v5570_v23 = vld [vmem:[%s6888_s11 + $0x240] sm:$0xf] }
 0x13c   : > { %v860_v38 = vpop.f32.mrf.mxu1  ;;  %v1585_v26 = vpop.f32.mrf.mxu0  ;;  %v7661_v35 = vadd.f32 %v1582_v14, %v858_v10  ;;  %v5609_v53 = vcombine.low %v4229_v57, %v4239_v32  ;;  %v4257_v3 = vor.u32 %v4256_v63, %v4252_v16  ;;  %v4265_v24 = vshrl.u32 %v5567_v44, 16  ;;  %v5571_v10 = vld [vmem:[%s6888_s11 + $0x250] sm:$0xf] }
 0x13d   : > { %v7663_v46 = vadd.f32 %v6139_v5, %v869_v36  ;;  %v861_v41 = vadd.f32 %v860_v38, %v7449_v58  ;;  %v4248_v45 = vrot.slane %v4247_v52, 4  ;;  %v4268_v8 = vshll.u32 %v5567_v44, 16  ;;  %v5572_v38 = vld [vmem:[%s6888_s11 + $0x260] sm:$0x1] }
 0x13e   : > { %v6094_v7 = vpop.f32.mrf.mxu1  ;;  %6381 = vmatmul.mubr.bf16.gmra.mxu1 %v6671_v19  ;;  %v4274_v1 = vshll.u32 %v5568_v33, 16  ;;  %6424 = vmatprep.mubr.bf16.mxu0 %v5609_v53  ;;  %v4258_v61 = vrot.slane %v4257_v3, 4  ;;  %v4278_v15 = vshrl.u32 %v5568_v33, 16  ;;  %v4284_v28 = vshll.u32 %v5569_v59, 16  ;;  %v6142_v5 = vpop.f32.mrf.mxu0  ;;  %v6673_v59 = vld [vmem:[%s6888_s11 + $0x2a4] ss:$16 sps:$4 sm:$0xff]  }
 0x13f   : > { %6384 = vmatprep.mubr.bf16.mxu1 %v6672_v42  ;;  %v7666_v14 = vadd.f32 %v1585_v26, %v861_v41  ;;  %v4253_v58 = vsel %vm6966_vm2, %v4248_v45, %v4252_v16  ;;  %v4267_v19 = vrot.slane %v4265_v24, 4  ;;  %v4270_v40 = vrot.slane %v4268_v8, 5  ;;  %v6674_v3 = vld [vmem:[%s6888_s11 + $0x2d4] ss:$16 sps:$4 sm:$0xff]  }
 0x140   : > { %v873_v25 = vpop.f32.mrf.mxu1  ;;  %v4276_v44 = vrot.slane %v4274_v1, 5  ;;  %v4263_v42 = vsel %vm6966_vm2, %v4258_v61, %v4262_v47  ;;  %v4280_v57 = vrot.slane %v4278_v15, 4  ;;  %v4286_v63 = vrot.slane %v4284_v28, 5  ;;  %v1598_v26 = vpop.f32.mrf.mxu0 }
 0x141   : > { %v882_v36 = vadd.f32 %v6094_v7, %v7459_v2  ;;  %v5610_v32 = vcombine.low %v4253_v58, %v4263_v42  ;;  %v4271_v52 = vor.u32 %v4270_v40, %v4267_v19  ;;  %v4289_v53 = vshrl.u32 %v5570_v23, 16  ;;  %v5573_v42 = vld [vmem:[%s6888_s11 + $0x270] sm:$0xf] }
 0x142   : > { %v6095_v33 = vpop.f32.mrf.mxu1  ;;  %v4292_v16 = vshll.u32 %v5570_v23, 16  ;;  %v4281_v41 = vor.u32 %v4280_v57, %v4276_v44  ;;  %v4298_v24 = vshll.u32 %v5571_v10, 16  ;;  %v4302_v8 = vshrl.u32 %v5571_v10, 16  ;;  %v6143_v47 = vpop.f32.mrf.mxu0 }
 0x143   : > { %v7678_v45 = vadd.f32 %v6142_v5, %v882_v36  ;;  %6425 = vmatmul.mubr.bf16.gmra.mxu0 %v5610_v32  ;;  %v4272_v61 = vrot.slane %v4271_v52, 4  ;;  %v4291_v2 = vrot.slane %v4289_v53, 4  ;;  %v4308_v15 = vshll.u32 %v5572_v38, 16  ;;  %v5574_v52 = vld [vmem:[%s6888_s11 + $0x280] sm:$0xf] }
 0x144   : > { %v876_v1 = vpop.f32.mrf.mxu1  ;;  %v4294_v7 = vrot.slane %v4292_v16, 5  ;;  %v4282_v28 = vrot.slane %v4281_v41, 4  ;;  %v4300_v58 = vrot.slane %v4298_v24, 5  ;;  %v4304_v19 = vrot.slane %v4302_v8, 4  ;;  %v1601_v40 = vpop.f32.mrf.mxu0 }
 0x145   : > { %v874_v23 = vadd.f32 %v873_v25, %v7465_v13  ;;  %v4277_v10 = vsel %vm6966_vm2, %v4272_v61, %v4276_v44  ;;  %v4310_v36 = vrot.slane %v4308_v15, 5  ;;  %v885_v32 = vadd.f32 %v6095_v33, %v7475_v27  ;;  %v5576_v27 = vld [vmem:[%s6888_s11 + $0x2a0] sm:$0xf] }
 0x146   : > { %v6098_v5 = vpop.f32.mrf.mxu1  ;;  %6385 = vmatmul.mubr.bf16.gmra.mxu1 %v6673_v59  ;;  %v4295_v57 = vor.u32 %v4294_v7, %v4291_v2  ;;  %v4287_v38 = vsel %vm6966_vm2, %v4282_v28, %v4286_v63  ;;  %v4305_v53 = vor.u32 %v4304_v19, %v4300_v58  ;;  %v877_v25 = vadd.f32 %v876_v1, %v7481_v39  ;;  %v5575_v59 = vld [vmem:[%s6888_s11 + $0x290] sm:$0x1]  ;;  %v6146_v2 = vpop.f32.mrf.mxu0  ;;  %v6675_v7 = vld [vmem:[%s6888_s11 + $0x304] ss:$16 sps:$4 sm:$0xff]  }
 0x147   : > { %6388 = vmatprep.mubr.bf16.mxu1 %v6674_v3  ;;  %v7688_v13 = vadd.f32 %v1598_v26, %v874_v23  ;;  %v5611_v41 = vcombine.low %v4277_v10, %v4287_v38  ;;  %v7692_v24 = vadd.f32 %v6143_v47, %v885_v32  ;;  %v4313_v8 = vshrl.u32 %v5573_v42, 16  ;;  %v5577_v47 = vld [vmem:[%s6888_s11 + $0x2b0] sm:$0xf] }
 0x148   : > { %v889_v16 = vpop.f32.mrf.mxu1  ;;  %v4296_v44 = vrot.slane %v4295_v57, 4  ;;  %v4306_v33 = vrot.slane %v4305_v53, 4  ;;  %v7695_v3 = vadd.f32 %v1601_v40, %v877_v25  ;;  %v4316_v63 = vshll.u32 %v5573_v42, 16  ;;  %v5578_v42 = vld [vmem:[%s6888_s11 + $0x2c0] sm:$0x1]  ;;  %v1614_v57 = vpop.f32.mrf.mxu0 }
 0x149   : > { %v4322_v61 = vshll.u32 %v5574_v52, 16  ;;  %6428 = vmatprep.mubr.bf16.mxu0 %v5611_v41  ;;  %v4315_v1 = vrot.slane %v4313_v8, 4  ;;  %v4326_v15 = vshrl.u32 %v5574_v52, 16  ;;  %v4332_v28 = vshll.u32 %v5575_v59, 16 }
 0x14a   : > { %8140 = vst [vmem:[#allocation9_spill] sm:$0xff] %v7695_v3  ;;  %v6099_v26 = vpop.f32.mrf.mxu1  ;;  %v4301_v39 = vsel %vm6966_vm2, %v4296_v44, %v4300_v58  ;;  %v4311_v19 = vsel %vm6966_vm2, %v4306_v33, %v4310_v36  ;;  %v4318_v23 = vrot.slane %v4316_v63, 5  ;;  %v898_v10 = vadd.f32 %v6098_v5, %v7485_v51  ;;  %v6147_v44 = vpop.f32.mrf.mxu0 }
 0x14b   : > { %v4324_v40 = vrot.slane %v4322_v61, 5  ;;  %v5612_v38 = vcombine.low %v4301_v39, %v4311_v19  ;;  %v4328_v53 = vrot.slane %v4326_v15, 4  ;;  %v4334_v25 = vrot.slane %v4332_v28, 5 }
 0x14c   : > { %v892_v32 = vpop.f32.mrf.mxu1  ;;  %v4337_v41 = vshrl.u32 %v5576_v27, 16  ;;  %v4319_v3 = vor.u32 %v4318_v23, %v4315_v1  ;;  %v7705_v58 = vadd.f32 %v6146_v2, %v898_v10  ;;  %v4340_v52 = vshll.u32 %v5576_v27, 16  ;;  %v1617_v1 = vpop.f32.mrf.mxu0  ;;  %v5579_v2 = vld [vmem:[%s6888_s11 + $0x2d0] sm:$0xf] }
 0x14d   : > { %v4346_v59 = vshll.u32 %v5577_v47, 16  ;;  %6429 = vmatmul.mubr.bf16.gmra.mxu0 %v5612_v38  ;;  %v4329_v36 = vor.u32 %v4328_v53, %v4324_v40  ;;  %v4350_v51 = vshrl.u32 %v5577_v47, 16  ;;  %v4356_v5 = vshll.u32 %v5578_v42, 16  ;;  %v5580_v38 = vld [vmem:[%s6888_s11 + $0x2e0] sm:$0xf] }
 0x14e   : > { %v6102_v8 = vpop.f32.mrf.mxu1  ;;  %6389 = vmatmul.mubr.bf16.gmra.mxu1 %v6675_v7  ;;  %v4339_v33 = vrot.slane %v4337_v41, 4  ;;  %v4320_v63 = vrot.slane %v4319_v3, 4  ;;  %v4342_v61 = vrot.slane %v4340_v52, 5  ;;  %v890_v15 = vadd.f32 %v889_v16, %v7494_v62  ;;  %v5581_v52 = vld [vmem:[%s6888_s11 + $0x2f0] sm:$0x1] }
 0x14f   : > { %v4348_v39 = vrot.slane %v4346_v59, 5  ;;  %v4330_v27 = vrot.slane %v4329_v36, 4  ;;  %v4352_v19 = vrot.slane %v4350_v51, 4  ;;  %v4358_v23 = vrot.slane %v4356_v5, 5 }
 0x150   : > { %v905_v28 = vpop.f32.mrf.mxu1  ;;  %v901_v7 = vadd.f32 %v6099_v26, %v7502_v9  ;;  %v4325_v10 = vsel %vm6966_vm2, %v4320_v63, %v4324_v40  ;;  %v4343_v47 = vor.u32 %v4342_v61, %v4339_v33  ;;  %v7712_v42 = vadd.f32 %v1614_v57, %v890_v15  ;;  %v6150_v57 = vpop.f32.mrf.mxu0  ;;  %v5582_v33 = vld [vmem:[%s6888_s11 + $0x300] sm:$0xf] }
 0x151   : > { %v893_v3 = vadd.f32 %v892_v32, %v7511_v22  ;;  %v4335_v16 = vsel %vm6966_vm2, %v4330_v27, %v4334_v25  ;;  %v4353_v53 = vor.u32 %v4352_v19, %v4348_v39  ;;  %v4361_v59 = vshrl.u32 %v5579_v2, 16  ;;  %v5583_v27 = vld [vmem:[%s6888_s11 + $0x310] sm:$0xf] }
 0x152   : > { %v6103_v62 = vpop.f32.mrf.mxu1  ;;  %v7718_v41 = vadd.f32 %v6147_v44, %v901_v7  ;;  %v5613_v9 = vcombine.low %v4325_v10, %v4335_v16  ;;  %v4344_v26 = vrot.slane %v4343_v47, 4  ;;  %v4364_v36 = vshll.u32 %v5579_v2, 16  ;;  %v5584_v47 = vld [vmem:[%s6888_s11 + $0x320] sm:$0x1]  ;;  %s7955_s11 = sand.u32 1, %s6784_s16  }
 0x153   : > { %v7721_v40 = vadd.f32 %v1617_v1, %v893_v3  ;;  %v4354_v22 = vrot.slane %v4353_v53, 4  ;;  %v4363_v32 = vrot.slane %v4361_v59, 4  ;;  %v4370_v5 = vshll.u32 %v5580_v38, 16  ;;  %v1630_v1 = vpop.f32.mrf.mxu0  ;;  %s5167_s22 = sshll.u32 %s7955_s11, 7  ;;  %s5001_s6 = scalar_lea.sflag [#allocation3], %s7955_s11 }
 0x154   : > { %8141 = vst [vmem:[#allocation10_spill] sm:$0xff] %v7718_v41  ;;  %v908_v51 = vpop.f32.mrf.mxu1  ;;  %v4374_v63 = vshrl.u32 %v5580_v38, 16  ;;  %6432 = vmatprep.mubr.bf16.mxu0 %v5613_v9  ;;  %v4349_v25 = vsel %vm6966_vm2, %v4344_v26, %v4348_v39  ;;  %v4366_v44 = vrot.slane %v4364_v36, 5  ;;  %v4380_v61 = vshll.u32 %v5581_v52, 16  ;;  %s7967_s23 = scalar_lea.vmem [#allocation2], %s5167_s22 }
 0x155   : > { %8142 = vst [vmem:[#allocation11_spill] sm:$0xff] %v7721_v40  ;;  %v914_v15 = vadd.f32 %v6102_v8, %v7518_v37  ;;  %v4359_v2 = vsel %vm6966_vm2, %v4354_v22, %v4358_v23  ;;  %v4372_v7 = vrot.slane %v4370_v5, 5  ;;  %v4385_v3 = vshrl.u32 %v5582_v33, 16  ;;  %v6151_v39 = vpop.f32.mrf.mxu0  ;;  %s5022_s28 = sshll.u32 %s7967_s23, 4  ;;  %s8019_s28 = int_to_ptr.vmem [resolvable:$true] %s5022_s28 }
 0x156   : > { %v6170_v19 = vpop.f32.mrf.mxu1  ;;  %v4376_v10 = vrot.slane %v4374_v63, 4  ;;  %v5614_v16 = vcombine.low %v4349_v25, %v4359_v2  ;;  %v4367_v38 = vor.u32 %v4366_v44, %v4363_v32  ;;  %v4382_v53 = vrot.slane %v4380_v61, 5  ;;  %s6676_s7 = scalar_lea.vmem %s8019_s28, 2048  ;;  %p6683_p0 = scmp.lt.s32.totalorder %s8019_s28, %s6681_s9 }
 0x157   : > { %v7731_v59 = vadd.f32 %v6150_v57, %v914_v15  ;;  %v4387_v26 = vrot.slane %v4385_v3, 4  ;;  %v4388_v37 = vshll.u32 %v5582_v33, 16  ;;  %v4394_v8 = vshll.u32 %v5583_v27, 16  ;;  %v1633_v22 = vpop.f32.mrf.mxu0  ;;  %p6677_p11 = scmp.ne.s32.totalorder %s8019_s28, %s6676_s7  ;;  %p6684_p1 = scmp.lt.s32.totalorder %s6682_s10, %s6676_s7 }
 0x158   : > { %v1904_v9 = vpop.f32.mrf.mxu1  ;;  %v4377_v52 = vor.u32 %v4376_v10, %v4372_v7  ;;  %6433 = vmatmul.mubr.bf16.gmra.mxu0 %v5614_v16  ;;  %v4368_v36 = vrot.slane %v4367_v38, 4  ;;  %v4398_v40 = vshrl.u32 %v5583_v27, 16  ;;  %v4404_v41 = vshll.u32 %v5584_v47, 16 }
 0x159   : > { %v906_v23 = vadd.f32 %v905_v28, %v7523_v55  ;;  %v4390_v25 = vrot.slane %v4388_v37, 5  ;;  %v4396_v32 = vrot.slane %v4394_v8, 5  ;;  %v917_v57 = vadd.f32 %v6103_v62, %v7531_v11  ;;  %v6218_v2 = vpop.f32.mrf.mxu0  ;;  %p6678_p12 = pnand %p6677_p11, %p6864_p5  ;;  %p6685_p2 = por %p6684_p1, %p6683_p0 }
 0x15a   : > { %v6171_v5 = vpop.f32.mrf.mxu1  ;;  %v4378_v63 = vrot.slane %v4377_v52, 4  ;;  %v4373_v44 = vsel %vm6966_vm2, %v4368_v36, %v4372_v7  ;;  %v4400_v61 = vrot.slane %v4398_v40, 4  ;;  %v4406_v15 = vrot.slane %v4404_v41, 5 }
 0x15b   : > { %v7737_v33 = vadd.f32 %v1630_v1, %v906_v23  ;;  %v4391_v55 = vor.u32 %v4390_v25, %v4387_v26  ;;  %v7741_v28 = vadd.f32 %v6151_v39, %v917_v57  ;;  %v909_v47 = vadd.f32 %v908_v51, %v7541_v34  ;;  %v2290_v40 = vpop.f32.mrf.mxu0  ;;  %p6679_p13 = pneg %p6678_p12 }
 0x15c   : > { %v1907_v10 = vpop.f32.mrf.mxu1  ;;  %v4383_v27 = vsel %vm6966_vm2, %v4378_v63, %v4382_v53  ;;  %v4401_v16 = vor.u32 %v4400_v61, %v4396_v32  ;;  %v2033_v11 = vadd.f32 %v6170_v19, %v7551_v31  ;;  %v2031_v62 = vadd.f32 %v1904_v9, %v7555_v49 }
 0x15d   : > { %v5615_v3 = vcombine.low %v4373_v44, %v4383_v27  ;;  %v4392_v1 = vrot.slane %v4391_v55, 4  ;;  %v7746_v7 = vadd.f32 %v1633_v22, %v909_v47  ;;  %v2034_v38 = vadd.f32 %v6171_v5, %v7565_v18  ;;  %v6219_v51 = vpop.f32.mrf.mxu0  ;;  %p6686_p3 = pnand %p6685_p2, %p6679_p13 }
 0x15e   : > { %v6174_v41 = vpop.f32.mrf.mxu1  ;;  %v2032_v53 = vadd.f32 %v1907_v10, %v7571_v48  ;;  %v4402_v39 = vrot.slane %v4401_v16, 4  ;;  %v7750_v52 = vadd.f32 %v6218_v2, %v2033_v11  ;;  %v7752_v34 = vadd.f32 %v2290_v40, %v2031_v62 }
 0x15f   : > { %6436 = vmatprep.mubr.bf16.mxu0 %v5615_v3  ;;  %v2037_v31 = vadd.f32 %v6174_v41, %v7576_v29  ;;  %v4397_v49 = vsel %vm6966_vm2, %v4392_v1, %v4396_v32  ;;  %v7757_v9 = vadd.f32 %v6219_v51, %v2034_v38  ;;  %v2293_v48 = vpop.f32.mrf.mxu0 }
 0x160   : > { %v1920_v19 = vpop.f32.mrf.mxu1  ;;  %v4407_v18 = vsel %vm6966_vm2, %v4402_v39, %v4406_v15  ;;  %v7762_v36 = vadd.f32 %v2293_v48, %v2032_v53 }
 0x161   : > { %v2035_v26 = vadd.f32 %v1920_v19, %v7582_v43  ;;  %v5616_v8 = vcombine.low %v4397_v49, %v4407_v18  ;;  %v6222_v22 = vpop.f32.mrf.mxu0 }
 0x162   : > { %v6175_v37 = vpop.f32.mrf.mxu1  ;;  %v7765_v5 = vadd.f32 %v6222_v22, %v2037_v31 }
 0x163   : > { %v2038_v23 = vadd.f32 %v6175_v37, %v7586_v0  ;;  %6437 = vmatmul.mubr.bf16.gmra.mxu0 %v5616_v8  ;;  %v2306_v25 = vpop.f32.mrf.mxu0 }
 0x164   : > { %v1923_v29 = vpop.f32.mrf.mxu1  ;;  %v7768_v43 = vadd.f32 %v2306_v25, %v2035_v26 }
 0x165   : > { %v2036_v63 = vadd.f32 %v1923_v29, %v7593_v30  ;;  %v6223_v57 = vpop.f32.mrf.mxu0 }
 0x166   : > { %v6178_v32 = vpop.f32.mrf.mxu1  ;;  %v7771_v61 = vadd.f32 %v6223_v57, %v2038_v23 }
 0x167   : > { %v2041_v56 = vadd.f32 %v6178_v32, %v7599_v4  ;;  %v2309_v0 = vpop.f32.mrf.mxu0 }
 0x168   : > { %v1936_v44 = vpop.f32.mrf.mxu1  ;;  %v7774_v10 = vadd.f32 %v2309_v0, %v2036_v63 }
 0x169   : > { %v2039_v15 = vadd.f32 %v1936_v44, %v7607_v20  ;;  %v6226_v55 = vpop.f32.mrf.mxu0 }
 0x16a   : > { %v6179_v2 = vpop.f32.mrf.mxu1  ;;  %v7777_v47 = vadd.f32 %v6226_v55, %v2041_v56 }
 0x16b   : > { %v2042_v27 = vadd.f32 %v6179_v2, %v7613_v60  ;;  %v2322_v16 = vpop.f32.mrf.mxu0 }
 0x16c   : > { %v1939_v30 = vpop.f32.mrf.mxu1  ;;  %v7780_v11 = vadd.f32 %v2322_v16, %v2039_v15 }
 0x16d   : > { %v2040_v3 = vadd.f32 %v1939_v30, %v7617_v12  ;;  %v6227_v40 = vpop.f32.mrf.mxu0 }
 0x16e   : > { %v6182_v4 = vpop.f32.mrf.mxu1  ;;  %v7783_v41 = vadd.f32 %v6227_v40, %v2042_v27 }
 0x16f   : > { %v2045_v62 = vadd.f32 %v6182_v4, %v7623_v17  ;;  %v2325_v38 = vpop.f32.mrf.mxu0  ;;  %v8143_v4 = vld [vmem:[#allocation9_spill] sm:$0xff] }
 0x170   : > { %v1952_v20 = vpop.f32.mrf.mxu1  ;;  %v7786_v53 = vadd.f32 %v2325_v38, %v2040_v3 }
 0x171   : > { %v2043_v1 = vadd.f32 %v1952_v20, %v7630_v6  ;;  %v6230_v51 = vpop.f32.mrf.mxu0 }
 0x172   : > { %v6183_v60 = vpop.f32.mrf.mxu1  ;;  %v7789_v31 = vadd.f32 %v6230_v51, %v2045_v62 }
 0x173   : > { %v2046_v39 = vadd.f32 %v6183_v60, %v7635_v50  ;;  %v2338_v49 = vpop.f32.mrf.mxu0 }
 0x174   : > { %v1955_v12 = vpop.f32.mrf.mxu1  ;;  %v7792_v26 = vadd.f32 %v2338_v49, %v2043_v1 }
 0x175   : > { %v2044_v19 = vadd.f32 %v1955_v12, %v7641_v21  ;;  %v6231_v48 = vpop.f32.mrf.mxu0 }
 0x176   : > { %v6186_v17 = vpop.f32.mrf.mxu1  ;;  %v7795_v37 = vadd.f32 %v6231_v48, %v2046_v39 }
 0x177   : > { %v2049_v18 = vadd.f32 %v6186_v17, %v7648_v54  ;;  %v2341_v23 = vpop.f32.mrf.mxu0 }
 0x178   : > { %v1968_v6 = vpop.f32.mrf.mxu1  ;;  %v7798_v22 = vadd.f32 %v2341_v23, %v2044_v19  ;;  %v8144_v19 = vld [vmem:[#allocation10_spill] sm:$0xff] }
 0x179   : > { %v2047_v8 = vadd.f32 %v1968_v6, %v7661_v35  ;;  %v6234_v63 = vpop.f32.mrf.mxu0  ;;  %v8145_v6 = vld [vmem:[#allocation11_spill] sm:$0xff] }
 0x17a   : > { %v6187_v50 = vpop.f32.mrf.mxu1  ;;  %v7801_v25 = vadd.f32 %v6234_v63, %v2049_v18 }
 0x17b   : > { %v2050_v29 = vadd.f32 %v6187_v50, %v7663_v46  ;;  %v2354_v56 = vpop.f32.mrf.mxu0 }
 0x17c   : > { %v1971_v21 = vpop.f32.mrf.mxu1  ;;  %v7804_v57 = vadd.f32 %v2354_v56, %v2047_v8 }
 0x17d   : > { %v2048_v32 = vadd.f32 %v1971_v21, %v7666_v14  ;;  %v6235_v15 = vpop.f32.mrf.mxu0 }
 0x17e   : > { %v6190_v54 = vpop.f32.mrf.mxu1  ;;  %v7807_v0 = vadd.f32 %v6235_v15, %v2050_v29 }
 0x17f   : > { %v2053_v44 = vadd.f32 %v6190_v54, %v7678_v45  ;;  %v2357_v27 = vpop.f32.mrf.mxu0 }
 0x180   : > { %v1984_v35 = vpop.f32.mrf.mxu1  ;;  %v7810_v55 = vadd.f32 %v2357_v27, %v2048_v32 }
 0x181   : > { %v2051_v2 = vadd.f32 %v1984_v35, %v7688_v13  ;;  %v6238_v3 = vpop.f32.mrf.mxu0 }
 0x182   : > { %v6191_v46 = vpop.f32.mrf.mxu1  ;;  %v7813_v16 = vadd.f32 %v6238_v3, %v2053_v44 }
 0x183   : > { %v2054_v30 = vadd.f32 %v6191_v46, %v7692_v24  ;;  %v2370_v40 = vpop.f32.mrf.mxu0 }
 0x184   : > { %v1987_v14 = vpop.f32.mrf.mxu1  ;;  %v7816_v20 = vadd.f32 %v2370_v40, %v2051_v2 }
 0x185   : > { %v2052_v62 = vadd.f32 %v1987_v14, %v8143_v4  ;;  %v6239_v38 = vpop.f32.mrf.mxu0 }
 0x186   : > { %v6194_v45 = vpop.f32.mrf.mxu1  ;;  %v7819_v60 = vadd.f32 %v6239_v38, %v2054_v30 }
 0x187   : > { %v2057_v1 = vadd.f32 %v6194_v45, %v7705_v58  ;;  %v2373_v51 = vpop.f32.mrf.mxu0 }
 0x188   : > { %v2000_v13 = vpop.f32.mrf.mxu1  ;;  %v7822_v12 = vadd.f32 %v2373_v51, %v2052_v62 }
 0x189   : > { %v2055_v39 = vadd.f32 %v2000_v13, %v7712_v42  ;;  %v6242_v17 = vpop.f32.mrf.mxu0 }
 0x18a   : > { %v6195_v24 = vpop.f32.mrf.mxu1  ;;  %v7825_v48 = vadd.f32 %v6242_v17, %v2057_v1 }
 0x18b   : > { %v2058_v49 = vadd.f32 %v6195_v24, %v8144_v19  ;;  %v2386_v23 = vpop.f32.mrf.mxu0 }
 0x18c   : > { %v2003_v18 = vpop.f32.mrf.mxu1  ;;  %v7828_v50 = vadd.f32 %v2386_v23, %v2055_v39 }
 0x18d   : > { %v2056_v8 = vadd.f32 %v2003_v18, %v8145_v6  ;;  %v6243_v63 = vpop.f32.mrf.mxu0 }
 0x18e   : > { %v6198_v58 = vpop.f32.mrf.mxu1  ;;  %v7831_v21 = vadd.f32 %v6243_v63, %v2058_v49 }
 0x18f   : > { %v2061_v29 = vadd.f32 %v6198_v58, %v7731_v59  ;;  %v2389_v56 = vpop.f32.mrf.mxu0 }
 0x190   : > { %v2016_v42 = vpop.f32.mrf.mxu1  ;;  %v7834_v44 = vadd.f32 %v2389_v56, %v2056_v8 }
 0x191   : > { %v2059_v32 = vadd.f32 %v2016_v42, %v7737_v33  ;;  %v6246_v35 = vpop.f32.mrf.mxu0 }
 0x192   : > { %v6199_v54 = vpop.f32.mrf.mxu1  ;;  %v7837_v27 = vadd.f32 %v6246_v35, %v2061_v29 }
 0x193   : > { %v2062_v15 = vadd.f32 %v6199_v54, %v7741_v28  ;;  %v2402_v30 = vpop.f32.mrf.mxu0 }
 0x194   : > { %v2019_v2 = vpop.f32.mrf.mxu1  ;;  %v7840_v3 = vadd.f32 %v2402_v30, %v2059_v32 }
 0x195   : > { %v2060_v46 = vadd.f32 %v2019_v2, %v7746_v7  ;;  %v6247_v4 = vpop.f32.mrf.mxu0 }
 0x196   : > { %v6266_v59 = vpop.f32.mrf.mxu1  ;;  %v7843_v62 = vadd.f32 %v6247_v4, %v2062_v15 }
 0x197   : > { %v3173_v14 = vadd.f32 %v6266_v59, %v7750_v52  ;;  %v2405_v45 = vpop.f32.mrf.mxu0 }
 0x198   : > { %v3044_v33 = vpop.f32.mrf.mxu1  ;;  %v7848_v1 = vadd.f32 %v2405_v45, %v2060_v46 }
 0x199   : > { %v3171_v40 = vadd.f32 %v3044_v33, %v7752_v34  ;;  %v6314_v38 = vpop.f32.mrf.mxu0 }
 0x19a   : > { %v7846_v28 = vpop.f32.mrf.mxu1  ;;  %v7852_v7 = vadd.f32 %v6314_v38, %v3173_v14 }
 0x19b   : > { %v3431_v39 = vpop.f32.mrf.mxu0 }
 0x19c   : > { %v7850_v13 = vpop.f32.mrf.mxu1  ;;  %v7854_v24 = vadd.f32 %v3431_v39, %v3171_v40 }
 0x19d   : > { %v7857_v19 = vpop.f32.mrf.mxu0 }
 0x19e   : > { %v6270_v51 = vpop.f32.mrf.mxu1 }
 0x19f   : > { %v3177_v52 = vadd.f32 %v6270_v51, %v7765_v5  ;;  %v7860_v17 = vpop.f32.mrf.mxu0 }
 0x1a0   : > { %v3060_v49 = vpop.f32.mrf.mxu1 }
 0x1a1   : > { %v3175_v34 = vadd.f32 %v3060_v49, %v7768_v43  ;;  %v6318_v6 = vpop.f32.mrf.mxu0 }
 0x1a2   : > { %v7862_v18 = vpop.f32.mrf.mxu1  ;;  %v7866_v23 = vadd.f32 %v6318_v6, %v3177_v52 }
 0x1a3   : > { %v3447_v58 = vpop.f32.mrf.mxu0 }
 0x1a4   : > { %v7864_v8 = vpop.f32.mrf.mxu1  ;;  %v7868_v63 = vadd.f32 %v3447_v58, %v3175_v34 }
 0x1a5   : > { %v7871_v42 = vpop.f32.mrf.mxu0 }
 0x1a6   : > { %v6274_v29 = vpop.f32.mrf.mxu1 }
 0x1a7   : > { %v3181_v5 = vadd.f32 %v6274_v29, %v7777_v47  ;;  %v7874_v56 = vpop.f32.mrf.mxu0 }
 0x1a8   : > { %v3076_v32 = vpop.f32.mrf.mxu1 }
 0x1a9   : > { %v3179_v43 = vadd.f32 %v3076_v32, %v7780_v11  ;;  %v6322_v15 = vpop.f32.mrf.mxu0 }
 0x1aa   : > { %v7876_v54 = vpop.f32.mrf.mxu1  ;;  %v7880_v2 = vadd.f32 %v6322_v15, %v3181_v5 }
 0x1ab   : > { %v3463_v46 = vpop.f32.mrf.mxu0 }
 0x1ac   : > { %v7878_v35 = vpop.f32.mrf.mxu1  ;;  %v7882_v59 = vadd.f32 %v3463_v46, %v3179_v43 }
 0x1ad   : > { %v7885_v14 = vpop.f32.mrf.mxu0 }
 0x1ae   : > { %v6278_v30 = vpop.f32.mrf.mxu1 }
 0x1af   : > { %v3185_v47 = vadd.f32 %v6278_v30, %v7789_v31  ;;  %v7888_v33 = vpop.f32.mrf.mxu0 }
 0x1b0   : > { %v3092_v4 = vpop.f32.mrf.mxu1 }
 0x1b1   : > { %v3183_v11 = vadd.f32 %v3092_v4, %v7792_v26  ;;  %v6326_v38 = vpop.f32.mrf.mxu0 }
 0x1b2   : > { %v6279_v40 = vpop.f32.mrf.mxu1  ;;  %v7891_v51 = vadd.f32 %v6326_v38, %v3185_v47 }
 0x1b3   : > { %v3186_v45 = vadd.f32 %v6279_v40, %v7795_v37  ;;  %v3479_v49 = vpop.f32.mrf.mxu0 }
 0x1b4   : > { %v3095_v39 = vpop.f32.mrf.mxu1  ;;  %v7894_v6 = vadd.f32 %v3479_v49, %v3183_v11 }
 0x1b5   : > { %v3184_v52 = vadd.f32 %v3095_v39, %v7798_v22  ;;  %v6327_v58 = vpop.f32.mrf.mxu0 }
 0x1b6   : > { %v6282_v34 = vpop.f32.mrf.mxu1  ;;  %v7897_v26 = vadd.f32 %v6327_v58, %v3186_v45 }
 0x1b7   : > { %v3189_v31 = vadd.f32 %v6282_v34, %v7801_v25  ;;  %v3482_v32 = vpop.f32.mrf.mxu0 }
 0x1b8   : > { %v3108_v29 = vpop.f32.mrf.mxu1  ;;  %v7900_v43 = vadd.f32 %v3482_v32, %v3184_v52 }
 0x1b9   : > { %v3187_v5 = vadd.f32 %v3108_v29, %v7804_v57  ;;  %v6330_v46 = vpop.f32.mrf.mxu0 }
 0x1ba   : > { %v6283_v37 = vpop.f32.mrf.mxu1  ;;  %v7903_v30 = vadd.f32 %v6330_v46, %v3189_v31 }
 0x1bb   : > { %v3190_v15 = vadd.f32 %v6283_v37, %v7807_v0  ;;  %v3495_v4 = vpop.f32.mrf.mxu0 }
 0x1bc   : > { %v3111_v22 = vpop.f32.mrf.mxu1  ;;  %v7906_v11 = vadd.f32 %v3495_v4, %v3187_v5 }
 0x1bd   : > { %v3188_v47 = vadd.f32 %v3111_v22, %v7810_v55  ;;  %v6331_v45 = vpop.f32.mrf.mxu0 }
 0x1be   : > { %v6286_v25 = vpop.f32.mrf.mxu1  ;;  %v7909_v38 = vadd.f32 %v6331_v45, %v3190_v15 }
 0x1bf   : > { %v3193_v40 = vadd.f32 %v6286_v25, %v7813_v16  ;;  %v3498_v52 = vpop.f32.mrf.mxu0 }
 0x1c0   : > { %v3124_v57 = vpop.f32.mrf.mxu1  ;;  %v7912_v49 = vadd.f32 %v3498_v52, %v3188_v47 }
 0x1c1   : > { %v3191_v39 = vadd.f32 %v3124_v57, %v7816_v20  ;;  %v6334_v31 = vpop.f32.mrf.mxu0 }
 0x1c2   : > { %v6287_v0 = vpop.f32.mrf.mxu1  ;;  %v7915_v58 = vadd.f32 %v6334_v31, %v3193_v40 }
 0x1c3   : > { %v3194_v34 = vadd.f32 %v6287_v0, %v7819_v60  ;;  %v3511_v5 = vpop.f32.mrf.mxu0 }
 0x1c4   : > { %v3127_v55 = vpop.f32.mrf.mxu1  ;;  %v7918_v32 = vadd.f32 %v3511_v5, %v3191_v39 }
 0x1c5   : > { %v3192_v29 = vadd.f32 %v3127_v55, %v7822_v12  ;;  %v6335_v15 = vpop.f32.mrf.mxu0 }
 0x1c6   : > { %v6290_v16 = vpop.f32.mrf.mxu1  ;;  %v7921_v46 = vadd.f32 %v6335_v15, %v3194_v34 }
 0x1c7   : > { %v3197_v37 = vadd.f32 %v6290_v16, %v7825_v48  ;;  %v3514_v47 = vpop.f32.mrf.mxu0 }
 0x1c8   : > { %v3140_v20 = vpop.f32.mrf.mxu1  ;;  %v7924_v4 = vadd.f32 %v3514_v47, %v3192_v29  ;;  %v3174_v47 = vadd.f32 %v7846_v28, %v7757_v9 }
 0x1c9   : > { %v3195_v22 = vadd.f32 %v3140_v20, %v7828_v50  ;;  %v6338_v40 = vpop.f32.mrf.mxu0 }
 0x1ca   : > { %v6291_v60 = vpop.f32.mrf.mxu1  ;;  %v7927_v45 = vadd.f32 %v6338_v40, %v3197_v37  ;;  %v3172_v40 = vadd.f32 %v7850_v13, %v7762_v36 }
 0x1cb   : > { %v3198_v25 = vadd.f32 %v6291_v60, %v7831_v21  ;;  %v3527_v39 = vpop.f32.mrf.mxu0 }
 0x1cc   : > { %v3143_v12 = vpop.f32.mrf.mxu1  ;;  %v7930_v52 = vadd.f32 %v3527_v39, %v3195_v22  ;;  %v3561_v39 = vadd.f32 %v7857_v19, %v3174_v47  ;;  %v3559_v28 = vadd.f32 %v7860_v17, %v3172_v40 }
 0x1cd   : > { %v3196_v57 = vadd.f32 %v3143_v12, %v7834_v44  ;;  %v6339_v34 = vpop.f32.mrf.mxu0 }
 0x1ce   : > { %v6294_v48 = vpop.f32.mrf.mxu1  ;;  %v7933_v31 = vadd.f32 %v6339_v34, %v3198_v25 }
 0x1cf   : > { %v3201_v0 = vadd.f32 %v6294_v48, %v7837_v27  ;;  %v3530_v29 = vpop.f32.mrf.mxu0 }
 0x1d0   : > { %v3156_v50 = vpop.f32.mrf.mxu1  ;;  %v7936_v5 = vadd.f32 %v3530_v29, %v3196_v57 }
 0x1d1   : > { %v3199_v55 = vadd.f32 %v3156_v50, %v7840_v3  ;;  %v6342_v37 = vpop.f32.mrf.mxu0 }
 0x1d2   : > { %v6295_v21 = vpop.f32.mrf.mxu1  ;;  %v7939_v15 = vadd.f32 %v6342_v37, %v3201_v0 }
 0x1d3   : > { %v3202_v16 = vadd.f32 %v6295_v21, %v7843_v62  ;;  %v3543_v27 = vpop.f32.mrf.mxu0 }
 0x1d4   : > { %v3159_v44 = vpop.f32.mrf.mxu1  ;;  %v7944_v60 = vadd.f32 %v3543_v27, %v3199_v55  ;;  %v3178_v55 = vadd.f32 %v7862_v18, %v7771_v61 }
 0x1d5   : > { %v3200_v20 = vadd.f32 %v3159_v44, %v7848_v1  ;;  %v6343_v3 = vpop.f32.mrf.mxu0  ;;  %v3176_v44 = vadd.f32 %v7864_v8, %v7774_v10 }
 0x1d6   : > { %v6362_v22 = vpop.f32.mrf.mxu1  ;;  %v7948_v62 = vadd.f32 %v6343_v3, %v3202_v16 }
 0x1d7   : > { %v3546_v12 = vpop.f32.mrf.mxu0  ;;  %v3946_v34 = vadd.f32 %v6362_v22, %v7852_v7  ;;  %v3565_v7 = vadd.f32 %v7871_v42, %v3178_v55  ;;  %v3563_v42 = vadd.f32 %v7874_v56, %v3176_v44  ;;  %v3180_v56 = vadd.f32 %v7878_v35, %v7786_v53 }
 0x1d8   : > { %v3817_v25 = vpop.f32.mrf.mxu1  ;;  %v7951_v48 = vadd.f32 %v3546_v12, %v3200_v20 }
 0x1d9   : > { %v6410_v1 = vpop.f32.mrf.mxu0  ;;  %v3944_v0 = vadd.f32 %v3817_v25, %v7854_v24  ;;  %v3567_v53 = vadd.f32 %v7888_v33, %v3180_v56 }
 0x1da   : > { %v6363_v57 = vpop.f32.mrf.mxu1  ;;  %v4700_v24 = vadd.f32 %v6410_v1, %v3946_v34 }
 0x1db   : > { %v3947_v36 = vadd.f32 %v6363_v57, %v3561_v39  ;;  %v4571_v13 = vpop.f32.mrf.mxu0 }
 0x1dc   : > { %v3820_v9 = vpop.f32.mrf.mxu1  ;;  %v4698_v29 = vadd.f32 %v4571_v13, %v3944_v0  ;;  %v4930_v1 = vmul.f32 %v4700_v24, %v4700_v24 }
 0x1dd   : > { %v3945_v19 = vadd.f32 %v3820_v9, %v3559_v28  ;;  %v6411_v21 = vpop.f32.mrf.mxu0  ;;  %v3182_v9 = vadd.f32 %v7876_v54, %v7783_v41 }
 0x1de   : > { %v6366_v50 = vpop.f32.mrf.mxu1  ;;  %v4701_v37 = vadd.f32 %v6411_v21, %v3947_v36  ;;  %v4928_v3 = vmul.f32 %v4698_v29, %v4698_v29 }
 0x1df   : > { %v4574_v20 = vpop.f32.mrf.mxu0  ;;  %v3950_v61 = vadd.f32 %v6366_v50, %v7866_v23 }
 0x1e0   : > { %v3833_v16 = vpop.f32.mrf.mxu1  ;;  %v5705_v27 = vpack.c.bf16 %v4701_v37, %v4700_v24  ;;  %v4699_v22 = vadd.f32 %v4574_v20, %v3945_v19  ;;  %v4931_v28 = vmul.f32 %v4701_v37, %v4701_v37 }
 0x1e1   : > { %v3948_v47 = vadd.f32 %v3833_v16, %v7868_v63 }
 0x1e2   : > { %v6367_v17 = vpop.f32.mrf.mxu1  ;;  %v6414_v18 = vpop.f32.mrf.mxu0  ;;  %5777 = vst [vmem:[%s7967_s23 + $0x8] sm:$0xff] %v5705_v27   ;;  %v5700_v40 = vpack.c.bf16 %v4699_v22, %v4698_v29  ;;  %v4890_v10 = vadd.f32 %v4699_v22, %v4698_v29  ;;  %v4929_v8 = vmul.f32 %v4699_v22, %v4699_v22 }
 0x1e3   : > { %v3951_v12 = vadd.f32 %v6367_v17, %v3565_v7  ;;  %v4704_v55 = vadd.f32 %v6414_v18, %v3950_v61  ;;  %v3569_v7 = vadd.f32 %v7885_v14, %v3182_v9 }
 0x1e4   : > { %v3836_v25 = vpop.f32.mrf.mxu1  ;;  %v4587_v57 = vpop.f32.mrf.mxu0  ;;  %5701 = vst [vmem:[%s7967_s23] sm:$0xff] %v5700_v40   ;;  %v4891_v63 = vadd.f32 %v4890_v10, %v4700_v24  ;;  %v4960_v0 = vadd.f32 %v4929_v8, %v4928_v3 }
 0x1e5   : > { %v4702_v23 = vadd.f32 %v4587_v57, %v3948_v47  ;;  %v3949_v36 = vadd.f32 %v3836_v25, %v3563_v42  ;;  %v4934_v25 = vmul.f32 %v4704_v55, %v4704_v55 }
 0x1e6   : > { %v6370_v39 = vpop.f32.mrf.mxu1  ;;  %v6415_v34 = vpop.f32.mrf.mxu0  ;;  %v4961_v50 = vadd.f32 %v4960_v0, %v4930_v1  ;;  %v4892_v19 = vadd.f32 %v4891_v63, %v4701_v37 }
 0x1e7   : > { %v4705_v29 = vadd.f32 %v6415_v34, %v3951_v12  ;;  %v4932_v24 = vmul.f32 %v4702_v23, %v4702_v23  ;;  %v3954_v35 = vadd.f32 %v6370_v39, %v7880_v2 }
 0x1e8   : > { %v3849_v13 = vpop.f32.mrf.mxu1  ;;  %v4893_v16 = vadd.f32 %v4892_v19, %v4702_v23  ;;  %v4962_v44 = vadd.f32 %v4961_v50, %v4931_v28  ;;  %v4590_v17 = vpop.f32.mrf.mxu0 }
 0x1e9   : > { %v5715_v20 = vpack.c.bf16 %v4705_v29, %v4704_v55  ;;  %v4703_v41 = vadd.f32 %v4590_v17, %v3949_v36  ;;  %v3952_v3 = vadd.f32 %v3849_v13, %v7882_v59  ;;  %v4935_v14 = vmul.f32 %v4705_v29, %v4705_v29 }
 0x1ea   : > { %v6371_v21 = vpop.f32.mrf.mxu1  ;;  %v4963_v27 = vadd.f32 %v4962_v44, %v4932_v24 }
 0x1eb   : > { %5779 = vst [vmem:[%s7967_s23 + $0x18] sm:$0xff] %v5715_v20   ;;  %v5710_v22 = vpack.c.bf16 %v4703_v41, %v4702_v23  ;;  %v4894_v47 = vadd.f32 %v4893_v16, %v4703_v41  ;;  %v4933_v37 = vmul.f32 %v4703_v41, %v4703_v41  ;;  %v3955_v8 = vadd.f32 %v6371_v21, %v3569_v7 }
 0x1ec   : > { %v3852_v54 = vpop.f32.mrf.mxu1 }
 0x1ed   : > { %v6418_v18 = vpop.f32.mrf.mxu0  ;;  %5778 = vst [vmem:[%s7967_s23 + $0x10] sm:$0xff] %v5710_v22   ;;  %v4895_v40 = vadd.f32 %v4894_v47, %v4704_v55  ;;  %v4964_v10 = vadd.f32 %v4963_v27, %v4933_v37  ;;  %v3953_v0 = vadd.f32 %v3852_v54, %v3567_v53 }
 0x1ee   : > { %v6374_v61 = vpop.f32.mrf.mxu1  ;;  %v4708_v23 = vadd.f32 %v6418_v18, %v3954_v35 }
 0x1ef   : > { %v4603_v42 = vpop.f32.mrf.mxu0  ;;  %v4965_v57 = vadd.f32 %v4964_v10, %v4934_v25  ;;  %v4896_v63 = vadd.f32 %v4895_v40, %v4705_v29  ;;  %v3958_v54 = vadd.f32 %v6374_v61, %v7891_v51 }
 0x1f0   : > { %v3865_v12 = vpop.f32.mrf.mxu1  ;;  %v4706_v1 = vadd.f32 %v4603_v42, %v3952_v3  ;;  %v4938_v24 = vmul.f32 %v4708_v23, %v4708_v23 }
 0x1f1   : > { %v6419_v9 = vpop.f32.mrf.mxu0  ;;  %v4966_v39 = vadd.f32 %v4965_v57, %v4935_v14  ;;  %v3956_v17 = vadd.f32 %v3865_v12, %v7894_v6 }
 0x1f2   : > { %v6375_v59 = vpop.f32.mrf.mxu1  ;;  %v4897_v33 = vadd.f32 %v4896_v63, %v4706_v1  ;;  %v4936_v2 = vmul.f32 %v4706_v1, %v4706_v1  ;;  %v4709_v28 = vadd.f32 %v6419_v9, %v3955_v8 }
 0x1f3   : > { %v4606_v36 = vpop.f32.mrf.mxu0  ;;  %v3959_v37 = vadd.f32 %v6375_v59, %v7897_v26 }
 0x1f4   : > { %v3868_v34 = vpop.f32.mrf.mxu1  ;;  %v4967_v13 = vadd.f32 %v4966_v39, %v4936_v2  ;;  %v5725_v50 = vpack.c.bf16 %v4709_v28, %v4708_v23  ;;  %v4707_v55 = vadd.f32 %v4606_v36, %v3953_v0  ;;  %v4939_v27 = vmul.f32 %v4709_v28, %v4709_v28 }
 0x1f5   : > { %v3957_v25 = vadd.f32 %v3868_v34, %v7900_v43 }
 0x1f6   : > { %v6378_v19 = vpop.f32.mrf.mxu1  ;;  %5781 = vst [vmem:[%s7967_s23 + $0x28] sm:$0xff] %v5725_v50   ;;  %v5720_v56 = vpack.c.bf16 %v4707_v55, %v4706_v1  ;;  %v4898_v21 = vadd.f32 %v4897_v33, %v4707_v55  ;;  %v4937_v16 = vmul.f32 %v4707_v55, %v4707_v55 }
 0x1f7   : > { %v3962_v43 = vadd.f32 %v6378_v19, %v7903_v30 }
 0x1f8   : > { %v3881_v29 = vpop.f32.mrf.mxu1  ;;  %5780 = vst [vmem:[%s7967_s23 + $0x20] sm:$0xff] %v5720_v56   ;;  %v4899_v44 = vadd.f32 %v4898_v21, %v4708_v23  ;;  %v4968_v20 = vadd.f32 %v4967_v13, %v4937_v16 }
 0x1f9   : > { %v6422_v7 = vpop.f32.mrf.mxu0  ;;  %v3960_v23 = vadd.f32 %v3881_v29, %v7906_v11 }
 0x1fa   : > { %v6379_v41 = vpop.f32.mrf.mxu1  ;;  %v4969_v22 = vadd.f32 %v4968_v20, %v4938_v24  ;;  %v4900_v47 = vadd.f32 %v4899_v44, %v4709_v28  ;;  %v4712_v8 = vadd.f32 %v6422_v7, %v3958_v54 }
 0x1fb   : > { %v4619_v53 = vpop.f32.mrf.mxu0  ;;  %v3963_v34 = vadd.f32 %v6379_v41, %v7909_v38 }
 0x1fc   : > { %v3884_v3 = vpop.f32.mrf.mxu1  ;;  %v4710_v35 = vadd.f32 %v4619_v53, %v3956_v17  ;;  %v4970_v18 = vadd.f32 %v4969_v22, %v4939_v27  ;;  %v4942_v2 = vmul.f32 %v4712_v8, %v4712_v8 }
 0x1fd   : > { %v6423_v10 = vpop.f32.mrf.mxu0  ;;  %v3961_v13 = vadd.f32 %v3884_v3, %v7912_v49 }
 0x1fe   : > { %v6382_v40 = vpop.f32.mrf.mxu1  ;;  %v4901_v6 = vadd.f32 %v4900_v47, %v4710_v35  ;;  %v4940_v12 = vmul.f32 %v4710_v35, %v4710_v35  ;;  %v4713_v14 = vadd.f32 %v6423_v10, %v3959_v37 }
 0x1ff   : > { %v4622_v61 = vpop.f32.mrf.mxu0  ;;  %v3966_v47 = vadd.f32 %v6382_v40, %v7915_v58 }
 0x200   : > { %v3897_v51 = vpop.f32.mrf.mxu1  ;;  %v4971_v42 = vadd.f32 %v4970_v18, %v4940_v12  ;;  %v5735_v57 = vpack.c.bf16 %v4713_v14, %v4712_v8  ;;  %v4711_v1 = vadd.f32 %v4622_v61, %v3957_v25  ;;  %v4943_v50 = vmul.f32 %v4713_v14, %v4713_v14 }
 0x201   : > { %v3964_v22 = vadd.f32 %v3897_v51, %v7918_v32 }
 0x202   : > { %v6383_v26 = vpop.f32.mrf.mxu1  ;;  %5783 = vst [vmem:[%s7967_s23 + $0x38] sm:$0xff] %v5735_v57   ;;  %v5730_v63 = vpack.c.bf16 %v4711_v1, %v4710_v35  ;;  %v4902_v0 = vadd.f32 %v4901_v6, %v4711_v1  ;;  %v4941_v59 = vmul.f32 %v4711_v1, %v4711_v1 }
 0x203   : > { %v6426_v9 = vpop.f32.mrf.mxu0  ;;  %v3967_v18 = vadd.f32 %v6383_v26, %v7921_v46 }
 0x204   : > { %v3900_v33 = vpop.f32.mrf.mxu1  ;;  %5782 = vst [vmem:[%s7967_s23 + $0x30] sm:$0xff] %v5730_v63   ;;  %v4903_v39 = vadd.f32 %v4902_v0, %v4712_v8  ;;  %v4972_v28 = vadd.f32 %v4971_v42, %v4941_v59  ;;  %v4716_v16 = vadd.f32 %v6426_v9, %v3962_v43 }
 0x205   : > { %v4635_v36 = vpop.f32.mrf.mxu0  ;;  %v3965_v10 = vadd.f32 %v3900_v33, %v7924_v4 }
 0x206   : > { %v4973_v55 = vadd.f32 %v4972_v28, %v4942_v2  ;;  %v4714_v56 = vadd.f32 %v4635_v36, %v3960_v23  ;;  %v4904_v21 = vadd.f32 %v4903_v39, %v4713_v14  ;;  %v6386_v29 = vpop.f32.mrf.mxu1  ;;  %v4946_v3 = vmul.f32 %v4716_v16, %v4716_v16 }
 0x207   : > { %v6427_v11 = vpop.f32.mrf.mxu0 }
 0x208   : > { %v4905_v30 = vadd.f32 %v4904_v21, %v4714_v56  ;;  %v4944_v19 = vmul.f32 %v4714_v56, %v4714_v56  ;;  %v4974_v24 = vadd.f32 %v4973_v55, %v4943_v50  ;;  %v4717_v44 = vadd.f32 %v6427_v11, %v3963_v34  ;;  %v3913_v41 = vpop.f32.mrf.mxu1 }
 0x209   : > { %v4638_v20 = vpop.f32.mrf.mxu0  ;;  %v3968_v43 = vadd.f32 %v3913_v41, %v7930_v52  ;;  %v3970_v34 = vadd.f32 %v6386_v29, %v7927_v45 }
 0x20a   : > { %v4975_v17 = vadd.f32 %v4974_v24, %v4944_v19  ;;  %v5745_v54 = vpack.c.bf16 %v4717_v44, %v4716_v16  ;;  %v4715_v38 = vadd.f32 %v4638_v20, %v3961_v13  ;;  %v6387_v8 = vpop.f32.mrf.mxu1  ;;  %v4947_v6 = vmul.f32 %v4717_v44, %v4717_v44 }
 0x20b   : > { %v3971_v36 = vadd.f32 %v6387_v8, %v7933_v31 }
 0x20c   : > { %5785 = vst [vmem:[%s7967_s23 + $0x48] sm:$0xff] %v5745_v54   ;;  %v5740_v49 = vpack.c.bf16 %v4715_v38, %v4714_v56  ;;  %v4906_v7 = vadd.f32 %v4905_v30, %v4715_v38  ;;  %v4945_v27 = vmul.f32 %v4715_v38, %v4715_v38  ;;  %v3916_v63 = vpop.f32.mrf.mxu1 }
 0x20d   : > { %v6430_v37 = vpop.f32.mrf.mxu0 }
 0x20e   : > { %5784 = vst [vmem:[%s7967_s23 + $0x40] sm:$0xff] %v5740_v49   ;;  %v4907_v53 = vadd.f32 %v4906_v7, %v4716_v16  ;;  %v4976_v35 = vadd.f32 %v4975_v17, %v4945_v27  ;;  %v4720_v42 = vadd.f32 %v6430_v37, %v3966_v47  ;;  %v6390_v9 = vpop.f32.mrf.mxu1  ;;  %v3969_v16 = vadd.f32 %v3916_v63, %v7936_v5 }
 0x20f   : > { %v4651_v25 = vpop.f32.mrf.mxu0 }
 0x210   : > { %v4977_v12 = vadd.f32 %v4976_v35, %v4946_v3  ;;  %v4718_v14 = vadd.f32 %v4651_v25, %v3964_v22  ;;  %v4908_v61 = vadd.f32 %v4907_v53, %v4717_v44  ;;  %v4950_v33 = vmul.f32 %v4720_v42, %v4720_v42  ;;  %v3929_v11 = vpop.f32.mrf.mxu1 }
 0x211   : > { %v6431_v32 = vpop.f32.mrf.mxu0  ;;  %v3972_v7 = vadd.f32 %v3929_v11, %v7944_v60  ;;  %v3974_v3 = vadd.f32 %v6390_v9, %v7939_v15 }
 0x212   : > { %v4909_v51 = vadd.f32 %v4908_v61, %v4718_v14  ;;  %v4948_v58 = vmul.f32 %v4718_v14, %v4718_v14  ;;  %v4978_v40 = vadd.f32 %v4977_v12, %v4947_v6  ;;  %v4721_v57 = vadd.f32 %v6431_v32, %v3967_v18  ;;  %v6391_v54 = vpop.f32.mrf.mxu1 }
 0x213   : > { %v4654_v1 = vpop.f32.mrf.mxu0  ;;  %v3975_v53 = vadd.f32 %v6391_v54, %v7948_v62 }
 0x214   : > { %v4979_v0 = vadd.f32 %v4978_v40, %v4948_v58  ;;  %v5755_v46 = vpack.c.bf16 %v4721_v57, %v4720_v42  ;;  %v4719_v26 = vadd.f32 %v4654_v1, %v3965_v10  ;;  %v4951_v13 = vmul.f32 %v4721_v57, %v4721_v57  ;;  %v3932_v37 = vpop.f32.mrf.mxu1 }
 0x215   : > { %v3973_v60 = vadd.f32 %v3932_v37, %v7951_v48 }
 0x216   : > { %5787 = vst [vmem:[%s7967_s23 + $0x58] sm:$0xff] %v5755_v46   ;;  %v5750_v4 = vpack.c.bf16 %v4719_v26, %v4718_v14  ;;  %v4910_v59 = vadd.f32 %v4909_v51, %v4719_v26  ;;  %v4949_v23 = vmul.f32 %v4719_v26, %v4719_v26 }
 0x218   : > { %5786 = vst [vmem:[%s7967_s23 + $0x50] sm:$0xff] %v5750_v4   ;;  %v4911_v2 = vadd.f32 %v4910_v59, %v4720_v42  ;;  %v4980_v39 = vadd.f32 %v4979_v0, %v4949_v23  ;;  %v6434_v28 = vpop.f32.mrf.mxu0 }
 0x219   : > { %v4724_v19 = vadd.f32 %v6434_v28, %v3970_v34 }
 0x21a   : > { %v4981_v50 = vadd.f32 %v4980_v39, %v4950_v33  ;;  %v4667_v55 = vpop.f32.mrf.mxu0  ;;  %v4912_v56 = vadd.f32 %v4911_v2, %v4721_v57 }
 0x21b   : > { %v4722_v21 = vadd.f32 %v4667_v55, %v3968_v43  ;;  %v4954_v5 = vmul.f32 %v4724_v19, %v4724_v19 }
 0x21c   : > { %v4982_v52 = vadd.f32 %v4981_v50, %v4951_v13  ;;  %v6435_v30 = vpop.f32.mrf.mxu0 }
 0x21d   : > { %v4913_v24 = vadd.f32 %v4912_v56, %v4722_v21  ;;  %v4952_v44 = vmul.f32 %v4722_v21, %v4722_v21  ;;  %v4725_v20 = vadd.f32 %v6435_v30, %v3971_v36 }
 0x21e   : > { %v4670_v17 = vpop.f32.mrf.mxu0 }
 0x21f   : > { %v4983_v45 = vadd.f32 %v4982_v52, %v4952_v44  ;;  %v5765_v29 = vpack.c.bf16 %v4725_v20, %v4724_v19  ;;  %v4723_v31 = vadd.f32 %v4670_v17, %v3969_v16  ;;  %v4955_v35 = vmul.f32 %v4725_v20, %v4725_v20 }
 0x221   : > { %5789 = vst [vmem:[%s7967_s23 + $0x68] sm:$0xff] %v5765_v29   ;;  %v5760_v38 = vpack.c.bf16 %v4723_v31, %v4722_v21  ;;  %v4914_v41 = vadd.f32 %v4913_v24, %v4723_v31  ;;  %v4953_v49 = vmul.f32 %v4723_v31, %v4723_v31 }
 0x223   : > { %5788 = vst [vmem:[%s7967_s23 + $0x60] sm:$0xff] %v5760_v38   ;;  %v4915_v27 = vadd.f32 %v4914_v41, %v4724_v19  ;;  %v4984_v22 = vadd.f32 %v4983_v45, %v4953_v49  ;;  %v6438_v47 = vpop.f32.mrf.mxu0 }
 0x224   : > { %v4728_v14 = vadd.f32 %v6438_v47, %v3974_v3 }
 0x225   : > { %v4985_v18 = vadd.f32 %v4984_v22, %v4954_v5  ;;  %v4683_v25 = vpop.f32.mrf.mxu0  ;;  %v4916_v10 = vadd.f32 %v4915_v27, %v4725_v20 }
 0x226   : > { %v4726_v8 = vadd.f32 %v4683_v25, %v3972_v7  ;;  %v4958_v1 = vmul.f32 %v4728_v14, %v4728_v14 }
 0x227   : > { %v4986_v6 = vadd.f32 %v4985_v18, %v4955_v35  ;;  %v6439_v12 = vpop.f32.mrf.mxu0 }
 0x228   : > { %v4917_v61 = vadd.f32 %v4916_v10, %v4726_v8  ;;  %v4956_v42 = vmul.f32 %v4726_v8, %v4726_v8  ;;  %v4729_v32 = vadd.f32 %v6439_v12, %v3975_v53 }
 0x229   : > { %v4686_v15 = vpop.f32.mrf.mxu0 }
 0x22a   : > { %v4987_v62 = vadd.f32 %v4986_v6, %v4956_v42  ;;  %v5775_v51 = vpack.c.bf16 %v4729_v32, %v4728_v14  ;;  %v4727_v58 = vadd.f32 %v4686_v15, %v3973_v60 }
 0x22c   : > { %5791 = vst [vmem:[%s7967_s23 + $0x78] sm:$0xff] %v5775_v51   ;;  %v5770_v48 = vpack.c.bf16 %v4727_v58, %v4726_v8  ;;  %v4918_v40 = vadd.f32 %v4917_v61, %v4727_v58  ;;  %v4957_v57 = vmul.f32 %v4727_v58, %v4727_v58 }
 0x22e   : > { %5790 = vst [vmem:[%s7967_s23 + $0x70] sm:$0xff] %v5770_v48   ;;  %v4919_v63 = vadd.f32 %v4918_v40, %v4728_v14  ;;  %v4988_v0 = vadd.f32 %v4987_v62, %v4957_v57 }
 0x22f   : > { %6689 = shalt.err (!%p6686_p3)
}
 0x230   : > { %s6690_s12 = scalar_lea.hbm %s8017_s5, 2048  ;;  %s6694_s22 = scalar_lea.hbm %s8133_s2, 4096 }
 0x231   : > { %p6691_p4 = scmp.ne.s32.totalorder %s8017_s5, %s6690_s12  ;;  %p6695_p9 = scmp.lt.s32.totalorder %s8017_s5, %s8133_s2 }
 0x232   : > { %p6696_p10 = scmp.lt.s32.totalorder %s6694_s22, %s6690_s12 }
 0x233   : > { %p6692_p7 = pnand %p6691_p4, %p6864_p5 }
 0x234   : > { %p6697_p11 = por %p6696_p10, %p6695_p9 }
 0x235   : > { %p6693_p8 = pneg %p6692_p7 }
 0x237   : > { %p6698_p12 = pnand %p6697_p11, %p6693_p8 }
 0x239   : > { %6701 = shalt.err (!%p6698_p12)
}
 0x23a   : > { %s6795_s29 = smov 64   ;;  %s6796_s30 = smov 4   ;;  %v4959_v46 = vmul.f32 %v4729_v32, %v4729_v32  ;;  %v4920_v26 = vadd.f32 %v4919_v63, %v4729_v32  ;;  %v4989_v4 = vadd.f32 %v4988_v0, %v4958_v1 }
 0x23b   : > { %6457 = dma.vmem_to_hbm [thread:$0]  (%p6864_p5), %s8019_s28, 2048, %s8017_s5, %s5001_s6, %s6795_s29, %s6795_s29, %s6796_s30  }
 0x23c   : > { %v4921_v59 = vrot.slane %v4920_v26, 4  ;;  %v4990_v23 = vadd.f32 %v4989_v4, %v4959_v46  ;;  %s5005_s7 = sand.u32 1, %s6845_s19   ;;  %s5660_s8 = sshll.u32 %s6845_s19, 4 }
 0x23d   : > { %s200_s9 = scalar_lea.vmem [#allocation4], %s7955_s11  ;;  %s206_s28 = scalar_lea.vmem [#allocation6], %s7955_s11 }
 0x23e   : > { %v4991_v43 = vrot.slane %v4990_v23, 4  ;;  %v4922_v9 = vadd.f32 %v4921_v59, %v4920_v26  ;;  %s5038_s10 = sshll.u32 %s200_s9, 4  ;;  %s5051_s5 = sshll.u32 %s206_s28, 4  ;;  %s8057_s10 = int_to_ptr.vmem [resolvable:$true] %s5038_s10  ;;  %s8064_s5 = int_to_ptr.vmem [resolvable:$true] %s5051_s5 }
 0x23f   : > { %s8055_s13 = scalar_lea.hbm %s8134_s3, %s5660_s8  ;;  %s8062_s22 = scalar_lea.hbm %s8135_s4, %s5660_s8 }
 0x240   : > { %v4923_v33 = vrot.slane %v4922_v9, 2  ;;  %v4992_v2 = vadd.f32 %v4991_v43, %v4990_v23  ;;  %s8066_s23 = scalar_lea.sflag [#allocation5], %s5005_s7  ;;  %s6702_s27 = scalar_lea.vmem %s8057_s10, 16 }
 0x241   : > { %p6703_p13 = scmp.ne.s32.totalorder %s8057_s10, %s6702_s27  ;;  %s6797_s29 = smov [#allocation4]  }
 0x242   : > { %v4924_v39 = vadd.f32 %v4923_v33, %v4922_v9  ;;  %v4993_v28 = vrot.slane %v4992_v2, 2  ;;  %s6706_s30 = sshll.u32 %s6797_s29, 4  ;;  %s6707_s30 = int_to_ptr.vmem [resolvable:$false] %s6706_s30 }
 0x243   : > { %p6704_p0 = pnand %p6703_p13, %p6864_p5  ;;  %s6708_s6 = scalar_lea.vmem %s6707_s30, 32 }
 0x244   : > { %v4925_v34 = vrot.slane %v4924_v39, 1  ;;  %v4994_v36 = vadd.f32 %v4993_v28, %v4992_v2  ;;  %p6709_p2 = scmp.lt.s32.totalorder %s8057_s10, %s6707_s30  ;;  %p6710_p3 = scmp.lt.s32.totalorder %s6708_s6, %s6702_s27 }
 0x245   : > { %p6705_p1 = pneg %p6704_p0 }
 0x246   : > { %v4926_v13 = vadd.f32 %v4925_v34, %v4924_v39  ;;  %v4995_v50 = vrot.slane %v4994_v36, 1  ;;  %p6711_p4 = por %p6710_p3, %p6709_p2 }
 0x248   : > { %4998 = vst [vmem:[%s200_s9] sm:$0x1] %v4926_v13  ;;  %v4996_v55 = vadd.f32 %v4995_v50, %v4994_v36  ;;  %p6712_p7 = pnand %p6711_p4, %p6705_p1 }
 0x24a   : > { %6715 = shalt.err (!%p6712_p7)
}
 0x24b   : > { %s6716_s7 = scalar_lea.hbm %s8055_s13, 16  ;;  %s6720_s12 = scalar_lea.hbm %s8134_s3, 32 }
 0x24c   : > { %p6717_p8 = scmp.ne.s32.totalorder %s8055_s13, %s6716_s7  ;;  %p6721_p11 = scmp.lt.s32.totalorder %s8055_s13, %s8134_s3 }
 0x24d   : > { %p6722_p12 = scmp.lt.s32.totalorder %s6720_s12, %s6716_s7 }
 0x24e   : > { %p6718_p9 = pnand %p6717_p8, %p6864_p5 }
 0x24f   : > { %p6723_p13 = por %p6722_p12, %p6721_p11 }
 0x250   : > { %p6719_p10 = pneg %p6718_p9 }
 0x252   : > { %p6724_p0 = pnand %p6723_p13, %p6719_p10 }
 0x254   : > { %6727 = shalt.err (!%p6724_p0)
}
 0x255   : > { %6458 = dma.vmem_to_hbm [thread:$0]  (%p6864_p5), %s8057_s10, 16, %s8055_s13, %s8066_s23   ;;  %4999 = vst [vmem:[%s206_s28] sm:$0x1] %v4996_v55 }
 0x256   : > { %s6728_s27 = scalar_lea.vmem %s8064_s5, 16  ;;  %s6798_s29 = smov [#allocation6]  }
 0x257   : > { %p6729_p1 = scmp.ne.s32.totalorder %s8064_s5, %s6728_s27  ;;  %s6732_s30 = sshll.u32 %s6798_s29, 4  ;;  %s6733_s30 = int_to_ptr.vmem [resolvable:$false] %s6732_s30 }
 0x258   : > { %s6734_s6 = scalar_lea.vmem %s6733_s30, 32  ;;  %p6735_p4 = scmp.lt.s32.totalorder %s8064_s5, %s6733_s30 }
 0x259   : > { %p6730_p2 = pnand %p6729_p1, %p6864_p5  ;;  %p6736_p7 = scmp.lt.s32.totalorder %s6734_s6, %s6728_s27 }
 0x25b   : > { %p6731_p3 = pneg %p6730_p2  ;;  %p6737_p8 = por %p6736_p7, %p6735_p4 }
 0x25d   : > { %p6738_p9 = pnand %p6737_p8, %p6731_p3 }
 0x25f   : > { %6741 = shalt.err (!%p6738_p9)
}
 0x260   : > { %s6742_s11 = scalar_lea.hbm %s8062_s22, 16  ;;  %s6746_s13 = scalar_lea.hbm %s8135_s4, 32 }
 0x261   : > { %p6743_p10 = scmp.ne.s32.totalorder %s8062_s22, %s6742_s11  ;;  %p6747_p13 = scmp.lt.s32.totalorder %s8062_s22, %s8135_s4 }
 0x262   : > { %p6748_p0 = scmp.lt.s32.totalorder %s6746_s13, %s6742_s11 }
 0x263   : > { %p6744_p11 = pnand %p6743_p10, %p6864_p5 }
 0x264   : > { %p6749_p1 = por %p6748_p0, %p6747_p13 }
 0x265   : > { %p6745_p12 = pneg %p6744_p11 }
 0x267   : > { %p6750_p2 = pnand %p6749_p1, %p6745_p12 }
 0x269   : > { %6753 = shalt.err (!%p6750_p2)
}
 0x26a   : > { %6459 = dma.vmem_to_hbm [thread:$0]  (%p6864_p5), %s8064_s5, 16, %s8062_s22, %s8066_s23  }
 0x26b PF: > { %p6473_p3 = scmp.ge.s32.totalorder %s6792_s18, 2  ;;  %s5063_s9 = sand.u32 1, %s6780_s15  }
 0x26c   : > { %s5064_s12 = scalar_lea.sflag [#allocation3], %s5063_s9 }
 0x26d   : > { %p6464_p4 = pnand %p6473_p3, %p6868_p6 }
 0x26f   : > { %p6465_p7 = pneg %p6464_p4 }
 0x271   : > { %6771 = dma.done.wait (%p6465_p7), %s5064_s12, 2048  }
 0x272   : > { %6773 = vsyncadd (%p6465_p7), %s5064_s12, 4294965248  ;;  %s5072_s19 = sand.u32 1, %s5163_s20  }
 0x273   : > { %s5073_s25 = scalar_lea.sflag [#allocation5], %s5072_s19 }
 0x274   : > { %6775 = dma.done.wait (%p6465_p7), %s5073_s25, 32  }
 0x275   : > { %6777 = vsyncadd (%p6465_p7), %s5073_s25, 4294967264  ;;  %p18_p5 = scmp.ge.s32.totalorder %s6849_s21, 4   ;;  %s8146_s15 = smov %s6784_s16 }
 0x276   : > { %s8147_s16 = smov %s6788_s17  ;;  %s8148_s17 = smov %s6862_s24 }
 0x277   : > { %s8149_s18 = smov %s6849_s21  ;;  %20 = sbr.rel (!%p18_p5) target bundleno = 5 (0x5), region = 104 }
 0x27c   :  { %5085 = vsyncpa [#allocation3], 1 }
 0x27d   :  { %5087 = vsyncpa [#allocation3 + $0x1], 1 }
 0x27e   :  { %5088 = vsyncpa [#allocation5], 1 }
 0x27f   :  { %5090 = vsyncpa [#allocation5 + $0x1], 1 }

</bundles_post_ra>
